<compile_context>
chip_gen: v6e
topology: v6e:2x2x1
jax: 0.10.0
libtpu: 0.0.40
codegen_flags: <defaults>
</compile_context>

<pallas_src>
import functools

import jax
import jax.numpy as jnp
import numpy as np
from jax import lax
from jax.experimental import pallas as pl
from jax.experimental.pallas import tpu as pltpu

LN_EPS = 1e-5
_LANES = 128
_MAX_TILE_ROWS = 256   # 1024 tokens / grid step: live f32 intermediates stay well
                       # under the default scoped-VMEM limit on v5e/v6e/v7x.


def transformer_block_kernel(x_ref, wproj_ref, m8_ref, wo_ref, mmean_ref,
                             wlin_ref, vec_ref, out_ref, *, dim, n_heads):
    """Fused TransformerBlock forward on a tile of packed token rows.

    Packed layout: each 128-lane row holds `128 // dim` consecutive tokens;
    token slot s occupies lanes [s*dim, (s+1)*dim).
    """
    H = n_heads
    rep = _LANES                    # 128 lanes = one packed row of tokens
    prep = H * rep                  # 512: H relative-offset copies per row

    xp = x_ref[...]                                                  # (T, 128) f32

    # Fused projection.  Within each chunk, lane L = r*128 + s*dim + h*D + d holds
    #   Q-chunk: Q[token(s), h, d]           (replicated across r)
    #   K-chunk: K[token(s), (h+r)%H, d]
    #   V-chunk: V[token(s), (h+r)%H, d]
    qkv = jnp.dot(xp, wproj_ref[...], preferred_element_type=jnp.float32)
    qp = qkv[:, 0 * prep:1 * prep]
    kp = qkv[:, 1 * prep:2 * prep]
    vp = qkv[:, 2 * prep:3 * prep]

    # scores(t, h, r) = <Q[t,h,:], K[t,(h+r)%H,:]>, broadcast over d via a
    # block-diagonal ones matrix (segment sum + broadcast on the MXU).
    sc = jnp.dot(qp * kp, m8_ref[...], preferred_element_type=jnp.float32)

    # Softmax over the H relative offsets r; each offset lives in its own
    # 128-lane-aligned chunk, so the reduction needs no cross-lane work.
    sc_r = [sc[:, r * rep:(r + 1) * rep] for r in range(H)]
    m = sc_r[0]
    for r in range(1, H):
        m = jnp.maximum(m, sc_r[r])
    p_r = [jnp.exp(s - m) for s in sc_r]
    denom = p_r[0]
    for r in range(1, H):
        denom = denom + p_r[r]
    inv = pl.reciprocal(denom, approx=True)       # EUP slot (nearly free)
    inv = inv * (2.0 - denom * inv)               # one Newton step -> ~f32 exact

    # Attention-weighted V; the sum over r lands directly back in packed
    # (token, dim) layout, so no separate head re-gather is needed.
    wv = p_r[0] * vp[:, 0:rep]
    for r in range(1, H):
        wv = wv + p_r[r] * vp[:, r * rep:(r + 1) * rep]
    wv = wv * inv

    y_attn = jnp.dot(wv, wo_ref[...], preferred_element_type=jnp.float32)

    mmean = mmean_ref[...]                        # block-diag ones/dim (per-token mean)
    g1 = vec_ref[0:1, :]
    b1 = vec_ref[1:2, :]
    g2 = vec_ref[2:3, :]
    b2 = vec_ref[3:4, :]
    b_lin = vec_ref[4:5, :]

    def layer_norm(z, g, b):
        # PyTorch LayerNorm: biased variance, eps inside the sqrt.  Per-token
        # (32-lane group) mean/var via the MXU keeps the VPU tail lane-dense.
        mu = jnp.dot(z, mmean, preferred_element_type=jnp.float32)
        zc = z - mu
        var = jnp.dot(zc * zc, mmean, preferred_element_type=jnp.float32)
        return zc * lax.rsqrt(var + LN_EPS) * g + b

    x1 = layer_norm(xp + y_attn, g1, b1)
    y_lin = jnp.dot(x1, wlin_ref[...], preferred_element_type=jnp.float32) + b_lin
    out_ref[...] = layer_norm(x1 + y_lin, g2, b2).astype(out_ref.dtype)


def _num_tensorcores():
    """Best-effort local TensorCore count (2 on v7x-class parts, else 1)."""
    try:
        dev = jax.devices()[0]
        n = getattr(dev, "num_cores", None)
        if isinstance(n, int) and n > 0:
            return n
        if "v7" in str(getattr(dev, "device_kind", "")).lower():
            return 2
    except Exception:
        pass
    return 1


def transformer_block(x, packed, *, dim, n_heads):
    S, d = x.shape
    assert d == dim and _LANES % dim == 0
    slots = _LANES // dim                            # tokens per packed row

    # Grid sizing: 1 step on 1-TC chips, an even multiple of the core count when
    # a 2nd TensorCore exists, VMEM-capped tile, zero-padded tail (no silent
    # single-giant-tile fallback).
    rows = pl.cdiv(S, slots)
    cores = _num_tensorcores()
    n_steps = max(1, pl.cdiv(rows, _MAX_TILE_ROWS))
    if cores > 1:
        n_steps = pl.cdiv(max(n_steps, cores), cores) * cores
    tile_rows = pl.cdiv(pl.cdiv(rows, n_steps), 8) * 8
    rows_pad = tile_rows * n_steps
    s_pad = rows_pad * slots

    if s_pad != S:
        x = jnp.concatenate([x, jnp.zeros((s_pad - S, dim), x.dtype)], axis=0)
    x_packed = x.reshape(rows_pad, _LANES)            # free relayout in HBM

    w_proj, m8, wo_p, mmean, wlin_p, vecs = (
        packed["W_proj"], packed["M8"], packed["Wo_p"], packed["Mmean"],
        packed["Wlin_p"], packed["vecs"])

    kernel = functools.partial(transformer_block_kernel, dim=dim, n_heads=n_heads)
    full = lambda a: pl.BlockSpec(tuple(a.shape), lambda i: (0, 0))
    out_packed = pl.pallas_call(
        kernel,
        out_shape=jax.ShapeDtypeStruct((rows_pad, _LANES), jnp.float32),
        grid=(n_steps,),
        in_specs=[
            pl.BlockSpec((tile_rows, _LANES), lambda i: (i, 0)),   # packed tokens
            full(w_proj), full(m8), full(wo_p), full(mmean), full(wlin_p),
            full(vecs),
        ],
        out_specs=pl.BlockSpec((tile_rows, _LANES), lambda i: (i, 0)),
        compiler_params=pltpu.CompilerParams(
            dimension_semantics=("parallel",)),        # 2-core split on v7x
    )(x_packed, w_proj, m8, wo_p, mmean, wlin_p, vecs)

    return out_packed.reshape(s_pad, dim)[:S]


def pack_params(p, dim, n_heads):
    """Host-side packing of raw (torch-equivalent) params into lane-dense operands."""
    H = n_heads
    D = dim // H
    slots = _LANES // dim
    eye_s = np.eye(slots, dtype=np.float32)

    W_q = np.asarray(p["W_q"], np.float32)
    W_k = np.asarray(p["W_k"], np.float32)
    W_v = np.asarray(p["W_v"], np.float32)
    W_o = np.asarray(p["W_o"], np.float32)
    W_lin = np.asarray(p["W_lin"], np.float32)

    # Fused projection weight (128, 3*H*128): for relative offset r the K/V
    # columns are rolled by r heads; each token slot gets its own block-diag copy.
    def proj(W, rolled):
        return np.concatenate(
            [np.kron(eye_s, np.roll(W, -r * D, axis=1) if rolled else W)
             for r in range(H)], axis=1)

    W_proj = np.concatenate(
        [proj(W_q, False), proj(W_k, True), proj(W_v, True)], axis=1)   # (128, 1536)

    # Segment sum + broadcast over each head_dim group of D lanes.
    n_seg = (H * _LANES) // D
    M8 = np.kron(np.eye(n_seg, dtype=np.float32), np.ones((D, D), np.float32))

    # Per-token-slot block-diagonal output projection / mean matrix / Linear.
    Wo_p = np.kron(eye_s, W_o)                                           # (128, 128)
    Mmean = np.kron(eye_s, np.full((dim, dim), 1.0 / dim, np.float32))   # (128, 128)
    Wlin_p = np.kron(eye_s, W_lin.T)                                     # x @ W^T per slot

    vecs = np.zeros((8, _LANES), np.float32)
    vecs[0] = np.tile(np.asarray(p["ln1_g"], np.float32), slots)
    vecs[1] = np.tile(np.asarray(p["ln1_b"], np.float32), slots)
    vecs[2] = np.tile(np.asarray(p["ln2_g"], np.float32), slots)
    vecs[3] = np.tile(np.asarray(p["ln2_b"], np.float32), slots)
    vecs[4] = np.tile(np.asarray(p["b_lin"], np.float32), slots)

    return {"W_proj": jnp.asarray(W_proj), "M8": jnp.asarray(M8),
            "Wo_p": jnp.asarray(Wo_p), "Mmean": jnp.asarray(Mmean),
            "Wlin_p": jnp.asarray(Wlin_p), "vecs": jnp.asarray(vecs)}


def make_params(key, dim):
    ks = jax.random.split(key, 6)
    bound = 1.0 / np.sqrt(dim)
    return {
        # Attention weights: torch.rand -> uniform [0, 1).
        "W_q": jax.random.uniform(ks[0], (dim, dim), jnp.float32),
        "W_k": jax.random.uniform(ks[1], (dim, dim), jnp.float32),
        "W_v": jax.random.uniform(ks[2], (dim, dim), jnp.float32),
        "W_o": jax.random.uniform(ks[3], (dim, dim), jnp.float32),
        # Linear(dim, dim): weight (out, in); forward uses x @ W.T + b.
        "W_lin": jax.random.uniform(ks[4], (dim, dim), jnp.float32, -bound, bound),
        "b_lin": jax.random.uniform(ks[5], (dim,), jnp.float32, -bound, bound),
        "ln1_g": jnp.ones((dim,), jnp.float32),
        "ln1_b": jnp.zeros((dim,), jnp.float32),
        "ln2_g": jnp.ones((dim,), jnp.float32),
        "ln2_b": jnp.zeros((dim,), jnp.float32),
    }


def transformer_block_ref(x, p, n_heads):
    """float64 NumPy reference mirroring the PyTorch module exactly."""
    x = np.asarray(x, np.float64)
    q = {k: np.asarray(v, np.float64) for k, v in p.items()}
    S, dim = x.shape
    D = dim // n_heads
    Q = (x @ q["W_q"]).reshape(S, n_heads, D)
    K = (x @ q["W_k"]).reshape(S, n_heads, D)
    V = (x @ q["W_v"]).reshape(S, n_heads, D)
    sc = np.einsum("shd,std->sht", Q, K)
    sc = sc - sc.max(axis=2, keepdims=True)
    attn = np.exp(sc)
    attn = attn / attn.sum(axis=2, keepdims=True)
    y = np.einsum("sht,std->shd", attn, V).reshape(S, dim) @ q["W_o"]

    def ln(z, g, b):
        mu = z.mean(-1, keepdims=True)
        var = ((z - mu) ** 2).mean(-1, keepdims=True)
        return (z - mu) / np.sqrt(var + LN_EPS) * g + b

    x1 = ln(x + y, q["ln1_g"], q["ln1_b"])
    y2 = x1 @ q["W_lin"].T + q["b_lin"]
    return ln(x1 + y2, q["ln2_g"], q["ln2_b"])


if __name__ == "__main__":
    SEQ, DIM, N_HEADS = 256, 32, 4

    key = jax.random.PRNGKey(0)
    k_x, k_p = jax.random.split(key)
    x = jax.random.uniform(k_x, (SEQ, DIM), jnp.float32)
    params = make_params(k_p, DIM)
    packed = pack_params(params, DIM, N_HEADS)

    out = transformer_block(x, packed, dim=DIM, n_heads=N_HEADS)
    out = jax.block_until_ready(out)

    ref = transformer_block_ref(x, params, N_HEADS)
    # Tolerance absorbs f32 reassociation (scores ~5e2 with uniform[0,1) weights)
    # plus the Newton-refined approx reciprocal; final outputs are O(1) post-LN.
    np.testing.assert_allclose(np.asarray(out, np.float64), ref, rtol=2e-3, atol=2e-3)

    print("KERNEL_OK")
</pallas_src>

<mosaic_0001>
module attributes {stable_mosaic.version = 11 : i64} {
  func.func @transformer_block_kernel(%arg0: i32, %arg1: memref<64x128xf32, #tpu.memory_space<vmem>>, %arg2: memref<128x1536xf32, #tpu.memory_space<vmem>>, %arg3: memref<512x512xf32, #tpu.memory_space<vmem>>, %arg4: memref<128x128xf32, #tpu.memory_space<vmem>>, %arg5: memref<128x128xf32, #tpu.memory_space<vmem>>, %arg6: memref<128x128xf32, #tpu.memory_space<vmem>>, %arg7: memref<8x128xf32, #tpu.memory_space<vmem>>, %arg8: memref<64x128xf32, #tpu.memory_space<vmem>>) attributes {dimension_semantics = [#tpu.dimension_semantics<parallel>], iteration_bounds = array<i64: 1>, scalar_prefetch = 0 : i64, scratch_operands = 0 : i64, tpu.core_type = #tpu.core_type<tc>, window_params = [{transform_indices = @transform_0, window_bounds = array<i64: 64, 128>}, {pipeline_mode = #tpu.pipeline_mode<synchronous>, transform_indices = @transform_1, window_bounds = array<i64: 128, 1536>}, {pipeline_mode = #tpu.pipeline_mode<synchronous>, transform_indices = @transform_2, window_bounds = array<i64: 512, 512>}, {pipeline_mode = #tpu.pipeline_mode<synchronous>, transform_indices = @transform_3, window_bounds = array<i64: 128, 128>}, {pipeline_mode = #tpu.pipeline_mode<synchronous>, transform_indices = @transform_4, window_bounds = array<i64: 128, 128>}, {pipeline_mode = #tpu.pipeline_mode<synchronous>, transform_indices = @transform_5, window_bounds = array<i64: 128, 128>}, {pipeline_mode = #tpu.pipeline_mode<synchronous>, transform_indices = @transform_6, window_bounds = array<i64: 8, 128>}, {transform_indices = @transform_7, window_bounds = array<i64: 64, 128>}]} {
    %c0 = arith.constant 0 : index
    %c0_0 = arith.constant 0 : index
    %0 = vector.load %arg1[%c0, %c0_0] : memref<64x128xf32, #tpu.memory_space<vmem>>, vector<64x128xf32>
    %c0_1 = arith.constant 0 : index
    %c0_2 = arith.constant 0 : index
    %1 = vector.load %arg2[%c0_1, %c0_2] : memref<128x1536xf32, #tpu.memory_space<vmem>>, vector<128x1536xf32>
    %cst = arith.constant dense<0.000000e+00> : vector<64x1536xf32>
    %2 = tpu.matmul %0, %1, %cst {dimension_numbers = #tpu.dot_dimension_numbers<[1], [0], [0], [1], [0, 0, 1, 1], [], []>} : vector<64x128xf32>, vector<128x1536xf32>, vector<64x1536xf32> -> vector<64x1536xf32>
    %3 = vector.extract_strided_slice %2 {offsets = [0, 0], sizes = [64, 512], strides = [1, 1]} : vector<64x1536xf32> to vector<64x512xf32>
    %4 = vector.extract_strided_slice %2 {offsets = [0, 512], sizes = [64, 512], strides = [1, 1]} : vector<64x1536xf32> to vector<64x512xf32>
    %5 = vector.extract_strided_slice %2 {offsets = [0, 1024], sizes = [64, 512], strides = [1, 1]} : vector<64x1536xf32> to vector<64x512xf32>
    %6 = arith.mulf %3, %4 : vector<64x512xf32>
    %c0_3 = arith.constant 0 : index
    %c0_4 = arith.constant 0 : index
    %7 = vector.load %arg3[%c0_3, %c0_4] : memref<512x512xf32, #tpu.memory_space<vmem>>, vector<512x512xf32>
    %cst_5 = arith.constant dense<0.000000e+00> : vector<64x512xf32>
    %8 = tpu.matmul %6, %7, %cst_5 {dimension_numbers = #tpu.dot_dimension_numbers<[1], [0], [0], [1], [0, 0, 1, 1], [], []>} : vector<64x512xf32>, vector<512x512xf32>, vector<64x512xf32> -> vector<64x512xf32>
    %9 = vector.extract_strided_slice %8 {offsets = [0, 0], sizes = [64, 128], strides = [1, 1]} : vector<64x512xf32> to vector<64x128xf32>
    %10 = vector.extract_strided_slice %8 {offsets = [0, 128], sizes = [64, 128], strides = [1, 1]} : vector<64x512xf32> to vector<64x128xf32>
    %11 = vector.extract_strided_slice %8 {offsets = [0, 256], sizes = [64, 128], strides = [1, 1]} : vector<64x512xf32> to vector<64x128xf32>
    %12 = vector.extract_strided_slice %8 {offsets = [0, 384], sizes = [64, 128], strides = [1, 1]} : vector<64x512xf32> to vector<64x128xf32>
    %13 = arith.maximumf %9, %10 : vector<64x128xf32>
    %14 = arith.maximumf %13, %11 : vector<64x128xf32>
    %15 = arith.maximumf %14, %12 : vector<64x128xf32>
    %16 = arith.subf %9, %15 : vector<64x128xf32>
    %17 = math.exp %16 : vector<64x128xf32>
    %18 = arith.subf %10, %15 : vector<64x128xf32>
    %19 = math.exp %18 : vector<64x128xf32>
    %20 = arith.subf %11, %15 : vector<64x128xf32>
    %21 = math.exp %20 : vector<64x128xf32>
    %22 = arith.subf %12, %15 : vector<64x128xf32>
    %23 = math.exp %22 : vector<64x128xf32>
    %24 = arith.addf %17, %19 : vector<64x128xf32>
    %25 = arith.addf %24, %21 : vector<64x128xf32>
    %26 = arith.addf %25, %23 : vector<64x128xf32>
    %27 = tpu.reciprocal %26 {approx = true} : vector<64x128xf32> -> vector<64x128xf32>
    %28 = arith.mulf %26, %27 : vector<64x128xf32>
    %cst_6 = arith.constant 2.000000e+00 : f32
    %29 = vector.broadcast %cst_6 : f32 to vector<64x128xf32>
    %30 = arith.subf %29, %28 : vector<64x128xf32>
    %31 = arith.mulf %27, %30 : vector<64x128xf32>
    %32 = vector.extract_strided_slice %5 {offsets = [0, 0], sizes = [64, 128], strides = [1, 1]} : vector<64x512xf32> to vector<64x128xf32>
    %33 = arith.mulf %17, %32 : vector<64x128xf32>
    %34 = vector.extract_strided_slice %5 {offsets = [0, 128], sizes = [64, 128], strides = [1, 1]} : vector<64x512xf32> to vector<64x128xf32>
    %35 = arith.mulf %19, %34 : vector<64x128xf32>
    %36 = arith.addf %33, %35 : vector<64x128xf32>
    %37 = vector.extract_strided_slice %5 {offsets = [0, 256], sizes = [64, 128], strides = [1, 1]} : vector<64x512xf32> to vector<64x128xf32>
    %38 = arith.mulf %21, %37 : vector<64x128xf32>
    %39 = arith.addf %36, %38 : vector<64x128xf32>
    %40 = vector.extract_strided_slice %5 {offsets = [0, 384], sizes = [64, 128], strides = [1, 1]} : vector<64x512xf32> to vector<64x128xf32>
    %41 = arith.mulf %23, %40 : vector<64x128xf32>
    %42 = arith.addf %39, %41 : vector<64x128xf32>
    %43 = arith.mulf %42, %31 : vector<64x128xf32>
    %c0_7 = arith.constant 0 : index
    %c0_8 = arith.constant 0 : index
    %44 = vector.load %arg4[%c0_7, %c0_8] : memref<128x128xf32, #tpu.memory_space<vmem>>, vector<128x128xf32>
    %cst_9 = arith.constant dense<0.000000e+00> : vector<64x128xf32>
    %45 = tpu.matmul %43, %44, %cst_9 {dimension_numbers = #tpu.dot_dimension_numbers<[1], [0], [0], [1], [0, 0, 1, 1], [], []>} : vector<64x128xf32>, vector<128x128xf32>, vector<64x128xf32> -> vector<64x128xf32>
    %c0_10 = arith.constant 0 : index
    %c0_11 = arith.constant 0 : index
    %46 = vector.load %arg5[%c0_10, %c0_11] : memref<128x128xf32, #tpu.memory_space<vmem>>, vector<128x128xf32>
    %c0_12 = arith.constant 0 : index
    %c0_13 = arith.constant 0 : index
    %47 = vector.load %arg7[%c0_12, %c0_13] : memref<8x128xf32, #tpu.memory_space<vmem>>, vector<1x128xf32>
    %c1 = arith.constant 1 : index
    %c0_14 = arith.constant 0 : index
    %48 = vector.load %arg7[%c1, %c0_14] : memref<8x128xf32, #tpu.memory_space<vmem>>, vector<1x128xf32>
    %c2 = arith.constant 2 : index
    %c0_15 = arith.constant 0 : index
    %49 = vector.load %arg7[%c2, %c0_15] : memref<8x128xf32, #tpu.memory_space<vmem>>, vector<1x128xf32>
    %c3 = arith.constant 3 : index
    %c0_16 = arith.constant 0 : index
    %50 = vector.load %arg7[%c3, %c0_16] : memref<8x128xf32, #tpu.memory_space<vmem>>, vector<1x128xf32>
    %c4 = arith.constant 4 : index
    %c0_17 = arith.constant 0 : index
    %51 = vector.load %arg7[%c4, %c0_17] : memref<8x128xf32, #tpu.memory_space<vmem>>, vector<1x128xf32>
    %52 = arith.addf %0, %45 : vector<64x128xf32>
    %cst_18 = arith.constant dense<0.000000e+00> : vector<64x128xf32>
    %53 = tpu.matmul %52, %46, %cst_18 {dimension_numbers = #tpu.dot_dimension_numbers<[1], [0], [0], [1], [0, 0, 1, 1], [], []>} : vector<64x128xf32>, vector<128x128xf32>, vector<64x128xf32> -> vector<64x128xf32>
    %54 = arith.subf %52, %53 : vector<64x128xf32>
    %55 = arith.mulf %54, %54 : vector<64x128xf32>
    %cst_19 = arith.constant dense<0.000000e+00> : vector<64x128xf32>
    %56 = tpu.matmul %55, %46, %cst_19 {dimension_numbers = #tpu.dot_dimension_numbers<[1], [0], [0], [1], [0, 0, 1, 1], [], []>} : vector<64x128xf32>, vector<128x128xf32>, vector<64x128xf32> -> vector<64x128xf32>
    %cst_20 = arith.constant 9.99999974E-6 : f32
    %57 = vector.broadcast %cst_20 : f32 to vector<64x128xf32>
    %58 = arith.addf %56, %57 : vector<64x128xf32>
    %59 = math.rsqrt %58 : vector<64x128xf32>
    %60 = arith.mulf %54, %59 : vector<64x128xf32>
    %61 = vector.broadcast %47 : vector<1x128xf32> to vector<64x128xf32>
    %62 = arith.mulf %60, %61 : vector<64x128xf32>
    %63 = vector.broadcast %48 : vector<1x128xf32> to vector<64x128xf32>
    %64 = arith.addf %62, %63 : vector<64x128xf32>
    %c0_21 = arith.constant 0 : index
    %c0_22 = arith.constant 0 : index
    %65 = vector.load %arg6[%c0_21, %c0_22] : memref<128x128xf32, #tpu.memory_space<vmem>>, vector<128x128xf32>
    %cst_23 = arith.constant dense<0.000000e+00> : vector<64x128xf32>
    %66 = tpu.matmul %64, %65, %cst_23 {dimension_numbers = #tpu.dot_dimension_numbers<[1], [0], [0], [1], [0, 0, 1, 1], [], []>} : vector<64x128xf32>, vector<128x128xf32>, vector<64x128xf32> -> vector<64x128xf32>
    %67 = vector.broadcast %51 : vector<1x128xf32> to vector<64x128xf32>
    %68 = arith.addf %66, %67 : vector<64x128xf32>
    %69 = arith.addf %64, %68 : vector<64x128xf32>
    %cst_24 = arith.constant dense<0.000000e+00> : vector<64x128xf32>
    %70 = tpu.matmul %69, %46, %cst_24 {dimension_numbers = #tpu.dot_dimension_numbers<[1], [0], [0], [1], [0, 0, 1, 1], [], []>} : vector<64x128xf32>, vector<128x128xf32>, vector<64x128xf32> -> vector<64x128xf32>
    %71 = arith.subf %69, %70 : vector<64x128xf32>
    %72 = arith.mulf %71, %71 : vector<64x128xf32>
    %cst_25 = arith.constant dense<0.000000e+00> : vector<64x128xf32>
    %73 = tpu.matmul %72, %46, %cst_25 {dimension_numbers = #tpu.dot_dimension_numbers<[1], [0], [0], [1], [0, 0, 1, 1], [], []>} : vector<64x128xf32>, vector<128x128xf32>, vector<64x128xf32> -> vector<64x128xf32>
    %cst_26 = arith.constant 9.99999974E-6 : f32
    %74 = vector.broadcast %cst_26 : f32 to vector<64x128xf32>
    %75 = arith.addf %73, %74 : vector<64x128xf32>
    %76 = math.rsqrt %75 : vector<64x128xf32>
    %77 = arith.mulf %71, %76 : vector<64x128xf32>
    %78 = vector.broadcast %49 : vector<1x128xf32> to vector<64x128xf32>
    %79 = arith.mulf %77, %78 : vector<64x128xf32>
    %80 = vector.broadcast %50 : vector<1x128xf32> to vector<64x128xf32>
    %81 = arith.addf %79, %80 : vector<64x128xf32>
    %c0_27 = arith.constant 0 : index
    %c0_28 = arith.constant 0 : index
    %82 = vector.load %arg8[%c0_27, %c0_28] : memref<64x128xf32, #tpu.memory_space<vmem>>, vector<64x128xf32>
    tpu.vector_store %arg8[%c0_27, %c0_28], %81 {strides = array<i32>} : memref<64x128xf32, #tpu.memory_space<vmem>>, vector<64x128xf32>,
    return
  }
  func.func @transform_0(%arg0: i32) -> (i32, i32) {
    %c0_i32 = arith.constant 0 : i32
    %c0_i32_0 = arith.constant 0 : i32
    return %arg0, %c0_i32 : i32, i32
  }
  func.func @transform_1(%arg0: i32) -> (i32, i32) {
    %c0_i32 = arith.constant 0 : i32
    %c0_i32_0 = arith.constant 0 : i32
    %c0_i32_1 = arith.constant 0 : i32
    return %c0_i32, %c0_i32_0 : i32, i32
  }
  func.func @transform_2(%arg0: i32) -> (i32, i32) {
    %c0_i32 = arith.constant 0 : i32
    %c0_i32_0 = arith.constant 0 : i32
    %c0_i32_1 = arith.constant 0 : i32
    return %c0_i32, %c0_i32_0 : i32, i32
  }
  func.func @transform_3(%arg0: i32) -> (i32, i32) {
    %c0_i32 = arith.constant 0 : i32
    %c0_i32_0 = arith.constant 0 : i32
    %c0_i32_1 = arith.constant 0 : i32
    return %c0_i32, %c0_i32_0 : i32, i32
  }
  func.func @transform_4(%arg0: i32) -> (i32, i32) {
    %c0_i32 = arith.constant 0 : i32
    %c0_i32_0 = arith.constant 0 : i32
    %c0_i32_1 = arith.constant 0 : i32
    return %c0_i32, %c0_i32_0 : i32, i32
  }
  func.func @transform_5(%arg0: i32) -> (i32, i32) {
    %c0_i32 = arith.constant 0 : i32
    %c0_i32_0 = arith.constant 0 : i32
    %c0_i32_1 = arith.constant 0 : i32
    return %c0_i32, %c0_i32_0 : i32, i32
  }
  func.func @transform_6(%arg0: i32) -> (i32, i32) {
    %c0_i32 = arith.constant 0 : i32
    %c0_i32_0 = arith.constant 0 : i32
    %c0_i32_1 = arith.constant 0 : i32
    return %c0_i32, %c0_i32_0 : i32, i32
  }
  func.func @transform_7(%arg0: i32) -> (i32, i32) {
    %c0_i32 = arith.constant 0 : i32
    %c0_i32_0 = arith.constant 0 : i32
    return %arg0, %c0_i32 : i32, i32
  }
}

</mosaic_0001>

<bundles_post_ra>
// kernel: tpu_custom_call.1
= control target key start
LH: loop header
LB: loop body
LE: loop exit
PB: predicated region body
PF: predicated region fallthrough
CT: control target
= control target key end

     0   :  { %12 = vsyncpa [#allocation3], 0  ;;  %s4501_s0 = inlined_call_operand.hbm [shape: f32[64,128], index: 0, kind: input, shape index: {}]   ;;  %s4502_s1 = inlined_call_operand.hbm [shape: f32[128,1536], index: 1, kind: input, shape index: {}]   ;;  %s4503_s2 = inlined_call_operand.hbm [shape: f32[512,512], index: 2, kind: input, shape index: {}]   ;;  %s4504_s3 = inlined_call_operand.hbm [shape: f32[128,128], index: 3, kind: input, shape index: {}]   ;;  %s4505_s4 = inlined_call_operand.hbm [shape: f32[128,128], index: 4, kind: input, shape index: {}]   ;;  %s4506_s5 = inlined_call_operand.hbm [shape: f32[128,128], index: 5, kind: input, shape index: {}]   ;;  %s4507_s6 = inlined_call_operand.vmem [shape: f32[8,128], index: 6, kind: input, shape index: {}]   ;;  %s4508_s7 = inlined_call_operand.hbm [shape: f32[64,128], index: 7, kind: output, shape index: {}]  }
   0x1   :  { %13 = vsyncpa [#allocation6], 0 }
   0x2   :  { %14 = vsyncpa [#allocation9], 0 }
   0x3   :  { %15 = vsyncpa [#allocation12], 0 }
   0x4   :  { %16 = vsyncpa [#allocation4], 0  ;;  %s3520_s24 = smov [#allocation5]  }
   0x5   :  { %s34_s25 = sshll.u32 %s3520_s24, 4  ;;  %s35_s25 = int_to_ptr.vmem [resolvable:$true] %s34_s25 }
   0x6   :  { %s3378_s26 = scalar_lea.vmem %s35_s25, 24576  ;;  %p3383_p1 = scmp.lt.s32.totalorder %s35_s25, %s35_s25 }
   0x7   :  { %p3379_p0 = scmp.ne.s32.totalorder %s35_s25, %s3378_s26  ;;  %p3384_p2 = scmp.lt.s32.totalorder %s3378_s26, %s3378_s26 }
   0x9   :  { %p3385_p3 = por %p3384_p2, %p3383_p1 }
   0xb   :  { %p3386_p4 = pnand %p3385_p3, %p3379_p0 }
   0xd   :  { %3389 = shalt.err (!%p3386_p4)
}
   0xe   :  { %s3521_s27 = smov 1536   ;;  %s3522_s28 = smov 96  }
   0xf   :  { %40 = dma.hbm_to_vmem [thread:$0]  %s4502_s1, 24576, %s35_s25, [#allocation6], %s3521_s27, %s3521_s27, %s3522_s28  }
  0x10   :  { %s3523_s8 = smov [#allocation8]   ;;  %s3524_s10 = smov [#allocation2]  }
  0x11   :  { %s58_s9 = sshll.u32 %s3523_s8, 4  ;;  %s22_s11 = sshll.u32 %s3524_s10, 4  ;;  %s59_s9 = int_to_ptr.vmem [resolvable:$true] %s58_s9  ;;  %s23_s11 = int_to_ptr.vmem [resolvable:$true] %s22_s11 }
  0x12   :  { %s3398_s12 = scalar_lea.vmem %s59_s9, 2048  ;;  %p3403_p6 = scmp.lt.s32.totalorder %s59_s9, %s59_s9 }
  0x13   :  { %p3399_p5 = scmp.ne.s32.totalorder %s59_s9, %s3398_s12  ;;  %p3404_p7 = scmp.lt.s32.totalorder %s3398_s12, %s3398_s12 }
  0x15   :  { %p3405_p8 = por %p3404_p7, %p3403_p6 }
  0x17   :  { %p3406_p9 = pnand %p3405_p8, %p3399_p5 }
  0x19   :  { %3409 = shalt.err (!%p3406_p9)
}
  0x1a   :  { %s3525_s13 = smov 128   ;;  %s3526_s14 = smov 8  }
  0x1b   :  { %64 = dma.hbm_to_vmem [thread:$0]  %s4504_s3, 2048, %s59_s9, [#allocation9], %s3525_s13, %s3525_s13, %s3526_s14  }
  0x1c   :  { %s3418_s1 = scalar_lea.vmem %s23_s11, 1024  ;;  %p3423_p11 = scmp.lt.s32.totalorder %s23_s11, %s23_s11 }
  0x1d   :  { %p3419_p10 = scmp.ne.s32.totalorder %s23_s11, %s3418_s1  ;;  %p3424_p12 = scmp.lt.s32.totalorder %s3418_s1, %s3418_s1 }
  0x1f   :  { %p3425_p13 = por %p3424_p12, %p3423_p11 }
  0x21   :  { %p3426_p0 = pnand %p3425_p13, %p3419_p10 }
  0x23   :  { %3429 = shalt.err (!%p3426_p0)
}
  0x24   :  { %28 = dma.hbm_to_vmem [thread:$0]  %s4501_s0, 1024, %s23_s11, [#allocation3], %s3525_s13, %s3525_s13, %s3526_s14  }
  0x25   :  { %s3527_s19 = smov [#allocation7]  }
  0x26   :  { %s46_s20 = sshll.u32 %s3527_s19, 4  ;;  %s47_s20 = int_to_ptr.vmem [resolvable:$true] %s46_s20 }
  0x27   :  { %s3438_s21 = scalar_lea.vmem %s47_s20, 32768  ;;  %p3443_p2 = scmp.lt.s32.totalorder %s47_s20, %s47_s20 }
  0x28   :  { %p3439_p1 = scmp.ne.s32.totalorder %s47_s20, %s3438_s21  ;;  %p3444_p3 = scmp.lt.s32.totalorder %s3438_s21, %s3438_s21 }
  0x2a   :  { %p3445_p4 = por %p3444_p3, %p3443_p2 }
  0x2c   :  { %p3446_p5 = pnand %p3445_p4, %p3439_p1 }
  0x2e   :  { %3449 = shalt.err (!%p3446_p5)
}
  0x2f   :  { %s3528_s3 = smov 512   ;;  %s3529_s22 = smov 32  }
  0x30   :  { %52 = dma.hbm_to_vmem [thread:$0]  %s4503_s2, 32768, %s47_s20, [#allocation6], %s3528_s3, %s3528_s3, %s3529_s22  }
  0x31   :  { %s3530_s25 = smov [#allocation10]   ;;  %s3531_s27 = smov [#allocation11]  }
  0x32   :  { %s70_s26 = sshll.u32 %s3530_s25, 4  ;;  %s82_s0 = sshll.u32 %s3531_s27, 4  ;;  %s71_s26 = int_to_ptr.vmem [resolvable:$true] %s70_s26  ;;  %s83_s0 = int_to_ptr.vmem [resolvable:$true] %s82_s0 }
  0x33   :  { %s3458_s28 = scalar_lea.vmem %s71_s26, 2048  ;;  %p3463_p7 = scmp.lt.s32.totalorder %s71_s26, %s71_s26 }
  0x34   :  { %p3459_p6 = scmp.ne.s32.totalorder %s71_s26, %s3458_s28  ;;  %p3464_p8 = scmp.lt.s32.totalorder %s3458_s28, %s3458_s28 }
  0x36   :  { %p3465_p9 = por %p3464_p8, %p3463_p7 }
  0x38   :  { %p3466_p10 = pnand %p3465_p9, %p3459_p6 }
  0x3a   :  { %3469 = shalt.err (!%p3466_p10)
}
  0x3b   :  { %76 = dma.hbm_to_vmem [thread:$0]  %s4505_s4, 2048, %s71_s26, [#allocation9], %s3525_s13, %s3525_s13, %s3526_s14  }
  0x3c   :  { %s3478_s2 = scalar_lea.vmem %s83_s0, 2048  ;;  %p3483_p12 = scmp.lt.s32.totalorder %s83_s0, %s83_s0 }
  0x3d   :  { %p3479_p11 = scmp.ne.s32.totalorder %s83_s0, %s3478_s2  ;;  %p3484_p13 = scmp.lt.s32.totalorder %s3478_s2, %s3478_s2 }
  0x3f   :  { %p3485_p0 = por %p3484_p13, %p3483_p12 }
  0x41   :  { %p3486_p1 = pnand %p3485_p0, %p3479_p11 }
  0x43   :  { %3489 = shalt.err (!%p3486_p1)
}
  0x44   :  { %88 = dma.hbm_to_vmem [thread:$0]  %s4506_s5, 2048, %s83_s0, [#allocation12], %s3525_s13, %s3525_s13, %s3526_s14  }
  0x45   :  { %3510 = dma.done.wait [#allocation3], 1024  }
  0x46   :  { %3511 = vsyncadd [#allocation3], 4294966272 }
  0x47   :  { %3512 = dma.done.wait [#allocation6], 57344  }
  0x48   :  { %3513 = vsyncadd [#allocation6], 4294909952 }
  0x49   :  { %3514 = dma.done.wait [#allocation9], 4096  }
  0x4a   :  { %3515 = vsyncadd [#allocation9], 4294963200 }
  0x4b   :  { %3516 = dma.done.wait [#allocation12], 2048  }
  0x4c   :  { %3517 = vsyncadd [#allocation12], 4294965248  ;;  %v3532_v0 = vmov 0.0   ;;  %v298_v1 = vld [vmem:[#allocation5 + $0x5a8] sm:$0xff]  ;;  %v300_v2 = vld [vmem:[#allocation5 + $0x5b8] sm:$0xff] }
  0x4d   :  { %373 = vmatprep.mubr.f32.mxu0 %v3532_v0  ;;  %486 = vmatprep.mubr.f32.mxu1 %v3532_v0  ;;  %v297_v3 = vld [vmem:[#allocation5 + $0x5a0] sm:$0xff]  ;;  %v299_v4 = vld [vmem:[#allocation5 + $0x5b0] sm:$0xff]  ;;  %v286_v5 = vld [vmem:[#allocation5 + $0x548] sm:$0xff] }
  0x4e   :  { %309 = vmatprep.subr.mxu0 %v298_v1  ;;  %422 = vmatprep.subr.mxu1 %v300_v2  ;;  %v288_v6 = vld [vmem:[#allocation5 + $0x558] sm:$0xff]  ;;  %v285_v7 = vld [vmem:[#allocation5 + $0x540] sm:$0xff]  ;;  %v287_v8 = vld [vmem:[#allocation5 + $0x550] sm:$0xff] }
  0x4f   :  { %310 = vmatpush1.msra.mxu0 %v297_v3  ;;  %423 = vmatpush1.msra.mxu1 %v299_v4  ;;  %v274_v9 = vld [vmem:[#allocation5 + $0x4e8] sm:$0xff]  ;;  %v276_v10 = vld [vmem:[#allocation5 + $0x4f8] sm:$0xff]  ;;  %v273_v11 = vld [vmem:[#allocation5 + $0x4e0] sm:$0xff] }
  0x50   :  { %311 = vmatprep.subr.mxu0 %v286_v5  ;;  %424 = vmatprep.subr.mxu1 %v288_v6  ;;  %v275_v12 = vld [vmem:[#allocation5 + $0x4f0] sm:$0xff]  ;;  %v262_v13 = vld [vmem:[#allocation5 + $0x488] sm:$0xff]  ;;  %v264_v14 = vld [vmem:[#allocation5 + $0x498] sm:$0xff] }
  0x51   :  { %312 = vmatpush1.msra.mxu0 %v285_v7  ;;  %425 = vmatpush1.msra.mxu1 %v287_v8  ;;  %v261_v15 = vld [vmem:[#allocation5 + $0x480] sm:$0xff]  ;;  %v263_v16 = vld [vmem:[#allocation5 + $0x490] sm:$0xff]  ;;  %v250_v17 = vld [vmem:[#allocation5 + $0x428] sm:$0xff] }
  0x52   :  { %313 = vmatprep.subr.mxu0 %v274_v9  ;;  %426 = vmatprep.subr.mxu1 %v276_v10  ;;  %v252_v18 = vld [vmem:[#allocation5 + $0x438] sm:$0xff]  ;;  %v249_v19 = vld [vmem:[#allocation5 + $0x420] sm:$0xff]  ;;  %v251_v20 = vld [vmem:[#allocation5 + $0x430] sm:$0xff] }
  0x53   :  { %314 = vmatpush1.msra.mxu0 %v273_v11  ;;  %427 = vmatpush1.msra.mxu1 %v275_v12  ;;  %v238_v21 = vld [vmem:[#allocation5 + $0x3c8] sm:$0xff]  ;;  %v240_v22 = vld [vmem:[#allocation5 + $0x3d8] sm:$0xff]  ;;  %v237_v23 = vld [vmem:[#allocation5 + $0x3c0] sm:$0xff] }
  0x54   :  { %315 = vmatprep.subr.mxu0 %v262_v13  ;;  %428 = vmatprep.subr.mxu1 %v264_v14  ;;  %v239_v24 = vld [vmem:[#allocation5 + $0x3d0] sm:$0xff]  ;;  %v226_v25 = vld [vmem:[#allocation5 + $0x368] sm:$0xff]  ;;  %v228_v26 = vld [vmem:[#allocation5 + $0x378] sm:$0xff] }
  0x55   :  { %316 = vmatpush1.msra.mxu0 %v261_v15  ;;  %429 = vmatpush1.msra.mxu1 %v263_v16  ;;  %v225_v27 = vld [vmem:[#allocation5 + $0x360] sm:$0xff]  ;;  %v227_v28 = vld [vmem:[#allocation5 + $0x370] sm:$0xff]  ;;  %v214_v29 = vld [vmem:[#allocation5 + $0x308] sm:$0xff] }
  0x56   :  { %317 = vmatprep.subr.mxu0 %v250_v17  ;;  %430 = vmatprep.subr.mxu1 %v252_v18  ;;  %v216_v30 = vld [vmem:[#allocation5 + $0x318] sm:$0xff]  ;;  %v213_v31 = vld [vmem:[#allocation5 + $0x300] sm:$0xff]  ;;  %v215_v32 = vld [vmem:[#allocation5 + $0x310] sm:$0xff] }
  0x57   :  { %318 = vmatpush1.msra.mxu0 %v249_v19  ;;  %431 = vmatpush1.msra.mxu1 %v251_v20  ;;  %v202_v33 = vld [vmem:[#allocation5 + $0x2a8] sm:$0xff]  ;;  %v204_v34 = vld [vmem:[#allocation5 + $0x2b8] sm:$0xff]  ;;  %v201_v35 = vld [vmem:[#allocation5 + $0x2a0] sm:$0xff] }
  0x58   :  { %319 = vmatprep.subr.mxu0 %v238_v21  ;;  %432 = vmatprep.subr.mxu1 %v240_v22  ;;  %v203_v36 = vld [vmem:[#allocation5 + $0x2b0] sm:$0xff]  ;;  %v190_v37 = vld [vmem:[#allocation5 + $0x248] sm:$0xff]  ;;  %v192_v38 = vld [vmem:[#allocation5 + $0x258] sm:$0xff] }
  0x59   :  { %320 = vmatpush1.msra.mxu0 %v237_v23  ;;  %433 = vmatpush1.msra.mxu1 %v239_v24  ;;  %v189_v39 = vld [vmem:[#allocation5 + $0x240] sm:$0xff]  ;;  %v191_v40 = vld [vmem:[#allocation5 + $0x250] sm:$0xff]  ;;  %v178_v41 = vld [vmem:[#allocation5 + $0x1e8] sm:$0xff] }
  0x5a   :  { %321 = vmatprep.subr.mxu0 %v226_v25  ;;  %434 = vmatprep.subr.mxu1 %v228_v26  ;;  %v180_v42 = vld [vmem:[#allocation5 + $0x1f8] sm:$0xff]  ;;  %v177_v43 = vld [vmem:[#allocation5 + $0x1e0] sm:$0xff]  ;;  %v179_v44 = vld [vmem:[#allocation5 + $0x1f0] sm:$0xff] }
  0x5b   :  { %322 = vmatpush1.msra.mxu0 %v225_v27  ;;  %435 = vmatpush1.msra.mxu1 %v227_v28  ;;  %v166_v45 = vld [vmem:[#allocation5 + $0x188] sm:$0xff]  ;;  %v168_v46 = vld [vmem:[#allocation5 + $0x198] sm:$0xff]  ;;  %v165_v47 = vld [vmem:[#allocation5 + $0x180] sm:$0xff] }
  0x5c   :  { %323 = vmatprep.subr.mxu0 %v214_v29  ;;  %436 = vmatprep.subr.mxu1 %v216_v30  ;;  %v167_v48 = vld [vmem:[#allocation5 + $0x190] sm:$0xff]  ;;  %v154_v49 = vld [vmem:[#allocation5 + $0x128] sm:$0xff]  ;;  %v156_v50 = vld [vmem:[#allocation5 + $0x138] sm:$0xff] }
  0x5d   :  { %324 = vmatpush1.msra.mxu0 %v213_v31  ;;  %437 = vmatpush1.msra.mxu1 %v215_v32  ;;  %v153_v51 = vld [vmem:[#allocation5 + $0x120] sm:$0xff]  ;;  %v155_v52 = vld [vmem:[#allocation5 + $0x130] sm:$0xff]  ;;  %v142_v53 = vld [vmem:[#allocation5 + $0xc8] sm:$0xff] }
  0x5e   :  { %325 = vmatprep.subr.mxu0 %v202_v33  ;;  %438 = vmatprep.subr.mxu1 %v204_v34  ;;  %v144_v54 = vld [vmem:[#allocation5 + $0xd8] sm:$0xff]  ;;  %v141_v55 = vld [vmem:[#allocation5 + $0xc0] sm:$0xff]  ;;  %v143_v56 = vld [vmem:[#allocation5 + $0xd0] sm:$0xff] }
  0x5f   :  { %326 = vmatpush1.msra.mxu0 %v201_v35  ;;  %439 = vmatpush1.msra.mxu1 %v203_v36  ;;  %v130_v57 = vld [vmem:[#allocation5 + $0x68] sm:$0xff]  ;;  %v132_v58 = vld [vmem:[#allocation5 + $0x78] sm:$0xff]  ;;  %v129_v59 = vld [vmem:[#allocation5 + $0x60] sm:$0xff] }
  0x60   :  { %327 = vmatprep.subr.mxu0 %v190_v37  ;;  %440 = vmatprep.subr.mxu1 %v192_v38  ;;  %v131_v60 = vld [vmem:[#allocation5 + $0x70] sm:$0xff]  ;;  %v118_v61 = vld [vmem:[#allocation5 + $0x8] sm:$0xff]  ;;  %v120_v62 = vld [vmem:[#allocation5 + $0x18] sm:$0xff] }
  0x61   :  { %328 = vmatpush1.msra.mxu0 %v189_v39  ;;  %441 = vmatpush1.msra.mxu1 %v191_v40  ;;  %v117_v63 = vld [vmem:[#allocation5] sm:$0xff]  ;;  %v119_v1 = vld [vmem:[#allocation5 + $0x10] sm:$0xff]  ;;  %v302_v3 = vld [vmem:[#allocation5 + $0x5c8] sm:$0xff] }
  0x62   :  { %329 = vmatprep.subr.mxu0 %v178_v41  ;;  %442 = vmatprep.subr.mxu1 %v180_v42  ;;  %v3606_v2 = vld [vmem:[#allocation2] sm:$0xff]  ;;  %v304_v4 = vld [vmem:[#allocation5 + $0x5d8] sm:$0xff]  ;;  %v303_v6 = vld [vmem:[#allocation5 + $0x5d0] sm:$0xff] }
  0x63   :  { %330 = vmatpush1.msra.mxu0 %v177_v43  ;;  %443 = vmatpush1.msra.mxu1 %v179_v44  ;;  %v301_v5 = vld [vmem:[#allocation5 + $0x5c0] sm:$0xff]  ;;  %v290_v7 = vld [vmem:[#allocation5 + $0x568] sm:$0xff]  ;;  %v292_v8 = vld [vmem:[#allocation5 + $0x578] sm:$0xff] }
  0x64   :  { %331 = vmatprep.subr.mxu0 %v166_v45  ;;  %444 = vmatprep.subr.mxu1 %v168_v46  ;;  %v289_v9 = vld [vmem:[#allocation5 + $0x560] sm:$0xff]  ;;  %v291_v10 = vld [vmem:[#allocation5 + $0x570] sm:$0xff]  ;;  %v3610_v11 = vld [vmem:[#allocation2 + $0x8] sm:$0xff] }
  0x65   :  { %332 = vmatpush1.msra.mxu0 %v165_v47  ;;  %445 = vmatpush1.msra.mxu1 %v167_v48  ;;  %v278_v12 = vld [vmem:[#allocation5 + $0x508] sm:$0xff]  ;;  %v280_v13 = vld [vmem:[#allocation5 + $0x518] sm:$0xff]  ;;  %v277_v14 = vld [vmem:[#allocation5 + $0x500] sm:$0xff] }
  0x66   :  { %333 = vmatprep.subr.mxu0 %v154_v49  ;;  %446 = vmatprep.subr.mxu1 %v156_v50  ;;  %v279_v15 = vld [vmem:[#allocation5 + $0x510] sm:$0xff]  ;;  %v266_v16 = vld [vmem:[#allocation5 + $0x4a8] sm:$0xff]  ;;  %v268_v17 = vld [vmem:[#allocation5 + $0x4b8] sm:$0xff] }
  0x67   :  { %334 = vmatpush1.msra.mxu0 %v153_v51  ;;  %447 = vmatpush1.msra.mxu1 %v155_v52  ;;  %v265_v18 = vld [vmem:[#allocation5 + $0x4a0] sm:$0xff]  ;;  %v267_v19 = vld [vmem:[#allocation5 + $0x4b0] sm:$0xff]  ;;  %v254_v21 = vld [vmem:[#allocation5 + $0x448] sm:$0xff] }
  0x68   :  { %335 = vmatprep.subr.mxu0 %v142_v53  ;;  %448 = vmatprep.subr.mxu1 %v144_v54  ;;  %v3616_v20 = vld [vmem:[#allocation2 + $0x10] sm:$0xff]  ;;  %v256_v22 = vld [vmem:[#allocation5 + $0x458] sm:$0xff]  ;;  %v253_v23 = vld [vmem:[#allocation5 + $0x440] sm:$0xff] }
  0x69   :  { %336 = vmatpush1.msra.mxu0 %v141_v55  ;;  %449 = vmatpush1.msra.mxu1 %v143_v56  ;;  %v255_v24 = vld [vmem:[#allocation5 + $0x450] sm:$0xff]  ;;  %v242_v25 = vld [vmem:[#allocation5 + $0x3e8] sm:$0xff]  ;;  %v244_v26 = vld [vmem:[#allocation5 + $0x3f8] sm:$0xff] }
  0x6a   :  { %337 = vmatprep.subr.mxu0 %v130_v57  ;;  %450 = vmatprep.subr.mxu1 %v132_v58  ;;  %v241_v27 = vld [vmem:[#allocation5 + $0x3e0] sm:$0xff]  ;;  %v243_v28 = vld [vmem:[#allocation5 + $0x3f0] sm:$0xff]  ;;  %v3622_v29 = vld [vmem:[#allocation2 + $0x18] sm:$0xff] }
  0x6b   :  { %338 = vmatpush1.msra.mxu0 %v129_v59  ;;  %451 = vmatpush1.msra.mxu1 %v131_v60  ;;  %v230_v30 = vld [vmem:[#allocation5 + $0x388] sm:$0xff]  ;;  %v232_v31 = vld [vmem:[#allocation5 + $0x398] sm:$0xff]  ;;  %v229_v32 = vld [vmem:[#allocation5 + $0x380] sm:$0xff] }
  0x6c   :  { %339 = vmatprep.subr.mxu0 %v118_v61  ;;  %452 = vmatprep.subr.mxu1 %v120_v62  ;;  %v231_v33 = vld [vmem:[#allocation5 + $0x390] sm:$0xff]  ;;  %v218_v34 = vld [vmem:[#allocation5 + $0x328] sm:$0xff]  ;;  %v220_v35 = vld [vmem:[#allocation5 + $0x338] sm:$0xff] }
  0x6d   :  { %340 = vmatpush1.msra.mxu0 %v117_v63  ;;  %453 = vmatpush1.msra.mxu1 %v119_v1  ;;  %v217_v36 = vld [vmem:[#allocation5 + $0x320] sm:$0xff]  ;;  %v219_v37 = vld [vmem:[#allocation5 + $0x330] sm:$0xff]  ;;  %v206_v39 = vld [vmem:[#allocation5 + $0x2c8] sm:$0xff] }
  0x6e   :  { %374 = vmatmul.mubr.f32.vlgmr.msra.gmra.mxu0 %v3606_v2  ;;  %487 = vmatmul.mubr.f32.vlgmr.msra.gmra.mxu1 %v3606_v2  ;;  %v3628_v38 = vld [vmem:[#allocation2 + $0x20] sm:$0xff]  ;;  %v208_v40 = vld [vmem:[#allocation5 + $0x2d8] sm:$0xff]  ;;  %v207_v42 = vld [vmem:[#allocation5 + $0x2d0] sm:$0xff] }
  0x6f   :  { %535 = vmatprep.subr.mxu0 %v302_v3  ;;  %648 = vmatprep.subr.mxu1 %v304_v4  ;;  %v205_v41 = vld [vmem:[#allocation5 + $0x2c0] sm:$0xff]  ;;  %v194_v43 = vld [vmem:[#allocation5 + $0x268] sm:$0xff]  ;;  %v196_v44 = vld [vmem:[#allocation5 + $0x278] sm:$0xff] }
  0x70   :  { %536 = vmatpush1.msra.mxu0 %v301_v5  ;;  %649 = vmatpush1.msra.mxu1 %v303_v6  ;;  %v193_v45 = vld [vmem:[#allocation5 + $0x260] sm:$0xff]  ;;  %v195_v46 = vld [vmem:[#allocation5 + $0x270] sm:$0xff]  ;;  %v3634_v47 = vld [vmem:[#allocation2 + $0x28] sm:$0xff] }
  0x71   :  { %537 = vmatprep.subr.mxu0 %v290_v7  ;;  %650 = vmatprep.subr.mxu1 %v292_v8  ;;  %v182_v48 = vld [vmem:[#allocation5 + $0x208] sm:$0xff]  ;;  %v184_v49 = vld [vmem:[#allocation5 + $0x218] sm:$0xff]  ;;  %v181_v50 = vld [vmem:[#allocation5 + $0x200] sm:$0xff] }
  0x72   :  { %379 = vmatprep.mubr.f32.mxu0 %v3532_v0  ;;  %492 = vmatprep.mubr.f32.mxu1 %v3532_v0  ;;  %v183_v51 = vld [vmem:[#allocation5 + $0x210] sm:$0xff]  ;;  %v170_v52 = vld [vmem:[#allocation5 + $0x1a8] sm:$0xff]  ;;  %v172_v53 = vld [vmem:[#allocation5 + $0x1b8] sm:$0xff] }
  0x73   :  { %538 = vmatpush1.msra.mxu0 %v289_v9  ;;  %651 = vmatpush1.msra.mxu1 %v291_v10  ;;  %v169_v54 = vld [vmem:[#allocation5 + $0x1a0] sm:$0xff]  ;;  %v171_v55 = vld [vmem:[#allocation5 + $0x1b0] sm:$0xff]  ;;  %v158_v57 = vld [vmem:[#allocation5 + $0x148] sm:$0xff] }
  0x74   :  { %380 = vmatmul.mubr.f32.gmra.mxu0 %v3610_v11  ;;  %493 = vmatmul.mubr.f32.gmra.mxu1 %v3610_v11  ;;  %v3640_v56 = vld [vmem:[#allocation2 + $0x30] sm:$0xff]  ;;  %v160_v58 = vld [vmem:[#allocation5 + $0x158] sm:$0xff]  ;;  %v157_v59 = vld [vmem:[#allocation5 + $0x140] sm:$0xff] }
  0x75   :  { %539 = vmatprep.subr.mxu0 %v278_v12  ;;  %652 = vmatprep.subr.mxu1 %v280_v13  ;;  %v159_v60 = vld [vmem:[#allocation5 + $0x150] sm:$0xff]  ;;  %v146_v61 = vld [vmem:[#allocation5 + $0xe8] sm:$0xff]  ;;  %v148_v62 = vld [vmem:[#allocation5 + $0xf8] sm:$0xff] }
  0x76   :  { %540 = vmatpush1.msra.mxu0 %v277_v14  ;;  %653 = vmatpush1.msra.mxu1 %v279_v15  ;;  %v145_v63 = vld [vmem:[#allocation5 + $0xe0] sm:$0xff]  ;;  %v147_v1 = vld [vmem:[#allocation5 + $0xf0] sm:$0xff]  ;;  %v3646_v3 = vld [vmem:[#allocation2 + $0x38] sm:$0xff] }
  0x77   :  { %541 = vmatprep.subr.mxu0 %v266_v16  ;;  %654 = vmatprep.subr.mxu1 %v268_v17  ;;  %v134_v4 = vld [vmem:[#allocation5 + $0x88] sm:$0xff]  ;;  %v136_v5 = vld [vmem:[#allocation5 + $0x98] sm:$0xff]  ;;  %v133_v6 = vld [vmem:[#allocation5 + $0x80] sm:$0xff] }
  0x78   :  { %385 = vmatprep.mubr.f32.mxu0 %v3532_v0  ;;  %498 = vmatprep.mubr.f32.mxu1 %v3532_v0  ;;  %v135_v7 = vld [vmem:[#allocation5 + $0x90] sm:$0xff]  ;;  %v122_v8 = vld [vmem:[#allocation5 + $0x28] sm:$0xff]  ;;  %v124_v9 = vld [vmem:[#allocation5 + $0x38] sm:$0xff] }
  0x79   :  { %542 = vmatpush1.msra.mxu0 %v265_v18  ;;  %655 = vmatpush1.msra.mxu1 %v267_v19  ;;  %v121_v10 = vld [vmem:[#allocation5 + $0x20] sm:$0xff]  ;;  %v123_v12 = vld [vmem:[#allocation5 + $0x30] sm:$0xff]  ;;  %v306_v13 = vld [vmem:[#allocation5 + $0x5e8] sm:$0xff] }
  0x7a   :  { %386 = vmatmul.mubr.f32.gmra.mxu0 %v3616_v20  ;;  %499 = vmatmul.mubr.f32.gmra.mxu1 %v3616_v20  ;;  %v308_v14 = vld [vmem:[#allocation5 + $0x5f8] sm:$0xff]  ;;  %v305_v15 = vld [vmem:[#allocation5 + $0x5e0] sm:$0xff]  ;;  %v307_v16 = vld [vmem:[#allocation5 + $0x5f0] sm:$0xff] }
  0x7b   :  { %543 = vmatprep.subr.mxu0 %v254_v21  ;;  %656 = vmatprep.subr.mxu1 %v256_v22  ;;  %v294_v17 = vld [vmem:[#allocation5 + $0x588] sm:$0xff]  ;;  %v296_v18 = vld [vmem:[#allocation5 + $0x598] sm:$0xff]  ;;  %v293_v19 = vld [vmem:[#allocation5 + $0x580] sm:$0xff] }
  0x7c   :  { %544 = vmatpush1.msra.mxu0 %v253_v23  ;;  %657 = vmatpush1.msra.mxu1 %v255_v24  ;;  %v295_v21 = vld [vmem:[#allocation5 + $0x590] sm:$0xff]  ;;  %v282_v22 = vld [vmem:[#allocation5 + $0x528] sm:$0xff]  ;;  %v284_v23 = vld [vmem:[#allocation5 + $0x538] sm:$0xff] }
  0x7d   :  { %545 = vmatprep.subr.mxu0 %v242_v25  ;;  %658 = vmatprep.subr.mxu1 %v244_v26  ;;  %v281_v24 = vld [vmem:[#allocation5 + $0x520] sm:$0xff]  ;;  %v283_v25 = vld [vmem:[#allocation5 + $0x530] sm:$0xff]  ;;  %v270_v26 = vld [vmem:[#allocation5 + $0x4c8] sm:$0xff] }
  0x7e   :  { %391 = vmatprep.mubr.f32.mxu0 %v3532_v0  ;;  %504 = vmatprep.mubr.f32.mxu1 %v3532_v0 }
  0x7f   :  { %546 = vmatpush1.msra.mxu0 %v241_v27  ;;  %659 = vmatpush1.msra.mxu1 %v243_v28  ;;  %v272_v27 = vld [vmem:[#allocation5 + $0x4d8] sm:$0xff]  ;;  %v269_v28 = vld [vmem:[#allocation5 + $0x4c0] sm:$0xff] }
  0x80   :  { %392 = vmatmul.mubr.f32.gmra.mxu0 %v3622_v29  ;;  %505 = vmatmul.mubr.f32.gmra.mxu1 %v3622_v29 }
  0x81   :  { %547 = vmatprep.subr.mxu0 %v230_v30  ;;  %660 = vmatprep.subr.mxu1 %v232_v31  ;;  %v271_v30 = vld [vmem:[#allocation5 + $0x4d0] sm:$0xff]  ;;  %v258_v31 = vld [vmem:[#allocation5 + $0x468] sm:$0xff] }
  0x82   :  { %548 = vmatpush1.msra.mxu0 %v229_v32  ;;  %661 = vmatpush1.msra.mxu1 %v231_v33  ;;  %v260_v32 = vld [vmem:[#allocation5 + $0x478] sm:$0xff]  ;;  %v257_v33 = vld [vmem:[#allocation5 + $0x460] sm:$0xff] }
  0x83   :  { %549 = vmatprep.subr.mxu0 %v218_v34  ;;  %662 = vmatprep.subr.mxu1 %v220_v35  ;;  %v259_v34 = vld [vmem:[#allocation5 + $0x470] sm:$0xff]  ;;  %v246_v35 = vld [vmem:[#allocation5 + $0x408] sm:$0xff] }
  0x84   :  { %397 = vmatprep.mubr.f32.mxu0 %v3532_v0  ;;  %510 = vmatprep.mubr.f32.mxu1 %v3532_v0 }
  0x85   :  { %550 = vmatpush1.msra.mxu0 %v217_v36  ;;  %663 = vmatpush1.msra.mxu1 %v219_v37  ;;  %v248_v36 = vld [vmem:[#allocation5 + $0x418] sm:$0xff]  ;;  %v245_v37 = vld [vmem:[#allocation5 + $0x400] sm:$0xff] }
  0x86   :  { %398 = vmatmul.mubr.f32.gmra.mxu0 %v3628_v38  ;;  %511 = vmatmul.mubr.f32.gmra.mxu1 %v3628_v38 }
  0x87   :  { %551 = vmatprep.subr.mxu0 %v206_v39  ;;  %664 = vmatprep.subr.mxu1 %v208_v40  ;;  %v247_v39 = vld [vmem:[#allocation5 + $0x410] sm:$0xff]  ;;  %v234_v40 = vld [vmem:[#allocation5 + $0x3a8] sm:$0xff] }
  0x88   :  { %552 = vmatpush1.msra.mxu0 %v205_v41  ;;  %665 = vmatpush1.msra.mxu1 %v207_v42  ;;  %v236_v41 = vld [vmem:[#allocation5 + $0x3b8] sm:$0xff]  ;;  %v233_v42 = vld [vmem:[#allocation5 + $0x3a0] sm:$0xff] }
  0x89   :  { %553 = vmatprep.subr.mxu0 %v194_v43  ;;  %666 = vmatprep.subr.mxu1 %v196_v44  ;;  %v235_v43 = vld [vmem:[#allocation5 + $0x3b0] sm:$0xff]  ;;  %v222_v44 = vld [vmem:[#allocation5 + $0x348] sm:$0xff] }
  0x8a   :  { %403 = vmatprep.mubr.f32.mxu0 %v3532_v0  ;;  %516 = vmatprep.mubr.f32.mxu1 %v3532_v0 }
  0x8b   :  { %554 = vmatpush1.msra.mxu0 %v193_v45  ;;  %667 = vmatpush1.msra.mxu1 %v195_v46  ;;  %v224_v45 = vld [vmem:[#allocation5 + $0x358] sm:$0xff]  ;;  %v221_v46 = vld [vmem:[#allocation5 + $0x340] sm:$0xff] }
  0x8c   :  { %404 = vmatmul.mubr.f32.gmra.mxu0 %v3634_v47  ;;  %517 = vmatmul.mubr.f32.gmra.mxu1 %v3634_v47 }
  0x8d   :  { %555 = vmatprep.subr.mxu0 %v182_v48  ;;  %668 = vmatprep.subr.mxu1 %v184_v49  ;;  %v223_v48 = vld [vmem:[#allocation5 + $0x350] sm:$0xff]  ;;  %v210_v49 = vld [vmem:[#allocation5 + $0x2e8] sm:$0xff] }
  0x8e   :  { %556 = vmatpush1.msra.mxu0 %v181_v50  ;;  %669 = vmatpush1.msra.mxu1 %v183_v51  ;;  %v212_v50 = vld [vmem:[#allocation5 + $0x2f8] sm:$0xff]  ;;  %v209_v51 = vld [vmem:[#allocation5 + $0x2e0] sm:$0xff] }
  0x8f   :  { %557 = vmatprep.subr.mxu0 %v170_v52  ;;  %670 = vmatprep.subr.mxu1 %v172_v53  ;;  %v211_v52 = vld [vmem:[#allocation5 + $0x2f0] sm:$0xff]  ;;  %v198_v53 = vld [vmem:[#allocation5 + $0x288] sm:$0xff] }
  0x90   :  { %409 = vmatprep.mubr.f32.mxu0 %v3532_v0  ;;  %522 = vmatprep.mubr.f32.mxu1 %v3532_v0 }
  0x91   :  { %558 = vmatpush1.msra.mxu0 %v169_v54  ;;  %671 = vmatpush1.msra.mxu1 %v171_v55  ;;  %v200_v54 = vld [vmem:[#allocation5 + $0x298] sm:$0xff]  ;;  %v197_v55 = vld [vmem:[#allocation5 + $0x280] sm:$0xff] }
  0x92   :  { %410 = vmatmul.mubr.f32.gmra.mxu0 %v3640_v56  ;;  %523 = vmatmul.mubr.f32.gmra.mxu1 %v3640_v56 }
  0x93   :  { %559 = vmatprep.subr.mxu0 %v158_v57  ;;  %672 = vmatprep.subr.mxu1 %v160_v58  ;;  %v199_v57 = vld [vmem:[#allocation5 + $0x290] sm:$0xff]  ;;  %v186_v58 = vld [vmem:[#allocation5 + $0x228] sm:$0xff] }
  0x94   :  { %560 = vmatpush1.msra.mxu0 %v157_v59  ;;  %673 = vmatpush1.msra.mxu1 %v159_v60  ;;  %v188_v59 = vld [vmem:[#allocation5 + $0x238] sm:$0xff]  ;;  %v185_v60 = vld [vmem:[#allocation5 + $0x220] sm:$0xff] }
  0x95   :  { %561 = vmatprep.subr.mxu0 %v146_v61  ;;  %674 = vmatprep.subr.mxu1 %v148_v62  ;;  %v187_v61 = vld [vmem:[#allocation5 + $0x230] sm:$0xff]  ;;  %v174_v62 = vld [vmem:[#allocation5 + $0x1c8] sm:$0xff] }
  0x96   :  { %415 = vmatprep.mubr.f32.mxu0 %v3532_v0  ;;  %528 = vmatprep.mubr.f32.mxu1 %v3532_v0 }
  0x97   :  { %562 = vmatpush1.msra.mxu0 %v145_v63  ;;  %675 = vmatpush1.msra.mxu1 %v147_v1  ;;  %v176_v63 = vld [vmem:[#allocation5 + $0x1d8] sm:$0xff]  ;;  %v173_v1 = vld [vmem:[#allocation5 + $0x1c0] sm:$0xff] }
  0x98   :  { %416 = vmatmul.mubr.f32.gmra.mxu0 %v3646_v3  ;;  %529 = vmatmul.mubr.f32.gmra.mxu1 %v3646_v3 }
  0x99   :  { %563 = vmatprep.subr.mxu0 %v134_v4  ;;  %676 = vmatprep.subr.mxu1 %v136_v5  ;;  %v175_v4 = vld [vmem:[#allocation5 + $0x1d0] sm:$0xff]  ;;  %v162_v5 = vld [vmem:[#allocation5 + $0x168] sm:$0xff] }
  0x9a   :  { %564 = vmatpush1.msra.mxu0 %v133_v6  ;;  %677 = vmatpush1.msra.mxu1 %v135_v7  ;;  %v164_v6 = vld [vmem:[#allocation5 + $0x178] sm:$0xff]  ;;  %v161_v7 = vld [vmem:[#allocation5 + $0x160] sm:$0xff] }
  0x9b   :  { %565 = vmatprep.subr.mxu0 %v122_v8  ;;  %678 = vmatprep.subr.mxu1 %v124_v9  ;;  %v163_v8 = vld [vmem:[#allocation5 + $0x170] sm:$0xff]  ;;  %v150_v9 = vld [vmem:[#allocation5 + $0x108] sm:$0xff] }
  0x9c   :  { %566 = vmatpush1.msra.mxu0 %v121_v10  ;;  %599 = vmatprep.mubr.f32.mxu0 %v3532_v0  ;;  %v152_v10 = vld [vmem:[#allocation5 + $0x118] sm:$0xff] }
  0x9d   :  { %679 = vmatpush1.msra.mxu1 %v123_v12  ;;  %712 = vmatprep.mubr.f32.mxu1 %v3532_v0  ;;  %v149_v12 = vld [vmem:[#allocation5 + $0x100] sm:$0xff] }
  0x9e   :  { %600 = vmatmul.mubr.f32.vlgmr.msra.gmra.mxu0 %v3606_v2  ;;  %713 = vmatmul.mubr.f32.vlgmr.msra.gmra.mxu1 %v3606_v2 }
  0x9f   :  { %605 = vmatprep.mubr.f32.mxu0 %v3532_v0  ;;  %718 = vmatprep.mubr.f32.mxu1 %v3532_v0 }
  0xa0   :  { %761 = vmatprep.subr.mxu0 %v306_v13  ;;  %874 = vmatprep.subr.mxu1 %v308_v14  ;;  %v151_v13 = vld [vmem:[#allocation5 + $0x110] sm:$0xff]  ;;  %v138_v14 = vld [vmem:[#allocation5 + $0xa8] sm:$0xff] }
  0xa1   :  { %762 = vmatpush1.msra.mxu0 %v305_v15  ;;  %875 = vmatpush1.msra.mxu1 %v307_v16  ;;  %v140_v15 = vld [vmem:[#allocation5 + $0xb8] sm:$0xff]  ;;  %v137_v16 = vld [vmem:[#allocation5 + $0xa0] sm:$0xff] }
  0xa2   :  { %606 = vmatmul.mubr.f32.gmra.mxu0 %v3610_v11  ;;  %719 = vmatmul.mubr.f32.gmra.mxu1 %v3610_v11 }
  0xa3   :  { %611 = vmatprep.mubr.f32.mxu0 %v3532_v0  ;;  %724 = vmatprep.mubr.f32.mxu1 %v3532_v0 }
  0xa4   :  { %763 = vmatprep.subr.mxu0 %v294_v17  ;;  %876 = vmatprep.subr.mxu1 %v296_v18  ;;  %v139_v17 = vld [vmem:[#allocation5 + $0xb0] sm:$0xff]  ;;  %v126_v18 = vld [vmem:[#allocation5 + $0x48] sm:$0xff] }
  0xa5   :  { %764 = vmatpush1.msra.mxu0 %v293_v19  ;;  %877 = vmatpush1.msra.mxu1 %v295_v21  ;;  %v128_v19 = vld [vmem:[#allocation5 + $0x58] sm:$0xff]  ;;  %v125_v21 = vld [vmem:[#allocation5 + $0x40] sm:$0xff] }
  0xa6   :  { %612 = vmatmul.mubr.f32.gmra.mxu0 %v3616_v20  ;;  %725 = vmatmul.mubr.f32.gmra.mxu1 %v3616_v20 }
  0xa7   :  { %617 = vmatprep.mubr.f32.mxu0 %v3532_v0  ;;  %730 = vmatprep.mubr.f32.mxu1 %v3532_v0 }
  0xa8   :  { %765 = vmatprep.subr.mxu0 %v282_v22  ;;  %878 = vmatprep.subr.mxu1 %v284_v23  ;;  %v127_v22 = vld [vmem:[#allocation5 + $0x50] sm:$0xff]  ;;  %v1080_v23 = vld [vmem:[#allocation7 + $0x1e8] sm:$0xff] }
  0xa9   :  { %766 = vmatpush1.msra.mxu0 %v281_v24  ;;  %879 = vmatpush1.msra.mxu1 %v283_v25  ;;  %v1208_v24 = vld [vmem:[#allocation7 + $0x5e8] sm:$0xff]  ;;  %v1079_v25 = vld [vmem:[#allocation7 + $0x1e0] sm:$0xff] }
  0xaa   :  { %618 = vmatmul.mubr.f32.gmra.mxu0 %v3622_v29  ;;  %731 = vmatmul.mubr.f32.gmra.mxu1 %v3622_v29 }
  0xab   :  { %623 = vmatprep.mubr.f32.mxu0 %v3532_v0  ;;  %736 = vmatprep.mubr.f32.mxu1 %v3532_v0 }
  0xac   :  { %767 = vmatprep.subr.mxu0 %v270_v26  ;;  %880 = vmatprep.subr.mxu1 %v272_v27  ;;  %v1207_v26 = vld [vmem:[#allocation7 + $0x5e0] sm:$0xff]  ;;  %v1076_v27 = vld [vmem:[#allocation7 + $0x1c8] sm:$0xff] }
  0xad   :  { %768 = vmatpush1.msra.mxu0 %v269_v28  ;;  %881 = vmatpush1.msra.mxu1 %v271_v30  ;;  %v1204_v28 = vld [vmem:[#allocation7 + $0x5c8] sm:$0xff]  ;;  %v1075_v30 = vld [vmem:[#allocation7 + $0x1c0] sm:$0xff] }
  0xae   :  { %624 = vmatmul.mubr.f32.gmra.mxu0 %v3628_v38  ;;  %737 = vmatmul.mubr.f32.gmra.mxu1 %v3628_v38 }
  0xaf   :  { %629 = vmatprep.mubr.f32.mxu0 %v3532_v0  ;;  %742 = vmatprep.mubr.f32.mxu1 %v3532_v0 }
  0xb0   :  { %769 = vmatprep.subr.mxu0 %v258_v31  ;;  %882 = vmatprep.subr.mxu1 %v260_v32  ;;  %v1203_v31 = vld [vmem:[#allocation7 + $0x5c0] sm:$0xff]  ;;  %v1072_v32 = vld [vmem:[#allocation7 + $0x1a8] sm:$0xff] }
  0xb1   :  { %770 = vmatpush1.msra.mxu0 %v257_v33  ;;  %883 = vmatpush1.msra.mxu1 %v259_v34  ;;  %v1200_v33 = vld [vmem:[#allocation7 + $0x5a8] sm:$0xff]  ;;  %v1071_v34 = vld [vmem:[#allocation7 + $0x1a0] sm:$0xff] }
  0xb2   :  { %630 = vmatmul.mubr.f32.gmra.mxu0 %v3634_v47  ;;  %743 = vmatmul.mubr.f32.gmra.mxu1 %v3634_v47 }
  0xb3   :  { %635 = vmatprep.mubr.f32.mxu0 %v3532_v0  ;;  %748 = vmatprep.mubr.f32.mxu1 %v3532_v0 }
  0xb4   :  { %771 = vmatprep.subr.mxu0 %v246_v35  ;;  %884 = vmatprep.subr.mxu1 %v248_v36  ;;  %v1199_v35 = vld [vmem:[#allocation7 + $0x5a0] sm:$0xff]  ;;  %v1068_v36 = vld [vmem:[#allocation7 + $0x188] sm:$0xff] }
  0xb5   :  { %772 = vmatpush1.msra.mxu0 %v245_v37  ;;  %885 = vmatpush1.msra.mxu1 %v247_v39  ;;  %v1196_v37 = vld [vmem:[#allocation7 + $0x588] sm:$0xff]  ;;  %v1195_v39 = vld [vmem:[#allocation7 + $0x580] sm:$0xff] }
  0xb6   :  { %636 = vmatmul.mubr.f32.gmra.mxu0 %v3640_v56  ;;  %749 = vmatmul.mubr.f32.gmra.mxu1 %v3640_v56 }
  0xb7   :  { %641 = vmatprep.mubr.f32.mxu0 %v3532_v0  ;;  %754 = vmatprep.mubr.f32.mxu1 %v3532_v0 }
  0xb8   :  { %773 = vmatprep.subr.mxu0 %v234_v40  ;;  %886 = vmatprep.subr.mxu1 %v236_v41  ;;  %v1064_v40 = vld [vmem:[#allocation7 + $0x168] sm:$0xff] }
  0xb9   :  { %774 = vmatpush1.msra.mxu0 %v233_v42  ;;  %887 = vmatpush1.msra.mxu1 %v235_v43  ;;  %v1192_v41 = vld [vmem:[#allocation7 + $0x568] sm:$0xff]  ;;  %v1063_v42 = vld [vmem:[#allocation7 + $0x160] sm:$0xff] }
  0xba   :  { %642 = vmatmul.mubr.f32.gmra.mxu0 %v3646_v3  ;;  %755 = vmatmul.mubr.f32.gmra.mxu1 %v3646_v3  ;;  %v1191_v43 = vld [vmem:[#allocation7 + $0x560] sm:$0xff] }
  0xbb   :  { %775 = vmatprep.subr.mxu0 %v222_v44  ;;  %888 = vmatprep.subr.mxu1 %v224_v45  ;;  %v1060_v44 = vld [vmem:[#allocation7 + $0x148] sm:$0xff] }
  0xbc   :  { %776 = vmatpush1.msra.mxu0 %v221_v46  ;;  %889 = vmatpush1.msra.mxu1 %v223_v48  ;;  %v1188_v45 = vld [vmem:[#allocation7 + $0x548] sm:$0xff]  ;;  %v1059_v46 = vld [vmem:[#allocation7 + $0x140] sm:$0xff] }
  0xbd   :  { %777 = vmatprep.subr.mxu0 %v210_v49  ;;  %890 = vmatprep.subr.mxu1 %v212_v50  ;;  %v1187_v48 = vld [vmem:[#allocation7 + $0x540] sm:$0xff]  ;;  %v1056_v49 = vld [vmem:[#allocation7 + $0x128] sm:$0xff] }
  0xbe   :  { %778 = vmatpush1.msra.mxu0 %v209_v51  ;;  %891 = vmatpush1.msra.mxu1 %v211_v52  ;;  %v1184_v50 = vld [vmem:[#allocation7 + $0x528] sm:$0xff]  ;;  %v1055_v51 = vld [vmem:[#allocation7 + $0x120] sm:$0xff] }
  0xbf   :  { %779 = vmatprep.subr.mxu0 %v198_v53  ;;  %892 = vmatprep.subr.mxu1 %v200_v54  ;;  %v1183_v52 = vld [vmem:[#allocation7 + $0x520] sm:$0xff]  ;;  %v1052_v53 = vld [vmem:[#allocation7 + $0x108] sm:$0xff] }
  0xc0   :  { %780 = vmatpush1.msra.mxu0 %v197_v55  ;;  %893 = vmatpush1.msra.mxu1 %v199_v57  ;;  %v1180_v54 = vld [vmem:[#allocation7 + $0x508] sm:$0xff]  ;;  %v1051_v55 = vld [vmem:[#allocation7 + $0x100] sm:$0xff] }
  0xc1   :  { %781 = vmatprep.subr.mxu0 %v186_v58  ;;  %894 = vmatprep.subr.mxu1 %v188_v59  ;;  %v1179_v57 = vld [vmem:[#allocation7 + $0x500] sm:$0xff]  ;;  %v1048_v58 = vld [vmem:[#allocation7 + $0xe8] sm:$0xff] }
  0xc2   :  { %782 = vmatpush1.msra.mxu0 %v185_v60  ;;  %895 = vmatpush1.msra.mxu1 %v187_v61  ;;  %v1176_v59 = vld [vmem:[#allocation7 + $0x4e8] sm:$0xff]  ;;  %v1047_v60 = vld [vmem:[#allocation7 + $0xe0] sm:$0xff] }
  0xc3   :  { %783 = vmatprep.subr.mxu0 %v174_v62  ;;  %896 = vmatprep.subr.mxu1 %v176_v63  ;;  %v1175_v61 = vld [vmem:[#allocation7 + $0x4e0] sm:$0xff]  ;;  %v1044_v62 = vld [vmem:[#allocation7 + $0xc8] sm:$0xff] }
  0xc4   :  { %784 = vmatpush1.msra.mxu0 %v173_v1  ;;  %897 = vmatpush1.msra.mxu1 %v175_v4  ;;  %v1172_v63 = vld [vmem:[#allocation7 + $0x4c8] sm:$0xff]  ;;  %v1043_v1 = vld [vmem:[#allocation7 + $0xc0] sm:$0xff] }
  0xc5   :  { %785 = vmatprep.subr.mxu0 %v162_v5  ;;  %898 = vmatprep.subr.mxu1 %v164_v6  ;;  %v1171_v4 = vld [vmem:[#allocation7 + $0x4c0] sm:$0xff]  ;;  %v1040_v5 = vld [vmem:[#allocation7 + $0xa8] sm:$0xff] }
  0xc6   :  { %786 = vmatpush1.msra.mxu0 %v161_v7  ;;  %899 = vmatpush1.msra.mxu1 %v163_v8  ;;  %v1168_v6 = vld [vmem:[#allocation7 + $0x4a8] sm:$0xff]  ;;  %v1039_v7 = vld [vmem:[#allocation7 + $0xa0] sm:$0xff] }
  0xc7   :  { %787 = vmatprep.subr.mxu0 %v150_v9  ;;  %900 = vmatprep.subr.mxu1 %v152_v10  ;;  %v1167_v8 = vld [vmem:[#allocation7 + $0x4a0] sm:$0xff]  ;;  %v1036_v9 = vld [vmem:[#allocation7 + $0x88] sm:$0xff] }
  0xc8   :  { %788 = vmatpush1.msra.mxu0 %v149_v12  ;;  %901 = vmatpush1.msra.mxu1 %v151_v13  ;;  %v1164_v10 = vld [vmem:[#allocation7 + $0x488] sm:$0xff]  ;;  %v1035_v12 = vld [vmem:[#allocation7 + $0x80] sm:$0xff] }
  0xc9   :  { %789 = vmatprep.subr.mxu0 %v138_v14  ;;  %902 = vmatprep.subr.mxu1 %v140_v15  ;;  %v1163_v13 = vld [vmem:[#allocation7 + $0x480] sm:$0xff]  ;;  %v1032_v14 = vld [vmem:[#allocation7 + $0x68] sm:$0xff] }
  0xca   :  { %790 = vmatpush1.msra.mxu0 %v137_v16  ;;  %903 = vmatpush1.msra.mxu1 %v139_v17  ;;  %v1160_v15 = vld [vmem:[#allocation7 + $0x468] sm:$0xff]  ;;  %v1031_v16 = vld [vmem:[#allocation7 + $0x60] sm:$0xff] }
  0xcb   :  { %791 = vmatprep.subr.mxu0 %v126_v18  ;;  %904 = vmatprep.subr.mxu1 %v128_v19  ;;  %v1159_v17 = vld [vmem:[#allocation7 + $0x460] sm:$0xff]  ;;  %v1028_v18 = vld [vmem:[#allocation7 + $0x48] sm:$0xff] }
  0xcc   :  { %792 = vmatpush1.msra.mxu0 %v125_v21  ;;  %825 = vmatprep.mubr.f32.mxu0 %v3532_v0  ;;  %v1156_v19 = vld [vmem:[#allocation7 + $0x448] sm:$0xff]  ;;  %v1027_v21 = vld [vmem:[#allocation7 + $0x40] sm:$0xff] }
  0xcd   :  { %905 = vmatpush1.msra.mxu1 %v127_v22  ;;  %938 = vmatprep.mubr.f32.mxu1 %v3532_v0  ;;  %v1155_v22 = vld [vmem:[#allocation7 + $0x440] sm:$0xff] }
  0xce   :  { %826 = vmatmul.mubr.f32.vlgmr.msra.gmra.mxu0 %v3606_v2  ;;  %939 = vmatmul.mubr.f32.vlgmr.msra.gmra.mxu1 %v3606_v2  ;;  %v1067_v2 = vld [vmem:[#allocation7 + $0x180] sm:$0xff] }
  0xcf   :  { %1275 = vmatprep.subr.mxu0 %v1080_v23  ;;  %1388 = vmatprep.subr.mxu1 %v1208_v24  ;;  %v1024_v23 = vld [vmem:[#allocation7 + $0x28] sm:$0xff] }
  0xd0   :  { %1276 = vmatpush1.msra.mxu0 %v1079_v25  ;;  %1389 = vmatpush1.msra.mxu1 %v1207_v26  ;;  %v1152_v24 = vld [vmem:[#allocation7 + $0x428] sm:$0xff]  ;;  %v1023_v25 = vld [vmem:[#allocation7 + $0x20] sm:$0xff] }
  0xd1   :  { %1277 = vmatprep.subr.mxu0 %v1076_v27  ;;  %1390 = vmatprep.subr.mxu1 %v1204_v28  ;;  %v1151_v26 = vld [vmem:[#allocation7 + $0x420] sm:$0xff]  ;;  %v1020_v27 = vld [vmem:[#allocation7 + $0x8] sm:$0xff] }
  0xd2   :  { %1278 = vmatpush1.msra.mxu0 %v1075_v30  ;;  %1391 = vmatpush1.msra.mxu1 %v1203_v31  ;;  %v1148_v28 = vld [vmem:[#allocation7 + $0x408] sm:$0xff]  ;;  %v1019_v30 = vld [vmem:[#allocation7] sm:$0xff] }
  0xd3   :  { %1279 = vmatprep.subr.mxu0 %v1072_v32  ;;  %1392 = vmatprep.subr.mxu1 %v1200_v33  ;;  %v1147_v31 = vld [vmem:[#allocation7 + $0x400] sm:$0xff]  ;;  %v1144_v32 = vld [vmem:[#allocation7 + $0x3e8] sm:$0xff] }
  0xd4   :  { %1280 = vmatpush1.msra.mxu0 %v1071_v34  ;;  %1393 = vmatpush1.msra.mxu1 %v1199_v35  ;;  %v1272_v33 = vld [vmem:[#allocation7 + $0x7e8] sm:$0xff]  ;;  %v1143_v34 = vld [vmem:[#allocation7 + $0x3e0] sm:$0xff] }
  0xd5   :  { %1281 = vmatprep.subr.mxu0 %v1068_v36  ;;  %1394 = vmatprep.subr.mxu1 %v1196_v37  ;;  %v1271_v35 = vld [vmem:[#allocation7 + $0x7e0] sm:$0xff]  ;;  %v1140_v36 = vld [vmem:[#allocation7 + $0x3c8] sm:$0xff] }
  0xd6   :  { %1282 = vmatpush1.msra.mxu0 %v1067_v2  ;;  %1395 = vmatpush1.msra.mxu1 %v1195_v39  ;;  %v1268_v37 = vld [vmem:[#allocation7 + $0x7c8] sm:$0xff]  ;;  %v1139_v2 = vld [vmem:[#allocation7 + $0x3c0] sm:$0xff] }
  0xd7   :  { %1283 = vmatprep.subr.mxu0 %v1064_v40  ;;  %1396 = vmatprep.subr.mxu1 %v1192_v41  ;;  %v1267_v39 = vld [vmem:[#allocation7 + $0x7c0] sm:$0xff]  ;;  %v1136_v40 = vld [vmem:[#allocation7 + $0x3a8] sm:$0xff] }
  0xd8   :  { %1284 = vmatpush1.msra.mxu0 %v1063_v42  ;;  %1397 = vmatpush1.msra.mxu1 %v1191_v43  ;;  %v1264_v41 = vld [vmem:[#allocation7 + $0x7a8] sm:$0xff]  ;;  %v1135_v42 = vld [vmem:[#allocation7 + $0x3a0] sm:$0xff] }
  0xd9   :  { %1285 = vmatprep.subr.mxu0 %v1060_v44  ;;  %1398 = vmatprep.subr.mxu1 %v1188_v45  ;;  %v1263_v43 = vld [vmem:[#allocation7 + $0x7a0] sm:$0xff]  ;;  %v1132_v44 = vld [vmem:[#allocation7 + $0x388] sm:$0xff] }
  0xda   :  { %1286 = vmatpush1.msra.mxu0 %v1059_v46  ;;  %1399 = vmatpush1.msra.mxu1 %v1187_v48  ;;  %v1260_v45 = vld [vmem:[#allocation7 + $0x788] sm:$0xff]  ;;  %v1131_v46 = vld [vmem:[#allocation7 + $0x380] sm:$0xff] }
  0xdb   :  { %1287 = vmatprep.subr.mxu0 %v1056_v49  ;;  %1400 = vmatprep.subr.mxu1 %v1184_v50  ;;  %v1259_v48 = vld [vmem:[#allocation7 + $0x780] sm:$0xff]  ;;  %v1128_v49 = vld [vmem:[#allocation7 + $0x368] sm:$0xff] }
  0xdc   :  { %1288 = vmatpush1.msra.mxu0 %v1055_v51  ;;  %1401 = vmatpush1.msra.mxu1 %v1183_v52  ;;  %v1256_v50 = vld [vmem:[#allocation7 + $0x768] sm:$0xff]  ;;  %v1127_v51 = vld [vmem:[#allocation7 + $0x360] sm:$0xff] }
  0xdd   :  { %1289 = vmatprep.subr.mxu0 %v1052_v53  ;;  %1402 = vmatprep.subr.mxu1 %v1180_v54  ;;  %v1124_v52 = vld [vmem:[#allocation7 + $0x348] sm:$0xff]  ;;  %v1123_v54 = vld [vmem:[#allocation7 + $0x340] sm:$0xff] }
  0xde   :  { %1290 = vmatpush1.msra.mxu0 %v1051_v55  ;;  %1403 = vmatpush1.msra.mxu1 %v1179_v57  ;;  %v1252_v53 = vld [vmem:[#allocation7 + $0x748] sm:$0xff]  ;;  %v1251_v55 = vld [vmem:[#allocation7 + $0x740] sm:$0xff] }
  0xdf   :  { %1291 = vmatprep.subr.mxu0 %v1048_v58  ;;  %1404 = vmatprep.subr.mxu1 %v1176_v59  ;;  %v1120_v57 = vld [vmem:[#allocation7 + $0x328] sm:$0xff]  ;;  %v1119_v59 = vld [vmem:[#allocation7 + $0x320] sm:$0xff] }
  0xe0   :  { %1292 = vmatpush1.msra.mxu0 %v1047_v60  ;;  %1405 = vmatpush1.msra.mxu1 %v1175_v61  ;;  %v1248_v58 = vld [vmem:[#allocation7 + $0x728] sm:$0xff] }
  0xe1   :  { %1293 = vmatprep.subr.mxu0 %v1044_v62  ;;  %1406 = vmatprep.subr.mxu1 %v1172_v63  ;;  %v1116_v60 = vld [vmem:[#allocation7 + $0x308] sm:$0xff]  ;;  %v1115_v62 = vld [vmem:[#allocation7 + $0x300] sm:$0xff] }
  0xe2   :  { %1294 = vmatpush1.msra.mxu0 %v1043_v1  ;;  %1407 = vmatpush1.msra.mxu1 %v1171_v4  ;;  %v1244_v61 = vld [vmem:[#allocation7 + $0x708] sm:$0xff]  ;;  %v1243_v63 = vld [vmem:[#allocation7 + $0x700] sm:$0xff] }
  0xe3   :  { %1295 = vmatprep.subr.mxu0 %v1040_v5  ;;  %1408 = vmatprep.subr.mxu1 %v1168_v6  ;;  %v1112_v1 = vld [vmem:[#allocation7 + $0x2e8] sm:$0xff]  ;;  %v1111_v5 = vld [vmem:[#allocation7 + $0x2e0] sm:$0xff] }
  0xe4   :  { %1296 = vmatpush1.msra.mxu0 %v1039_v7  ;;  %1409 = vmatpush1.msra.mxu1 %v1167_v8  ;;  %v1240_v4 = vld [vmem:[#allocation7 + $0x6e8] sm:$0xff]  ;;  %v1107_v8 = vld [vmem:[#allocation7 + $0x2c0] sm:$0xff] }
  0xe5   :  { %1297 = vmatprep.subr.mxu0 %v1036_v9  ;;  %1410 = vmatprep.subr.mxu1 %v1164_v10  ;;  %v1108_v6 = vld [vmem:[#allocation7 + $0x2c8] sm:$0xff]  ;;  %v1235_v9 = vld [vmem:[#allocation7 + $0x6c0] sm:$0xff] }
  0xe6   :  { %1298 = vmatpush1.msra.mxu0 %v1035_v12  ;;  %1411 = vmatpush1.msra.mxu1 %v1163_v13  ;;  %v1236_v7 = vld [vmem:[#allocation7 + $0x6c8] sm:$0xff]  ;;  %v1103_v13 = vld [vmem:[#allocation7 + $0x2a0] sm:$0xff] }
  0xe7   :  { %1299 = vmatprep.subr.mxu0 %v1032_v14  ;;  %1412 = vmatprep.subr.mxu1 %v1160_v15  ;;  %v1104_v10 = vld [vmem:[#allocation7 + $0x2a8] sm:$0xff] }
  0xe8   :  { %1300 = vmatpush1.msra.mxu0 %v1031_v16  ;;  %1413 = vmatpush1.msra.mxu1 %v1159_v17  ;;  %v1232_v12 = vld [vmem:[#allocation7 + $0x6a8] sm:$0xff]  ;;  %v1099_v16 = vld [vmem:[#allocation7 + $0x280] sm:$0xff] }
  0xe9   :  { %1301 = vmatprep.subr.mxu0 %v1028_v18  ;;  %1414 = vmatprep.subr.mxu1 %v1156_v19  ;;  %v1100_v14 = vld [vmem:[#allocation7 + $0x288] sm:$0xff]  ;;  %v1227_v17 = vld [vmem:[#allocation7 + $0x680] sm:$0xff] }
  0xea   :  { %1302 = vmatpush1.msra.mxu0 %v1027_v21  ;;  %1415 = vmatpush1.msra.mxu1 %v1155_v22  ;;  %v1228_v15 = vld [vmem:[#allocation7 + $0x688] sm:$0xff]  ;;  %v1095_v21 = vld [vmem:[#allocation7 + $0x260] sm:$0xff] }
  0xeb   :  { %1303 = vmatprep.subr.mxu0 %v1024_v23  ;;  %1416 = vmatprep.subr.mxu1 %v1152_v24  ;;  %v1096_v18 = vld [vmem:[#allocation7 + $0x268] sm:$0xff]  ;;  %v1091_v24 = vld [vmem:[#allocation7 + $0x240] sm:$0xff] }
  0xec   :  { %1304 = vmatpush1.msra.mxu0 %v1023_v25  ;;  %1417 = vmatpush1.msra.mxu1 %v1151_v26  ;;  %v1224_v19 = vld [vmem:[#allocation7 + $0x668] sm:$0xff]  ;;  %v1219_v25 = vld [vmem:[#allocation7 + $0x640] sm:$0xff] }
  0xed   :  { %1305 = vmatprep.subr.mxu0 %v1020_v27  ;;  %1418 = vmatprep.subr.mxu1 %v1148_v28  ;;  %v1092_v22 = vld [vmem:[#allocation7 + $0x248] sm:$0xff]  ;;  %v1087_v28 = vld [vmem:[#allocation7 + $0x220] sm:$0xff] }
  0xee   :  { %1306 = vmatpush1.msra.mxu0 %v1019_v30  ;;  %1419 = vmatpush1.msra.mxu1 %v1147_v31  ;;  %v1220_v23 = vld [vmem:[#allocation7 + $0x648] sm:$0xff] }
  0xef   :  { %1307 = vmatprep.subr.mxu0 %v1144_v32  ;;  %1420 = vmatprep.subr.mxu1 %v1272_v33  ;;  %v1088_v26 = vld [vmem:[#allocation7 + $0x228] sm:$0xff]  ;;  %v1083_v32 = vld [vmem:[#allocation7 + $0x200] sm:$0xff] }
  0xf0   :  { %1308 = vmatpush2.msra.mxu0 %v1143_v34  ;;  %1421 = vmatpush2.msra.mxu1 %v1271_v35  ;;  %v1216_v27 = vld [vmem:[#allocation7 + $0x628] sm:$0xff]  ;;  %v1211_v33 = vld [vmem:[#allocation7 + $0x600] sm:$0xff]  ;;  %v1082_v34 = vld [vmem:[#allocation7 + $0x1f8] sm:$0xff] }
  0xf1   :  { %1309 = vmatprep.subr.mxu0 %v1140_v36  ;;  %1422 = vmatprep.subr.mxu1 %v1268_v37  ;;  %v1084_v30 = vld [vmem:[#allocation7 + $0x208] sm:$0xff] }
  0xf2   :  { %831 = vmatprep.mubr.f32.mxu0 %v3532_v0  ;;  %944 = vmatprep.mubr.f32.mxu1 %v3532_v0  ;;  %v1212_v31 = vld [vmem:[#allocation7 + $0x608] sm:$0xff] }
  0xf3   :  { %1310 = vmatpush2.msra.mxu0 %v1139_v2  ;;  %1423 = vmatpush2.msra.mxu1 %v1267_v39 }
  0xf4   :  { %832 = vmatmul.mubr.f32.gmra.mxu0 %v3610_v11  ;;  %945 = vmatmul.mubr.f32.gmra.mxu1 %v3610_v11  ;;  %v1255_v11 = vld [vmem:[#allocation7 + $0x760] sm:$0xff] }
  0xf5   :  { %1311 = vmatprep.subr.mxu0 %v1136_v40  ;;  %1424 = vmatprep.subr.mxu1 %v1264_v41 }
  0xf6   :  { %1312 = vmatpush2.msra.mxu0 %v1135_v42  ;;  %1425 = vmatpush2.msra.mxu1 %v1263_v43 }
  0xf7   :  { %1313 = vmatprep.subr.mxu0 %v1132_v44  ;;  %1426 = vmatprep.subr.mxu1 %v1260_v45 }
  0xf8   :  { %837 = vmatprep.mubr.f32.mxu0 %v3532_v0  ;;  %950 = vmatprep.mubr.f32.mxu1 %v3532_v0 }
  0xf9   :  { %1314 = vmatpush2.msra.mxu0 %v1131_v46  ;;  %1427 = vmatpush2.msra.mxu1 %v1259_v48 }
  0xfa   :  { %838 = vmatmul.mubr.f32.gmra.mxu0 %v3616_v20  ;;  %951 = vmatmul.mubr.f32.gmra.mxu1 %v3616_v20  ;;  %v1247_v20 = vld [vmem:[#allocation7 + $0x720] sm:$0xff] }
  0xfb   :  { %1315 = vmatprep.subr.mxu0 %v1128_v49  ;;  %1428 = vmatprep.subr.mxu1 %v1256_v50 }
  0xfc   :  { %1316 = vmatpush2.msra.mxu0 %v1127_v51  ;;  %1429 = vmatpush2.msra.mxu1 %v1255_v11 }
  0xfd   :  { %1317 = vmatprep.subr.mxu0 %v1124_v52  ;;  %1430 = vmatprep.subr.mxu1 %v1252_v53 }
  0xfe   :  { %843 = vmatprep.mubr.f32.mxu0 %v3532_v0  ;;  %956 = vmatprep.mubr.f32.mxu1 %v3532_v0 }
  0xff   :  { %1318 = vmatpush2.msra.mxu0 %v1123_v54  ;;  %1431 = vmatpush2.msra.mxu1 %v1251_v55 }
 0x100   :  { %844 = vmatmul.mubr.f32.gmra.mxu0 %v3622_v29  ;;  %957 = vmatmul.mubr.f32.gmra.mxu1 %v3622_v29  ;;  %v1239_v29 = vld [vmem:[#allocation7 + $0x6e0] sm:$0xff] }
 0x101   :  { %1319 = vmatprep.subr.mxu0 %v1120_v57  ;;  %1432 = vmatprep.subr.mxu1 %v1248_v58 }
 0x102   :  { %1320 = vmatpush2.msra.mxu0 %v1119_v59  ;;  %1433 = vmatpush2.msra.mxu1 %v1247_v20 }
 0x103   :  { %1321 = vmatprep.subr.mxu0 %v1116_v60  ;;  %1434 = vmatprep.subr.mxu1 %v1244_v61 }
 0x104   :  { %849 = vmatprep.mubr.f32.mxu0 %v3532_v0  ;;  %962 = vmatprep.mubr.f32.mxu1 %v3532_v0 }
 0x105   :  { %1322 = vmatpush2.msra.mxu0 %v1115_v62  ;;  %1435 = vmatpush2.msra.mxu1 %v1243_v63 }
 0x106   :  { %850 = vmatmul.mubr.f32.gmra.mxu0 %v3628_v38  ;;  %963 = vmatmul.mubr.f32.gmra.mxu1 %v3628_v38  ;;  %v1231_v38 = vld [vmem:[#allocation7 + $0x6a0] sm:$0xff] }
 0x107   :  { %1323 = vmatprep.subr.mxu0 %v1112_v1  ;;  %1436 = vmatprep.subr.mxu1 %v1240_v4 }
 0x108   :  { %1324 = vmatpush2.msra.mxu0 %v1111_v5  ;;  %1437 = vmatpush2.msra.mxu1 %v1239_v29 }
 0x109   :  { %1325 = vmatprep.subr.mxu0 %v1108_v6  ;;  %1438 = vmatprep.subr.mxu1 %v1236_v7 }
 0x10a   :  { %855 = vmatprep.mubr.f32.mxu0 %v3532_v0  ;;  %968 = vmatprep.mubr.f32.mxu1 %v3532_v0 }
 0x10b   :  { %1326 = vmatpush2.msra.mxu0 %v1107_v8  ;;  %1439 = vmatpush2.msra.mxu1 %v1235_v9 }
 0x10c   :  { %856 = vmatmul.mubr.f32.gmra.mxu0 %v3634_v47  ;;  %969 = vmatmul.mubr.f32.gmra.mxu1 %v3634_v47  ;;  %v1223_v47 = vld [vmem:[#allocation7 + $0x660] sm:$0xff] }
 0x10d   :  { %1327 = vmatprep.subr.mxu0 %v1104_v10  ;;  %1440 = vmatprep.subr.mxu1 %v1232_v12 }
 0x10e   :  { %1328 = vmatpush2.msra.mxu0 %v1103_v13  ;;  %1441 = vmatpush2.msra.mxu1 %v1231_v38 }
 0x10f   :  { %1329 = vmatprep.subr.mxu0 %v1100_v14  ;;  %1442 = vmatprep.subr.mxu1 %v1228_v15  ;;  %v1081_v14 = vld [vmem:[#allocation7 + $0x1f0] sm:$0xff] }
 0x110   :  { %861 = vmatprep.mubr.f32.mxu0 %v3532_v0  ;;  %974 = vmatprep.mubr.f32.mxu1 %v3532_v0  ;;  %v1209_v15 = vld [vmem:[#allocation7 + $0x5f0] sm:$0xff] }
 0x111   :  { %1330 = vmatpush2.msra.mxu0 %v1099_v16  ;;  %1443 = vmatpush2.msra.mxu1 %v1227_v17  ;;  %v1078_v16 = vld [vmem:[#allocation7 + $0x1d8] sm:$0xff] }
 0x112   :  { %862 = vmatmul.mubr.f32.gmra.mxu0 %v3640_v56  ;;  %975 = vmatmul.mubr.f32.gmra.mxu1 %v3640_v56  ;;  %v1215_v56 = vld [vmem:[#allocation7 + $0x620] sm:$0xff]  ;;  %v1206_v17 = vld [vmem:[#allocation7 + $0x5d8] sm:$0xff] }
 0x113   :  { %1331 = vmatprep.subr.mxu0 %v1096_v18  ;;  %1444 = vmatprep.subr.mxu1 %v1224_v19 }
 0x114   :  { %1332 = vmatpush2.msra.mxu0 %v1095_v21  ;;  %1445 = vmatpush2.msra.mxu1 %v1223_v47  ;;  %v1077_v21 = vld [vmem:[#allocation7 + $0x1d0] sm:$0xff] }
 0x115   :  { %1333 = vmatprep.subr.mxu0 %v1092_v22  ;;  %1446 = vmatprep.subr.mxu1 %v1220_v23  ;;  %v1205_v47 = vld [vmem:[#allocation7 + $0x5d0] sm:$0xff] }
 0x116   :  { %867 = vmatprep.mubr.f32.mxu0 %v3532_v0  ;;  %980 = vmatprep.mubr.f32.mxu1 %v3532_v0  ;;  %v1210_v0 = vld [vmem:[#allocation7 + $0x5f8] sm:$0xff] }
 0x117   :  { %1334 = vmatpush2.msra.mxu0 %v1091_v24  ;;  %1447 = vmatpush2.msra.mxu1 %v1219_v25 }
 0x118   :  { %868 = vmatmul.mubr.f32.gmra.mxu0 %v3646_v3  ;;  %981 = vmatmul.mubr.f32.gmra.mxu1 %v3646_v3 }
 0x119   :  { %1335 = vmatprep.subr.mxu0 %v1088_v26  ;;  %1448 = vmatprep.subr.mxu1 %v1216_v27  ;;  %v1074_v26 = vld [vmem:[#allocation7 + $0x1b8] sm:$0xff] }
 0x11a   :  { %1336 = vmatpush2.msra.mxu0 %v1087_v28  ;;  %1449 = vmatpush2.msra.mxu1 %v1215_v56  ;;  %v1202_v27 = vld [vmem:[#allocation7 + $0x5b8] sm:$0xff] }
 0x11b   :  { %1337 = vmatprep.subr.mxu0 %v1084_v30  ;;  %1450 = vmatprep.subr.mxu1 %v1212_v31 }
 0x11c   :  { %1338 = vmatpush2.msra.mxu0 %v1083_v32  ;;  %1451 = vmatpush2.msra.mxu1 %v1211_v33  ;;  %v1073_v32 = vld [vmem:[#allocation7 + $0x1b0] sm:$0xff] }
 0x11d   :  { %1501 = vmatprep.subr.mxu0 %v1082_v34  ;;  %1614 = vmatprep.subr.mxu1 %v1210_v0  ;;  %v1201_v33 = vld [vmem:[#allocation7 + $0x5b0] sm:$0xff]  ;;  %v1070_v34 = vld [vmem:[#allocation7 + $0x198] sm:$0xff] }
 0x11e   :  { %v1198_v0 = vld [vmem:[#allocation7 + $0x598] sm:$0xff] }
 0x12e   :  { %v375_v35 = vpop.f32.mrf.mxu0  ;;  %v488_v36 = vpop.f32.mrf.mxu1 }
 0x130   :  { %v377_v37 = vpop.f32.mrf.mxu0  ;;  %v490_v3 = vpop.f32.mrf.mxu1 }
 0x134   :  { %v381_v2 = vpop.f32.mrf.mxu0  ;;  %v494_v39 = vpop.f32.mrf.mxu1 }
 0x136   :  { %v383_v40 = vpop.f32.mrf.mxu0  ;;  %v496_v41 = vpop.f32.mrf.mxu1 }
 0x13a   :  { %v3716_v42 = vpop.f32.mrf.mxu0  ;;  %v3718_v43 = vpop.f32.mrf.mxu1 }
 0x13c   :  { %v3720_v44 = vpop.f32.mrf.mxu0  ;;  %v3722_v45 = vpop.f32.mrf.mxu1 }
 0x140   :  { %v3724_v46 = vpop.f32.mrf.mxu0  ;;  %v3726_v48 = vpop.f32.mrf.mxu1 }
 0x142   :  { %v3728_v49 = vpop.f32.mrf.mxu0  ;;  %v3730_v50 = vpop.f32.mrf.mxu1 }
 0x146   :  { %v3732_v51 = vpop.f32.mrf.mxu0  ;;  %v3734_v11 = vpop.f32.mrf.mxu1 }
 0x148   :  { %v3736_v52 = vpop.f32.mrf.mxu0  ;;  %v3738_v53 = vpop.f32.mrf.mxu1 }
 0x14c   :  { %v3740_v54 = vpop.f32.mrf.mxu0  ;;  %v3742_v55 = vpop.f32.mrf.mxu1 }
 0x14e   :  { %v3744_v57 = vpop.f32.mrf.mxu0  ;;  %v3746_v58 = vpop.f32.mrf.mxu1 }
 0x152   :  { %v3748_v59 = vpop.f32.mrf.mxu0  ;;  %v3750_v20 = vpop.f32.mrf.mxu1 }
 0x154   :  { %v3752_v60 = vpop.f32.mrf.mxu0  ;;  %v3754_v61 = vpop.f32.mrf.mxu1 }
 0x158   :  { %v3756_v62 = vpop.f32.mrf.mxu0  ;;  %v3758_v63 = vpop.f32.mrf.mxu1 }
 0x15a   :  { %v3760_v1 = vpop.f32.mrf.mxu0  ;;  %v3762_v4 = vpop.f32.mrf.mxu1 }
 0x15e   :  { %v601_v5 = vpop.f32.mrf.mxu0  ;;  %v714_v29 = vpop.f32.mrf.mxu1 }
 0x15f   :  { %v3768_v10 = vmul.f32 %v601_v5, %v375_v35  ;;  %v3770_v12 = vmul.f32 %v714_v29, %v488_v36 }
 0x160   :  { %v603_v6 = vpop.f32.mrf.mxu0  ;;  %v716_v7 = vpop.f32.mrf.mxu1 }
 0x161   :  { %v3764_v8 = vmul.f32 %v603_v6, %v377_v37  ;;  %v3766_v9 = vmul.f32 %v716_v7, %v490_v3  ;;  %v1065_v6 = vld [vmem:[#allocation7 + $0x170] sm:$0xff] }
 0x162   :  { %v607_v13 = vpop.f32.mrf.mxu0  ;;  %v720_v38 = vpop.f32.mrf.mxu1  ;;  %v1193_v7 = vld [vmem:[#allocation7 + $0x570] sm:$0xff] }
 0x163   :  { %1339 = vmatprep.mubr.f32.mxu0 %v3764_v8  ;;  %1452 = vmatprep.mubr.f32.mxu1 %v3766_v9  ;;  %v3780_v28 = vmul.f32 %v607_v13, %v381_v2  ;;  %v3782_v56 = vmul.f32 %v720_v38, %v494_v39  ;;  %v1069_v2 = vld [vmem:[#allocation7 + $0x190] sm:$0xff] }
 0x164   :  { %v609_v18 = vpop.f32.mrf.mxu0  ;;  %v722_v19 = vpop.f32.mrf.mxu1  ;;  %1340 = vmatmul.mubr.f32.vlgmr.msra.gmra.mxu0 %v3768_v10  ;;  %1453 = vmatmul.mubr.f32.vlgmr.msra.gmra.mxu1 %v3770_v12  ;;  %v1197_v39 = vld [vmem:[#allocation7 + $0x590] sm:$0xff] }
 0x165   :  { %v3776_v22 = vmul.f32 %v609_v18, %v383_v40  ;;  %v3778_v23 = vmul.f32 %v722_v19, %v496_v41  ;;  %1502 = vmatpush1.msra.mxu0 %v1081_v14  ;;  %1615 = vmatpush1.msra.mxu1 %v1209_v15  ;;  %v1066_v40 = vld [vmem:[#allocation7 + $0x178] sm:$0xff] }
 0x166   :  { %1503 = vmatprep.subr.mxu0 %v1078_v16  ;;  %1616 = vmatprep.subr.mxu1 %v1206_v17  ;;  %v613_v24 = vpop.f32.mrf.mxu0  ;;  %v726_v25 = vpop.f32.mrf.mxu1  ;;  %v1194_v41 = vld [vmem:[#allocation7 + $0x578] sm:$0xff]  ;;  %v1189_v17 = vld [vmem:[#allocation7 + $0x550] sm:$0xff] }
 0x167   :  { %1504 = vmatpush1.msra.mxu0 %v1077_v21  ;;  %1617 = vmatpush1.msra.mxu1 %v1205_v47  ;;  %v3798_v29 = vmul.f32 %v726_v25, %v3718_v43  ;;  %v1062_v14 = vld [vmem:[#allocation7 + $0x158] sm:$0xff]  ;;  %v1061_v43 = vld [vmem:[#allocation7 + $0x150] sm:$0xff] }
 0x168   :  { %1345 = vmatprep.mubr.f32.mxu0 %v3776_v22  ;;  %1458 = vmatprep.mubr.f32.mxu1 %v3778_v23  ;;  %v615_v30 = vpop.f32.mrf.mxu0  ;;  %v728_v31 = vpop.f32.mrf.mxu1  ;;  %v1190_v15 = vld [vmem:[#allocation7 + $0x558] sm:$0xff] }
 0x169   :  { %1505 = vmatprep.subr.mxu0 %v1074_v26  ;;  %1618 = vmatprep.subr.mxu1 %v1202_v27  ;;  %v3787_v35 = vmul.f32 %v615_v30, %v3720_v44  ;;  %v3790_v36 = vmul.f32 %v728_v31, %v3722_v45  ;;  %v3795_v45 = vmul.f32 %v613_v24, %v3716_v42  ;;  %v1058_v21 = vld [vmem:[#allocation7 + $0x138] sm:$0xff]  ;;  %v1057_v26 = vld [vmem:[#allocation7 + $0x130] sm:$0xff] }
 0x16a   :  { %1346 = vmatmul.mubr.f32.gmra.mxu0 %v3780_v28  ;;  %1459 = vmatmul.mubr.f32.gmra.mxu1 %v3782_v56  ;;  %v619_v37 = vpop.f32.mrf.mxu0  ;;  %v732_v3 = vpop.f32.mrf.mxu1  ;;  %v1186_v47 = vld [vmem:[#allocation7 + $0x538] sm:$0xff]  ;;  %v1185_v27 = vld [vmem:[#allocation7 + $0x530] sm:$0xff] }
 0x16b   :  { %1506 = vmatpush1.msra.mxu0 %v1073_v32  ;;  %1619 = vmatpush1.msra.mxu1 %v1201_v33  ;;  %v3814_v25 = vmul.f32 %v732_v3, %v3726_v48  ;;  %v1054_v30 = vld [vmem:[#allocation7 + $0x118] sm:$0xff]  ;;  %v1053_v48 = vld [vmem:[#allocation7 + $0x110] sm:$0xff] }
 0x16c   :  { %1507 = vmatprep.subr.mxu0 %v1070_v34  ;;  %1620 = vmatprep.subr.mxu1 %v1198_v0  ;;  %v621_v5 = vpop.f32.mrf.mxu0  ;;  %v734_v44 = vpop.f32.mrf.mxu1  ;;  %v1182_v31 = vld [vmem:[#allocation7 + $0x518] sm:$0xff]  ;;  %v1181_v0 = vld [vmem:[#allocation7 + $0x510] sm:$0xff] }
 0x16d   :  { %1508 = vmatpush1.msra.mxu0 %v1069_v2  ;;  %1621 = vmatpush1.msra.mxu1 %v1197_v39  ;;  %v3803_v16 = vmul.f32 %v621_v5, %v3728_v49  ;;  %v3806_v42 = vmul.f32 %v734_v44, %v3730_v50  ;;  %v3811_v50 = vmul.f32 %v619_v37, %v3724_v46  ;;  %v1050_v37 = vld [vmem:[#allocation7 + $0xf8] sm:$0xff] }
 0x16e   :  { %1351 = vmatprep.mubr.f32.mxu0 %v3787_v35  ;;  %1464 = vmatprep.mubr.f32.mxu1 %v3790_v36  ;;  %v625_v13 = vpop.f32.mrf.mxu0  ;;  %v738_v38 = vpop.f32.mrf.mxu1  ;;  %v1178_v3 = vld [vmem:[#allocation7 + $0x4f8] sm:$0xff] }
 0x16f   :  { %1509 = vmatprep.subr.mxu0 %v1066_v40  ;;  %1622 = vmatprep.subr.mxu1 %v1194_v41  ;;  %v3827_v39 = vmul.f32 %v625_v13, %v3732_v51  ;;  %v1049_v40 = vld [vmem:[#allocation7 + $0xf0] sm:$0xff]  ;;  %v1046_v5 = vld [vmem:[#allocation7 + $0xd8] sm:$0xff] }
 0x170   :  { %1352 = vmatmul.mubr.f32.gmra.mxu0 %v3795_v45  ;;  %1465 = vmatmul.mubr.f32.gmra.mxu1 %v3798_v29  ;;  %v627_v18 = vpop.f32.mrf.mxu0  ;;  %v740_v19 = vpop.f32.mrf.mxu1  ;;  %v1177_v41 = vld [vmem:[#allocation7 + $0x4f0] sm:$0xff]  ;;  %v1174_v44 = vld [vmem:[#allocation7 + $0x4d8] sm:$0xff] }
 0x171   :  { %1510 = vmatpush1.msra.mxu0 %v1065_v6  ;;  %1623 = vmatpush1.msra.mxu1 %v1193_v7  ;;  %v3819_v34 = vmul.f32 %v627_v18, %v3736_v52  ;;  %v3822_v46 = vmul.f32 %v740_v19, %v3738_v53  ;;  %v3830_v53 = vmul.f32 %v738_v38, %v3734_v11  ;;  %v1045_v51 = vld [vmem:[#allocation7 + $0xd0] sm:$0xff]  ;;  %v1038_v18 = vld [vmem:[#allocation7 + $0x98] sm:$0xff] }
 0x172   :  { %1511 = vmatprep.subr.mxu0 %v1062_v14  ;;  %1624 = vmatprep.subr.mxu1 %v1190_v15  ;;  %v631_v24 = vpop.f32.mrf.mxu0  ;;  %v744_v49 = vpop.f32.mrf.mxu1  ;;  %v1173_v11 = vld [vmem:[#allocation7 + $0x4d0] sm:$0xff]  ;;  %v1042_v14 = vld [vmem:[#allocation7 + $0xb8] sm:$0xff] }
 0x173   :  { %1512 = vmatpush1.msra.mxu0 %v1061_v43  ;;  %1625 = vmatpush1.msra.mxu1 %v1189_v17  ;;  %v1170_v15 = vld [vmem:[#allocation7 + $0x4b8] sm:$0xff]  ;;  %v1041_v43 = vld [vmem:[#allocation7 + $0xb0] sm:$0xff] }
 0x174   :  { %1357 = vmatprep.mubr.f32.mxu0 %v3803_v16  ;;  %1470 = vmatprep.mubr.f32.mxu1 %v3806_v42  ;;  %v633_v32 = vpop.f32.mrf.mxu0  ;;  %v746_v33 = vpop.f32.mrf.mxu1  ;;  %v1169_v17 = vld [vmem:[#allocation7 + $0x4b0] sm:$0xff]  ;;  %v1166_v19 = vld [vmem:[#allocation7 + $0x498] sm:$0xff] }
 0x175   :  { %1513 = vmatprep.subr.mxu0 %v1058_v21  ;;  %1626 = vmatprep.subr.mxu1 %v1186_v47  ;;  %v3835_v6 = vmul.f32 %v633_v32, %v3744_v57  ;;  %v3838_v7 = vmul.f32 %v746_v33, %v3746_v58  ;;  %v3843_v57 = vmul.f32 %v631_v24, %v3740_v54  ;;  %v1165_v24 = vld [vmem:[#allocation7 + $0x490] sm:$0xff] }
 0x176   :  { %1358 = vmatmul.mubr.f32.gmra.mxu0 %v3811_v50  ;;  %1471 = vmatmul.mubr.f32.gmra.mxu1 %v3814_v25  ;;  %v637_v2 = vpop.f32.mrf.mxu0  ;;  %v750_v52 = vpop.f32.mrf.mxu1  ;;  %v3846_v58 = vmul.f32 %v744_v49, %v3742_v55  ;;  %v1037_v55 = vld [vmem:[#allocation7 + $0x90] sm:$0xff]  ;;  %v1034_v49 = vld [vmem:[#allocation7 + $0x78] sm:$0xff] }
 0x177   :  { %1514 = vmatpush1.msra.mxu0 %v1057_v26  ;;  %1627 = vmatpush1.msra.mxu1 %v1185_v27  ;;  %v1162_v27 = vld [vmem:[#allocation7 + $0x478] sm:$0xff]  ;;  %v1033_v32 = vld [vmem:[#allocation7 + $0x70] sm:$0xff] }
 0x178   :  { %1515 = vmatprep.subr.mxu0 %v1054_v30  ;;  %1628 = vmatprep.subr.mxu1 %v1182_v31  ;;  %v639_v13 = vpop.f32.mrf.mxu0  ;;  %v752_v38 = vpop.f32.mrf.mxu1  ;;  %v3859_v31 = vmul.f32 %v637_v2, %v3748_v59  ;;  %v1161_v33 = vld [vmem:[#allocation7 + $0x470] sm:$0xff]  ;;  %v1026_v2 = vld [vmem:[#allocation7 + $0x38] sm:$0xff] }
 0x179   :  { %1516 = vmatpush1.msra.mxu0 %v1053_v48  ;;  %1629 = vmatpush1.msra.mxu1 %v1181_v0  ;;  %v3851_v26 = vmul.f32 %v639_v13, %v3752_v60  ;;  %v3854_v54 = vmul.f32 %v752_v38, %v3754_v61  ;;  %v3862_v61 = vmul.f32 %v750_v52, %v3750_v20  ;;  %v1030_v48 = vld [vmem:[#allocation7 + $0x58] sm:$0xff]  ;;  %v1029_v59 = vld [vmem:[#allocation7 + $0x50] sm:$0xff] }
 0x17a   :  { %1363 = vmatprep.mubr.f32.mxu0 %v3819_v34  ;;  %1476 = vmatprep.mubr.f32.mxu1 %v3822_v46  ;;  %v643_v21 = vpop.f32.mrf.mxu0  ;;  %v756_v47 = vpop.f32.mrf.mxu1  ;;  %v1158_v0 = vld [vmem:[#allocation7 + $0x458] sm:$0xff]  ;;  %v1157_v20 = vld [vmem:[#allocation7 + $0x450] sm:$0xff] }
 0x17b   :  { %1517 = vmatprep.subr.mxu0 %v1050_v37  ;;  %1630 = vmatprep.subr.mxu1 %v1178_v3  ;;  %v1154_v52 = vld [vmem:[#allocation7 + $0x438] sm:$0xff]  ;;  %v1145_v13 = vld [vmem:[#allocation7 + $0x3f0] sm:$0xff] }
 0x17c   :  { %1364 = vmatmul.mubr.f32.gmra.mxu0 %v3827_v39  ;;  %1477 = vmatmul.mubr.f32.gmra.mxu1 %v3830_v53  ;;  %v645_v30 = vpop.f32.mrf.mxu0  ;;  %v758_v60 = vpop.f32.mrf.mxu1  ;;  %v1273_v38 = vld [vmem:[#allocation7 + $0x7f0] sm:$0xff] }
 0x17d   :  { %1518 = vmatpush1.msra.mxu0 %v1049_v40  ;;  %1631 = vmatpush1.msra.mxu1 %v1177_v41  ;;  %v3867_v37 = vmul.f32 %v645_v30, %v3760_v1  ;;  %v3870_v3 = vmul.f32 %v758_v60, %v3762_v4  ;;  %v3875_v1 = vmul.f32 %v643_v21, %v3756_v62  ;;  %v1025_v40 = vld [vmem:[#allocation7 + $0x30] sm:$0xff] }
 0x17e   :  { %1519 = vmatprep.subr.mxu0 %v1046_v5  ;;  %1632 = vmatprep.subr.mxu1 %v1174_v44  ;;  %v3878_v4 = vmul.f32 %v756_v47, %v3758_v63  ;;  %v1153_v41 = vld [vmem:[#allocation7 + $0x430] sm:$0xff]  ;;  %v1022_v5 = vld [vmem:[#allocation7 + $0x18] sm:$0xff] }
 0x17f   :  { %1520 = vmatpush1.msra.mxu0 %v1045_v51  ;;  %1633 = vmatpush1.msra.mxu1 %v1173_v11  ;;  %v1150_v44 = vld [vmem:[#allocation7 + $0x418] sm:$0xff]  ;;  %v1021_v62 = vld [vmem:[#allocation7 + $0x10] sm:$0xff] }
 0x180   :  { %1369 = vmatprep.mubr.f32.mxu0 %v3835_v6  ;;  %1482 = vmatprep.mubr.f32.mxu1 %v3838_v7  ;;  %v1149_v51 = vld [vmem:[#allocation7 + $0x410] sm:$0xff]  ;;  %v1146_v63 = vld [vmem:[#allocation7 + $0x3f8] sm:$0xff] }
 0x181   :  { %1521 = vmatprep.subr.mxu0 %v1042_v14  ;;  %1634 = vmatprep.subr.mxu1 %v1170_v15  ;;  %v1274_v11 = vld [vmem:[#allocation7 + $0x7f8] sm:$0xff]  ;;  %v1265_v21 = vld [vmem:[#allocation7 + $0x7b0] sm:$0xff] }
 0x182   :  { %1370 = vmatmul.mubr.f32.gmra.mxu0 %v3843_v57  ;;  %1483 = vmatmul.mubr.f32.gmra.mxu1 %v3846_v58  ;;  %v1142_v14 = vld [vmem:[#allocation7 + $0x3d8] sm:$0xff]  ;;  %v1129_v30 = vld [vmem:[#allocation7 + $0x370] sm:$0xff] }
 0x183   :  { %1522 = vmatpush1.msra.mxu0 %v1041_v43  ;;  %1635 = vmatpush1.msra.mxu1 %v1169_v17  ;;  %v1270_v15 = vld [vmem:[#allocation7 + $0x7d8] sm:$0xff]  ;;  %v1141_v43 = vld [vmem:[#allocation7 + $0x3d0] sm:$0xff] }
 0x184   :  { %1523 = vmatprep.subr.mxu0 %v1038_v18  ;;  %1636 = vmatprep.subr.mxu1 %v1166_v19  ;;  %v1269_v17 = vld [vmem:[#allocation7 + $0x7d0] sm:$0xff]  ;;  %v1138_v18 = vld [vmem:[#allocation7 + $0x3b8] sm:$0xff] }
 0x185   :  { %1524 = vmatpush1.msra.mxu0 %v1037_v55  ;;  %1637 = vmatpush1.msra.mxu1 %v1165_v24  ;;  %v1266_v19 = vld [vmem:[#allocation7 + $0x7b8] sm:$0xff]  ;;  %v1133_v55 = vld [vmem:[#allocation7 + $0x390] sm:$0xff] }
 0x186   :  { %1375 = vmatprep.mubr.f32.mxu0 %v3851_v26  ;;  %1488 = vmatprep.mubr.f32.mxu1 %v3854_v54  ;;  %v1262_v47 = vld [vmem:[#allocation7 + $0x798] sm:$0xff]  ;;  %v1261_v24 = vld [vmem:[#allocation7 + $0x790] sm:$0xff] }
 0x187   :  { %1525 = vmatprep.subr.mxu0 %v1034_v49  ;;  %1638 = vmatprep.subr.mxu1 %v1162_v27  ;;  %v1130_v49 = vld [vmem:[#allocation7 + $0x378] sm:$0xff]  ;;  %v1257_v60 = vld [vmem:[#allocation7 + $0x770] sm:$0xff] }
 0x188   :  { %1376 = vmatmul.mubr.f32.gmra.mxu0 %v3859_v31  ;;  %1489 = vmatmul.mubr.f32.gmra.mxu1 %v3862_v61  ;;  %v1258_v27 = vld [vmem:[#allocation7 + $0x778] sm:$0xff] }
 0x189   :  { %1526 = vmatpush1.msra.mxu0 %v1033_v32  ;;  %1639 = vmatpush1.msra.mxu1 %v1161_v33  ;;  %v1126_v32 = vld [vmem:[#allocation7 + $0x358] sm:$0xff] }
 0x18a   :  { %1527 = vmatprep.subr.mxu0 %v1030_v48  ;;  %1640 = vmatprep.subr.mxu1 %v1158_v0  ;;  %v1254_v33 = vld [vmem:[#allocation7 + $0x758] sm:$0xff]  ;;  %v1125_v48 = vld [vmem:[#allocation7 + $0x350] sm:$0xff] }
 0x18b   :  { %1528 = vmatpush1.msra.mxu0 %v1029_v59  ;;  %1641 = vmatpush1.msra.mxu1 %v1157_v20  ;;  %v1253_v0 = vld [vmem:[#allocation7 + $0x750] sm:$0xff]  ;;  %v1122_v59 = vld [vmem:[#allocation7 + $0x338] sm:$0xff] }
 0x18c   :  { %1381 = vmatprep.mubr.f32.mxu0 %v3867_v37  ;;  %1494 = vmatprep.mubr.f32.mxu1 %v3870_v3  ;;  %v1250_v20 = vld [vmem:[#allocation7 + $0x738] sm:$0xff] }
 0x18d   :  { %1529 = vmatprep.subr.mxu0 %v1026_v2  ;;  %1642 = vmatprep.subr.mxu1 %v1154_v52  ;;  %v1121_v2 = vld [vmem:[#allocation7 + $0x330] sm:$0xff] }
 0x18e   :  { %1382 = vmatmul.mubr.f32.gmra.mxu0 %v3875_v1  ;;  %1495 = vmatmul.mubr.f32.gmra.mxu1 %v3878_v4  ;;  %v1249_v52 = vld [vmem:[#allocation7 + $0x730] sm:$0xff] }
 0x18f   :  { %1530 = vmatpush1.msra.mxu0 %v1025_v40  ;;  %1643 = vmatpush1.msra.mxu1 %v1153_v41  ;;  %v1118_v40 = vld [vmem:[#allocation7 + $0x318] sm:$0xff] }
 0x190   :  { %1531 = vmatprep.subr.mxu0 %v1022_v5  ;;  %1565 = vmatprep.mubr.f32.mxu0 %v3764_v8  ;;  %v1137_v8 = vld [vmem:[#allocation7 + $0x3b0] sm:$0xff]  ;;  %v1246_v41 = vld [vmem:[#allocation7 + $0x718] sm:$0xff] }
 0x191   :  { %1644 = vmatprep.subr.mxu1 %v1150_v44  ;;  %1678 = vmatprep.mubr.f32.mxu1 %v3766_v9  ;;  %v1134_v9 = vld [vmem:[#allocation7 + $0x398] sm:$0xff]  ;;  %v1117_v5 = vld [vmem:[#allocation7 + $0x310] sm:$0xff] }
 0x192   :  { %1532 = vmatpush1.msra.mxu0 %v1021_v62  ;;  %1645 = vmatpush1.msra.mxu1 %v1149_v51  ;;  %v1245_v44 = vld [vmem:[#allocation7 + $0x710] sm:$0xff]  ;;  %v1114_v62 = vld [vmem:[#allocation7 + $0x2f8] sm:$0xff] }
 0x193   :  { %1533 = vmatprep.subr.mxu0 %v1146_v63  ;;  %1646 = vmatprep.subr.mxu1 %v1274_v11  ;;  %v1242_v51 = vld [vmem:[#allocation7 + $0x6f8] sm:$0xff]  ;;  %v1113_v63 = vld [vmem:[#allocation7 + $0x2f0] sm:$0xff] }
 0x194   :  { %1534 = vmatpush2.msra.mxu0 %v1145_v13  ;;  %1647 = vmatpush2.msra.mxu1 %v1273_v38  ;;  %v1241_v11 = vld [vmem:[#allocation7 + $0x6f0] sm:$0xff]  ;;  %v1110_v13 = vld [vmem:[#allocation7 + $0x2d8] sm:$0xff] }
 0x195   :  { %1535 = vmatprep.subr.mxu0 %v1142_v14  ;;  %1648 = vmatprep.subr.mxu1 %v1270_v15  ;;  %v1238_v38 = vld [vmem:[#allocation7 + $0x6d8] sm:$0xff]  ;;  %v1109_v14 = vld [vmem:[#allocation7 + $0x2d0] sm:$0xff] }
 0x196   :  { %1536 = vmatpush2.msra.mxu0 %v1141_v43  ;;  %1649 = vmatpush2.msra.mxu1 %v1269_v17  ;;  %v1237_v15 = vld [vmem:[#allocation7 + $0x6d0] sm:$0xff]  ;;  %v1106_v43 = vld [vmem:[#allocation7 + $0x2b8] sm:$0xff] }
 0x197   :  { %1537 = vmatprep.subr.mxu0 %v1138_v18  ;;  %1650 = vmatprep.subr.mxu1 %v1266_v19  ;;  %v1234_v17 = vld [vmem:[#allocation7 + $0x6b8] sm:$0xff]  ;;  %v1105_v18 = vld [vmem:[#allocation7 + $0x2b0] sm:$0xff] }
 0x198   :  { %1538 = vmatpush2.msra.mxu0 %v1137_v8  ;;  %1651 = vmatpush2.msra.mxu1 %v1265_v21  ;;  %v1233_v19 = vld [vmem:[#allocation7 + $0x6b0] sm:$0xff]  ;;  %v1102_v8 = vld [vmem:[#allocation7 + $0x298] sm:$0xff] }
 0x199   :  { %1539 = vmatprep.subr.mxu0 %v1134_v9  ;;  %1652 = vmatprep.subr.mxu1 %v1262_v47  ;;  %v1230_v21 = vld [vmem:[#allocation7 + $0x698] sm:$0xff]  ;;  %v1101_v9 = vld [vmem:[#allocation7 + $0x290] sm:$0xff] }
 0x19a   :  { %1540 = vmatpush2.msra.mxu0 %v1133_v55  ;;  %1653 = vmatpush2.msra.mxu1 %v1261_v24  ;;  %v1229_v47 = vld [vmem:[#allocation7 + $0x690] sm:$0xff]  ;;  %v1098_v55 = vld [vmem:[#allocation7 + $0x278] sm:$0xff] }
 0x19b   :  { %1541 = vmatprep.subr.mxu0 %v1130_v49  ;;  %1654 = vmatprep.subr.mxu1 %v1258_v27  ;;  %v1226_v24 = vld [vmem:[#allocation7 + $0x678] sm:$0xff]  ;;  %v1097_v49 = vld [vmem:[#allocation7 + $0x270] sm:$0xff] }
 0x19c   :  { %1542 = vmatpush2.msra.mxu0 %v1129_v30  ;;  %1655 = vmatpush2.msra.mxu1 %v1257_v60  ;;  %v1225_v27 = vld [vmem:[#allocation7 + $0x670] sm:$0xff]  ;;  %v1094_v30 = vld [vmem:[#allocation7 + $0x258] sm:$0xff] }
 0x19d   :  { %1543 = vmatprep.subr.mxu0 %v1126_v32  ;;  %1656 = vmatprep.subr.mxu1 %v1254_v33  ;;  %v1222_v60 = vld [vmem:[#allocation7 + $0x658] sm:$0xff]  ;;  %v1093_v32 = vld [vmem:[#allocation7 + $0x250] sm:$0xff] }
 0x19e   :  { %1544 = vmatpush2.msra.mxu0 %v1125_v48  ;;  %1657 = vmatpush2.msra.mxu1 %v1253_v0  ;;  %v1221_v33 = vld [vmem:[#allocation7 + $0x650] sm:$0xff]  ;;  %v1090_v48 = vld [vmem:[#allocation7 + $0x238] sm:$0xff] }
 0x19f   :  { %1545 = vmatprep.subr.mxu0 %v1122_v59  ;;  %1658 = vmatprep.subr.mxu1 %v1250_v20  ;;  %v1218_v0 = vld [vmem:[#allocation7 + $0x638] sm:$0xff]  ;;  %v1089_v59 = vld [vmem:[#allocation7 + $0x230] sm:$0xff] }
 0x1a0   :  { %1546 = vmatpush2.msra.mxu0 %v1121_v2  ;;  %1659 = vmatpush2.msra.mxu1 %v1249_v52  ;;  %v1217_v20 = vld [vmem:[#allocation7 + $0x630] sm:$0xff]  ;;  %v1086_v2 = vld [vmem:[#allocation7 + $0x218] sm:$0xff] }
 0x1a1   :  { %1547 = vmatprep.subr.mxu0 %v1118_v40  ;;  %1660 = vmatprep.subr.mxu1 %v1246_v41  ;;  %v1214_v52 = vld [vmem:[#allocation7 + $0x618] sm:$0xff]  ;;  %v1085_v40 = vld [vmem:[#allocation7 + $0x210] sm:$0xff] }
 0x1a2   :  { %1548 = vmatpush2.msra.mxu0 %v1117_v5  ;;  %1661 = vmatpush2.msra.mxu1 %v1245_v44  ;;  %v1213_v41 = vld [vmem:[#allocation7 + $0x610] sm:$0xff]  ;;  %v1974_v5 = vld [vmem:[#allocation8 + $0x38] sm:$0xff] }
 0x1a3   :  { %1549 = vmatprep.subr.mxu0 %v1114_v62  ;;  %1662 = vmatprep.subr.mxu1 %v1242_v51  ;;  %v1973_v44 = vld [vmem:[#allocation8 + $0x30] sm:$0xff] }
 0x1a4   :  { %1550 = vmatpush2.msra.mxu0 %v1113_v63  ;;  %1663 = vmatpush2.msra.mxu1 %v1241_v11  ;;  %v1972_v63 = vld [vmem:[#allocation8 + $0x28] sm:$0xff]  ;;  %v1971_v11 = vld [vmem:[#allocation8 + $0x20] sm:$0xff] }
 0x1a5   :  { %1551 = vmatprep.subr.mxu0 %v1110_v13  ;;  %1664 = vmatprep.subr.mxu1 %v1238_v38 }
 0x1a6   :  { %1552 = vmatpush2.msra.mxu0 %v1109_v14  ;;  %1665 = vmatpush2.msra.mxu1 %v1237_v15  ;;  %v1970_v14 = vld [vmem:[#allocation8 + $0x18] sm:$0xff]  ;;  %v1969_v15 = vld [vmem:[#allocation8 + $0x10] sm:$0xff] }
 0x1a7   :  { %1553 = vmatprep.subr.mxu0 %v1106_v43  ;;  %1666 = vmatprep.subr.mxu1 %v1234_v17 }
 0x1a8   :  { %1554 = vmatpush2.msra.mxu0 %v1105_v18  ;;  %1667 = vmatpush2.msra.mxu1 %v1233_v19  ;;  %v1968_v18 = vld [vmem:[#allocation8 + $0x8] sm:$0xff] }
 0x1a9   :  { %1555 = vmatprep.subr.mxu0 %v1102_v8  ;;  %1668 = vmatprep.subr.mxu1 %v1230_v21 }
 0x1aa   :  { %1556 = vmatpush2.msra.mxu0 %v1101_v9  ;;  %1669 = vmatpush2.msra.mxu1 %v1229_v47 }
 0x1ab   :  { %1557 = vmatprep.subr.mxu0 %v1098_v55  ;;  %1670 = vmatprep.subr.mxu1 %v1226_v24  ;;  %v1967_v24 = vld [vmem:[#allocation8] sm:$0xff] }
 0x1ac   :  { %1558 = vmatpush2.msra.mxu0 %v1097_v49  ;;  %1671 = vmatpush2.msra.mxu1 %v1225_v27 }
 0x1ad   :  { %1559 = vmatprep.subr.mxu0 %v1094_v30  ;;  %1672 = vmatprep.subr.mxu1 %v1222_v60 }
 0x1ae   :  { %1560 = vmatpush2.msra.mxu0 %v1093_v32  ;;  %1673 = vmatpush2.msra.mxu1 %v1221_v33 }
 0x1af   :  { %1561 = vmatprep.subr.mxu0 %v1090_v48  ;;  %1674 = vmatprep.subr.mxu1 %v1218_v0 }
 0x1b0   :  { %1562 = vmatpush2.msra.mxu0 %v1089_v59  ;;  %1675 = vmatpush2.msra.mxu1 %v1217_v20 }
 0x1b1   :  { %1563 = vmatprep.subr.mxu0 %v1086_v2  ;;  %1676 = vmatprep.subr.mxu1 %v1214_v52  ;;  %v4004_v2 = vld [vmem:[#allocation10 + $0x78] sm:$0xff]  ;;  %v4006_v52 = vld [vmem:[#allocation10 + $0x70] sm:$0xff] }
 0x1b2   :  { %1564 = vmatpush2.msra.mxu0 %v1085_v40  ;;  %1677 = vmatpush2.msra.mxu1 %v1213_v41  ;;  %4548 = vst [vmem:[#allocation32_spill] sm:$0xff] %v4004_v2  ;;  %4549 = vst [vmem:[#allocation33_spill] sm:$0xff] %v4006_v52  ;;  %v4011_v40 = vld [vmem:[#allocation10 + $0x68] sm:$0xff] }
 0x1b3   :  { %1566 = vmatmul.mubr.f32.vlgmr.msra.gmra.mxu0 %v3768_v10  ;;  %1679 = vmatmul.mubr.f32.vlgmr.msra.gmra.mxu1 %v3770_v12  ;;  %v3916_v10 = vpop.f32.mrf.mxu0  ;;  %v3918_v12 = vpop.f32.mrf.mxu1  ;;  %4550 = vst [vmem:[#allocation34_spill] sm:$0xff] %v4011_v40 }
 0x1b4   :  { %1571 = vmatprep.mubr.f32.mxu0 %v3776_v22  ;;  %1684 = vmatprep.mubr.f32.mxu1 %v3778_v23 }
 0x1b5   :  { %v3920_v22 = vpop.f32.mrf.mxu0  ;;  %v3922_v23 = vpop.f32.mrf.mxu1  ;;  %3003 = vmatprep.subr.mxu1 %v4004_v2 }
 0x1b6   :  { %3004 = vmatpush3.msra.mxu1 %v4004_v2 }
 0x1b7   :  { %1572 = vmatmul.mubr.f32.gmra.mxu0 %v3780_v28  ;;  %1685 = vmatmul.mubr.f32.gmra.mxu1 %v3782_v56  ;;  %v3924_v28 = vpop.f32.mrf.mxu0  ;;  %v3926_v56 = vpop.f32.mrf.mxu1 }
 0x1b8   :  { %1577 = vmatprep.mubr.f32.mxu0 %v3787_v35  ;;  %1690 = vmatprep.mubr.f32.mxu1 %v3790_v36 }
 0x1b9   :  { %v3928_v35 = vpop.f32.mrf.mxu0  ;;  %v3930_v36 = vpop.f32.mrf.mxu1  ;;  %3005 = vmatprep.subr.mxu1 %v4006_v52 }
 0x1ba   :  { %3006 = vmatpush3.msra.mxu1 %v4006_v52 }
 0x1bb   :  { %1578 = vmatmul.mubr.f32.gmra.mxu0 %v3795_v45  ;;  %1691 = vmatmul.mubr.f32.gmra.mxu1 %v3798_v29  ;;  %v3932_v45 = vpop.f32.mrf.mxu0  ;;  %v3934_v29 = vpop.f32.mrf.mxu1 }
 0x1bc   :  { %1583 = vmatprep.mubr.f32.mxu0 %v3803_v16  ;;  %1696 = vmatprep.mubr.f32.mxu1 %v3806_v42 }
 0x1bd   :  { %v3936_v16 = vpop.f32.mrf.mxu0  ;;  %v3938_v42 = vpop.f32.mrf.mxu1  ;;  %3007 = vmatprep.subr.mxu1 %v4011_v40 }
 0x1be   :  { %3008 = vmatpush3.msra.mxu1 %v4011_v40 }
 0x1bf   :  { %1584 = vmatmul.mubr.f32.gmra.mxu0 %v3811_v50  ;;  %1697 = vmatmul.mubr.f32.gmra.mxu1 %v3814_v25 }
 0x1c0   :  { %1589 = vmatprep.mubr.f32.mxu0 %v3819_v34  ;;  %1702 = vmatprep.mubr.f32.mxu1 %v3822_v46  ;;  %v3940_v50 = vpop.f32.mrf.mxu0  ;;  %v3942_v25 = vpop.f32.mrf.mxu1  ;;  %v1982_v34 = vld [vmem:[#allocation8 + $0x78] sm:$0xff] }
 0x1c1   :  { %2959 = vmatprep.subr.mxu0 %v1982_v34 }
 0x1c2   :  { %2960 = vmatpush3.msra.mxu0 %v1982_v34  ;;  %v3944_v46 = vpop.f32.mrf.mxu0 }
 0x1c3   :  { %1590 = vmatmul.mubr.f32.gmra.mxu0 %v3827_v39  ;;  %1703 = vmatmul.mubr.f32.gmra.mxu1 %v3830_v53  ;;  %v3946_v39 = vpop.f32.mrf.mxu1  ;;  %v1981_v53 = vld [vmem:[#allocation8 + $0x70] sm:$0xff] }
 0x1c4   :  { %1595 = vmatprep.mubr.f32.mxu0 %v3835_v6  ;;  %1708 = vmatprep.mubr.f32.mxu1 %v3838_v7  ;;  %4535 = vst [vmem:[#allocation19_spill] sm:$0xff] %v3946_v39  ;;  %v1980_v6 = vld [vmem:[#allocation8 + $0x68] sm:$0xff] }
 0x1c5   :  { %2961 = vmatprep.subr.mxu0 %v1981_v53 }
 0x1c6   :  { %2962 = vmatpush3.msra.mxu0 %v1981_v53  ;;  %v3948_v7 = vpop.f32.mrf.mxu0  ;;  %v4019_v53 = vld [vmem:[#allocation10 + $0x60] sm:$0xff] }
 0x1c7   :  { %1596 = vmatmul.mubr.f32.gmra.mxu0 %v3843_v57  ;;  %1709 = vmatmul.mubr.f32.gmra.mxu1 %v3846_v58  ;;  %v3950_v57 = vpop.f32.mrf.mxu1  ;;  %v1979_v58 = vld [vmem:[#allocation8 + $0x60] sm:$0xff]  ;;  %4551 = vst [vmem:[#allocation35_spill] sm:$0xff] %v4019_v53 }
 0x1c8   :  { %1601 = vmatprep.mubr.f32.mxu0 %v3851_v26  ;;  %1714 = vmatprep.mubr.f32.mxu1 %v3854_v54  ;;  %4536 = vst [vmem:[#allocation20_spill] sm:$0xff] %v3950_v57  ;;  %v1978_v26 = vld [vmem:[#allocation8 + $0x58] sm:$0xff]  ;;  %v3952_v54 = vpop.f32.mrf.mxu0 }
 0x1c9   :  { %2963 = vmatprep.subr.mxu0 %v1980_v6  ;;  %3009 = vmatprep.subr.mxu1 %v4019_v53 }
 0x1ca   :  { %2964 = vmatpush3.msra.mxu0 %v1980_v6  ;;  %v4023_v6 = vld [vmem:[#allocation10 + $0x58] sm:$0xff]  ;;  %3010 = vmatpush3.msra.mxu1 %v4019_v53 }
 0x1cb   :  { %1602 = vmatmul.mubr.f32.gmra.mxu0 %v3859_v31  ;;  %1715 = vmatmul.mubr.f32.gmra.mxu1 %v3862_v61  ;;  %v3954_v31 = vpop.f32.mrf.mxu1  ;;  %v1977_v61 = vld [vmem:[#allocation8 + $0x50] sm:$0xff]  ;;  %4552 = vst [vmem:[#allocation36_spill] sm:$0xff] %v4023_v6 }
 0x1cc   :  { %1607 = vmatprep.mubr.f32.mxu0 %v3867_v37  ;;  %1720 = vmatprep.mubr.f32.mxu1 %v3870_v3  ;;  %4537 = vst [vmem:[#allocation21_spill] sm:$0xff] %v3954_v31  ;;  %v1976_v37 = vld [vmem:[#allocation8 + $0x48] sm:$0xff]  ;;  %v3956_v3 = vpop.f32.mrf.mxu0 }
 0x1cd   :  { %2965 = vmatprep.subr.mxu0 %v1979_v58  ;;  %3011 = vmatprep.subr.mxu1 %v4023_v6 }
 0x1ce   :  { %2966 = vmatpush3.msra.mxu0 %v1979_v58  ;;  %v3960_v62 = vpop.f32.mrf.mxu0  ;;  %3012 = vmatpush3.msra.mxu1 %v4023_v6 }
 0x1cf   :  { %1608 = vmatmul.mubr.f32.gmra.mxu0 %v3875_v1  ;;  %1721 = vmatmul.mubr.f32.gmra.mxu1 %v3878_v4  ;;  %v3958_v1 = vpop.f32.mrf.mxu1  ;;  %v1975_v4 = vld [vmem:[#allocation8 + $0x40] sm:$0xff] }
 0x1d0   :  { %2967 = vmatprep.subr.mxu0 %v1978_v26  ;;  %4538 = vst [vmem:[#allocation22_spill] sm:$0xff] %v3958_v1 }
 0x1d1   :  { %2968 = vmatpush3.msra.mxu0 %v1978_v26  ;;  %v3962_v51 = vpop.f32.mrf.mxu1 }
 0x1d2   :  { %2969 = vmatprep.subr.mxu0 %v1977_v61  ;;  %4539 = vst [vmem:[#allocation23_spill] sm:$0xff] %v3962_v51  ;;  %v3964_v13 = vpop.f32.mrf.mxu0 }
 0x1d3   :  { %2970 = vmatpush3.msra.mxu0 %v1977_v61  ;;  %4540 = vst [vmem:[#allocation24_spill] sm:$0xff] %v3964_v13  ;;  %v3966_v38 = vpop.f32.mrf.mxu1  ;;  %v4027_v61 = vld [vmem:[#allocation10 + $0x50] sm:$0xff] }
 0x1d4   :  { %2971 = vmatprep.subr.mxu0 %v1976_v37  ;;  %4541 = vst [vmem:[#allocation25_spill] sm:$0xff] %v3966_v38  ;;  %v3968_v43 = vpop.f32.mrf.mxu0  ;;  %4553 = vst [vmem:[#allocation37_spill] sm:$0xff] %v4027_v61  ;;  %3013 = vmatprep.subr.mxu1 %v4027_v61 }
 0x1d5   :  { %2972 = vmatpush3.msra.mxu0 %v1976_v37  ;;  %4542 = vst [vmem:[#allocation26_spill] sm:$0xff] %v3968_v43  ;;  %v3970_v17 = vpop.f32.mrf.mxu1  ;;  %v4031_v37 = vld [vmem:[#allocation10 + $0x48] sm:$0xff]  ;;  %3014 = vmatpush3.msra.mxu1 %v4027_v61 }
 0x1d6   :  { %2973 = vmatprep.subr.mxu0 %v1975_v4  ;;  %4543 = vst [vmem:[#allocation27_spill] sm:$0xff] %v3970_v17  ;;  %4554 = vst [vmem:[#allocation38_spill] sm:$0xff] %v4031_v37  ;;  %3015 = vmatprep.subr.mxu1 %v4031_v37 }
 0x1d7   :  { %2974 = vmatpush3.msra.mxu0 %v1975_v4  ;;  %3016 = vmatpush3.msra.mxu1 %v4031_v37 }
 0x1d8   :  { %2975 = vmatprep.subr.mxu0 %v1974_v5  ;;  %v3972_v19 = vpop.f32.mrf.mxu0  ;;  %v3974_v8 = vpop.f32.mrf.mxu1 }
 0x1d9   :  { %2976 = vmatpush3.msra.mxu0 %v1974_v5  ;;  %4544 = vst [vmem:[#allocation28_spill] sm:$0xff] %v3972_v19  ;;  %4545 = vst [vmem:[#allocation29_spill] sm:$0xff] %v3974_v8 }
 0x1da   :  { %2977 = vmatprep.subr.mxu0 %v1973_v44  ;;  %v3976_v21 = vpop.f32.mrf.mxu0  ;;  %v3978_v9 = vpop.f32.mrf.mxu1 }
 0x1db   :  { %2978 = vmatpush3.msra.mxu0 %v1973_v44  ;;  %4546 = vst [vmem:[#allocation30_spill] sm:$0xff] %v3976_v21  ;;  %4547 = vst [vmem:[#allocation31_spill] sm:$0xff] %v3978_v9  ;;  %v4035_v44 = vld [vmem:[#allocation10 + $0x40] sm:$0xff] }
 0x1dc   :  { %2979 = vmatprep.subr.mxu0 %v1972_v63  ;;  %4555 = vst [vmem:[#allocation39_spill] sm:$0xff] %v4035_v44  ;;  %3017 = vmatprep.subr.mxu1 %v4035_v44  ;;  %v4051_v9 = vld [vmem:[#allocation10 + $0x20] sm:$0xff] }
 0x1dd   :  { %2980 = vmatpush3.msra.mxu0 %v1972_v63  ;;  %v4039_v63 = vld [vmem:[#allocation10 + $0x38] sm:$0xff]  ;;  %3018 = vmatpush3.msra.mxu1 %v4035_v44  ;;  %4559 = vst [vmem:[#allocation43_spill] sm:$0xff] %v4051_v9 }
 0x1de   :  { %2981 = vmatprep.subr.mxu0 %v1971_v11  ;;  %4556 = vst [vmem:[#allocation40_spill] sm:$0xff] %v4039_v63  ;;  %3019 = vmatprep.subr.mxu1 %v4039_v63  ;;  %v4055_v44 = vld [vmem:[#allocation10 + $0x18] sm:$0xff] }
 0x1df   :  { %2982 = vmatpush3.msra.mxu0 %v1971_v11  ;;  %3020 = vmatpush3.msra.mxu1 %v4039_v63  ;;  %4560 = vst [vmem:[#allocation44_spill] sm:$0xff] %v4055_v44 }
 0x1e0   :  { %2983 = vmatprep.subr.mxu0 %v1970_v14 }
 0x1e1   :  { %2984 = vmatpush3.msra.mxu0 %v1970_v14 }
 0x1e2   :  { %2985 = vmatprep.subr.mxu0 %v1969_v15 }
 0x1e3   :  { %2986 = vmatpush3.msra.mxu0 %v1969_v15  ;;  %v4043_v15 = vld [vmem:[#allocation10 + $0x30] sm:$0xff] }
 0x1e4   :  { %2987 = vmatprep.subr.mxu0 %v1968_v18  ;;  %4557 = vst [vmem:[#allocation41_spill] sm:$0xff] %v4043_v15  ;;  %3021 = vmatprep.subr.mxu1 %v4043_v15 }
 0x1e5   :  { %2988 = vmatpush3.msra.mxu0 %v1968_v18  ;;  %v4047_v18 = vld [vmem:[#allocation10 + $0x28] sm:$0xff]  ;;  %3022 = vmatpush3.msra.mxu1 %v4043_v15 }
 0x1e6   :  { %2989 = vmatprep.subr.mxu0 %v1967_v24  ;;  %4558 = vst [vmem:[#allocation42_spill] sm:$0xff] %v4047_v18  ;;  %3023 = vmatprep.subr.mxu1 %v4047_v18 }
 0x1e7   :  { %2990 = vmatpush3.msra.mxu0 %v1967_v24  ;;  %3024 = vmatpush3.msra.mxu1 %v4047_v18 }
 0x1e8   :  { %3047 = vmatprep.subr.mxu0 %v4004_v2  ;;  %3025 = vmatprep.subr.mxu1 %v4051_v9 }
 0x1e9   :  { %3026 = vmatpush3.msra.mxu1 %v4051_v9 }
 0x1ea   :  { %3027 = vmatprep.subr.mxu1 %v4055_v44 }
 0x1eb   :  { %3028 = vmatpush3.msra.mxu1 %v4055_v44 }
 0x224   :  { %v3980_v47 = vpop.f32.mrf.mxu0  ;;  %v3982_v55 = vpop.f32.mrf.mxu1 }
 0x225   :  { %v1455_v9 = vadd.f32 %v3982_v55, %v3980_v47 }
 0x226   :  { %v3984_v49 = vpop.f32.mrf.mxu0  ;;  %v3986_v27 = vpop.f32.mrf.mxu1 }
 0x227   :  { %v1457_v18 = vadd.f32 %v3986_v27, %v3984_v49 }
 0x229   :  { %v1727_v2 = vmax.f32 %v1455_v9, %v1457_v18 }
 0x22a   :  { %v3988_v30 = vpop.f32.mrf.mxu0  ;;  %v3990_v60 = vpop.f32.mrf.mxu1 }
 0x22b   :  { %v1461_v39 = vadd.f32 %v3990_v60, %v3988_v30 }
 0x22c   :  { %v3992_v32 = vpop.f32.mrf.mxu0  ;;  %v3994_v33 = vpop.f32.mrf.mxu1 }
 0x22d   :  { %v1463_v21 = vadd.f32 %v3994_v33, %v3992_v32 }
 0x230   :  { %v3996_v48 = vpop.f32.mrf.mxu0  ;;  %v3998_v0 = vpop.f32.mrf.mxu1 }
 0x231   :  { %v4085_v55 = vadd.f32 %v3998_v0, %v3996_v48 }
 0x232   :  { %v4000_v59 = vpop.f32.mrf.mxu0  ;;  %v4002_v20 = vpop.f32.mrf.mxu1 }
 0x233   :  { %v4077_v1 = vadd.f32 %v4002_v20, %v4000_v59 }
 0x235   :  { %v1729_v30 = vmax.f32 %v4085_v55, %v4077_v1 }
 0x236   :  { %v4014_v41 = vpop.f32.mrf.mxu0  ;;  %v4016_v34 = vpop.f32.mrf.mxu1 }
 0x237   :  { %v4089_v32 = vadd.f32 %v4016_v34, %v4014_v41 }
 0x238   :  { %v1361_v58 = vpop.f32.mrf.mxu0  ;;  %v1474_v26 = vpop.f32.mrf.mxu1 }
 0x239   :  { %v4079_v31 = vadd.f32 %v1474_v26, %v1361_v58 }
 0x23b   :  { %v1730_v60 = vmax.f32 %v4089_v32, %v4079_v31 }
 0x23c   :  { %v1365_v4 = vpop.f32.mrf.mxu0  ;;  %v1478_v5 = vpop.f32.mrf.mxu1 }
 0x23e   :  { %v1367_v11 = vpop.f32.mrf.mxu0  ;;  %v1480_v14 = vpop.f32.mrf.mxu1 }
 0x23f   :  { %v4091_v33 = vadd.f32 %v1480_v14, %v1367_v11 }
 0x242   :  { %v1371_v24 = vpop.f32.mrf.mxu0  ;;  %v1484_v37 = vpop.f32.mrf.mxu1 }
 0x244   :  { %v1373_v61 = vpop.f32.mrf.mxu0  ;;  %v1486_v63 = vpop.f32.mrf.mxu1 }
 0x245   :  { %v4099_v48 = vadd.f32 %v1486_v63, %v1373_v61 }
 0x248   :  { %v1377_v6 = vpop.f32.mrf.mxu0  ;;  %v1490_v15 = vpop.f32.mrf.mxu1 }
 0x24a   :  { %v1379_v17 = vpop.f32.mrf.mxu0  ;;  %v1492_v8 = vpop.f32.mrf.mxu1 }
 0x24e   :  { %v4061_v53 = vpop.f32.mrf.mxu0  ;;  %v4063_v51 = vpop.f32.mrf.mxu1 }
 0x250   :  { %v4067_v40 = vpop.f32.mrf.mxu0  ;;  %v4069_v38 = vpop.f32.mrf.mxu1 }
 0x273   :  { %v1567_v52 = vpop.f32.mrf.mxu0  ;;  %v1680_v44 = vpop.f32.mrf.mxu1 }
 0x274   :  { %v1681_v19 = vadd.f32 %v1680_v44, %v1567_v52  ;;  %v1728_v52 = vmax.f32 %v1461_v39, %v1463_v21 }
 0x275   :  { %v1569_v49 = vpop.f32.mrf.mxu0  ;;  %v1682_v27 = vpop.f32.mrf.mxu1 }
 0x276   :  { %v1735_v43 = vmax.f32 %v1727_v2, %v1681_v19  ;;  %v1683_v47 = vadd.f32 %v1682_v27, %v1569_v49  ;;  %v4097_v2 = vadd.f32 %v1478_v5, %v1365_v4  ;;  %v4103_v49 = vadd.f32 %v1484_v37, %v1371_v24 }
 0x277   :  { %v1573_v59 = vpop.f32.mrf.mxu0  ;;  %v1686_v20 = vpop.f32.mrf.mxu1 }
 0x278   :  { %v1743_v58 = vmax.f32 %v1735_v43, %v1683_v47  ;;  %v1687_v26 = vadd.f32 %v1686_v20, %v1573_v59  ;;  %v1732_v63 = vmax.f32 %v4103_v49, %v4099_v48  ;;  %v4109_v43 = vadd.f32 %v1492_v8, %v1379_v17 }
 0x279   :  { %v1575_v0 = vpop.f32.mrf.mxu0  ;;  %v1688_v41 = vpop.f32.mrf.mxu1 }
 0x27a   :  { %v1751_v34 = vsub.f32 %v1455_v9, %v1743_v58  ;;  %v1775_v44 = vsub.f32 %v1457_v18, %v1743_v58  ;;  %v1799_v11 = vsub.f32 %v1681_v19, %v1743_v58  ;;  %v1823_v14 = vsub.f32 %v1683_v47, %v1743_v58 }
 0x27b   :  { %v1736_v27 = vmax.f32 %v1728_v52, %v1687_v26  ;;  %v1689_v59 = vadd.f32 %v1688_v41, %v1575_v0  ;;  %v1579_v20 = vpop.f32.mrf.mxu0  ;;  %v1692_v13 = vpop.f32.mrf.mxu1  ;;  %v4107_v9 = vadd.f32 %v1490_v15, %v1377_v6 }
 0x27c   :  { %v1759_v57 = vmul.f32 1.442695, %v1751_v34  ;;  %v1783_v4 = vmul.f32 1.442695, %v1775_v44  ;;  %v1807_v5 = vmul.f32 1.442695, %v1799_v11  ;;  %v1693_v61 = vadd.f32 %v1692_v13, %v1579_v20 }
 0x27d   :  { %v1831_v19 = vmul.f32 1.442695, %v1823_v14  ;;  %v1744_v18 = vmax.f32 %v1736_v27, %v1689_v59  ;;  %v1581_v47 = vpop.f32.mrf.mxu0  ;;  %v1694_v58 = vpop.f32.mrf.mxu1 }
 0x27e   :  { %3237 = vpow2.f32 %v1759_v57  ;;  %v1737_v37 = vmax.f32 %v1729_v30, %v1693_v61  ;;  %v1695_v24 = vadd.f32 %v1694_v58, %v1581_v47 }
 0x27f   :  { %3239 = vpow2.f32 %v1783_v4  ;;  %v1752_v52 = vsub.f32 %v1461_v39, %v1744_v18  ;;  %v1776_v0 = vsub.f32 %v1463_v21, %v1744_v18  ;;  %v1800_v41 = vsub.f32 %v1687_v26, %v1744_v18  ;;  %v1585_v34 = vpop.f32.mrf.mxu0  ;;  %v1698_v13 = vpop.f32.mrf.mxu1 }
 0x280   :  { %3241 = vpow2.f32 %v1807_v5  ;;  %v1824_v44 = vsub.f32 %v1689_v59, %v1744_v18  ;;  %v1745_v11 = vmax.f32 %v1737_v37, %v1695_v24  ;;  %v1699_v6 = vadd.f32 %v1698_v13, %v1585_v34 }
 0x281   :  { %3243 = vpow2.f32 %v1831_v19  ;;  %v1761_v15 = vmul.f32 1.442695, %v1752_v52  ;;  %v1785_v14 = vmul.f32 1.442695, %v1776_v0  ;;  %v1809_v27 = vmul.f32 1.442695, %v1800_v41  ;;  %v1587_v20 = vpop.f32.mrf.mxu0  ;;  %v1700_v17 = vpop.f32.mrf.mxu1 }
 0x282   :  { %v1833_v8 = vmul.f32 1.442695, %v1824_v44  ;;  %v1753_v57 = vsub.f32 %v4085_v55, %v1745_v11  ;;  %v1777_v30 = vsub.f32 %v4077_v1, %v1745_v11  ;;  %v1801_v39 = vsub.f32 %v1693_v61, %v1745_v11 }
 0x283   :  { %3245 = vpow2.f32 %v1761_v15  ;;  %v1825_v21 = vsub.f32 %v1695_v24, %v1745_v11  ;;  %v1738_v26 = vmax.f32 %v1730_v60, %v1699_v6  ;;  %v1701_v4 = vadd.f32 %v1700_v17, %v1587_v20  ;;  %v1591_v5 = vpop.f32.mrf.mxu0  ;;  %v1704_v59 = vpop.f32.mrf.mxu1 }
 0x284   :  { %v4115_v19 = vadd.f32 %v4063_v51, %v4061_v53  ;;  %3247 = vpow2.f32 %v1785_v14  ;;  %v1763_v18 = vmul.f32 1.442695, %v1753_v57  ;;  %v1787_v47 = vmul.f32 1.442695, %v1777_v30 }
 0x285   :  { %3249 = vpow2.f32 %v1809_v27  ;;  %v1811_v58 = vmul.f32 1.442695, %v1801_v39  ;;  %v1746_v37 = vmax.f32 %v1738_v26, %v1701_v4  ;;  %v1705_v55 = vadd.f32 %v1704_v59, %v1591_v5  ;;  %v1593_v52 = vpop.f32.mrf.mxu0  ;;  %v1706_v1 = vpop.f32.mrf.mxu1 }
 0x286   :  { %v4119_v61 = vadd.f32 %v4069_v38, %v4067_v40  ;;  %3251 = vpow2.f32 %v1833_v8  ;;  %v1835_v60 = vmul.f32 1.442695, %v1825_v21  ;;  %v1707_v24 = vadd.f32 %v1706_v1, %v1593_v52 }
 0x287   :  { %3253 = vpow2.f32 %v1763_v18  ;;  %v1754_v51 = vsub.f32 %v4089_v32, %v1746_v37  ;;  %v1778_v53 = vsub.f32 %v4079_v31, %v1746_v37  ;;  %v1802_v0 = vsub.f32 %v1699_v6, %v1746_v37  ;;  %v1597_v41 = vpop.f32.mrf.mxu0  ;;  %v1710_v34 = vpop.f32.mrf.mxu1 }
 0x288   :  { %3255 = vpow2.f32 %v1787_v47  ;;  %v1826_v13 = vsub.f32 %v1701_v4, %v1746_v37  ;;  %v4561_v44 = vmax.f32 %v4097_v2, %v4091_v33  ;;  %v1711_v15 = vadd.f32 %v1710_v34, %v1597_v41 }
 0x289   :  { %3257 = vpow2.f32 %v1811_v58  ;;  %v1765_v38 = vmul.f32 1.442695, %v1754_v51  ;;  %v1789_v40 = vmul.f32 1.442695, %v1778_v53  ;;  %v1813_v14 = vmul.f32 1.442695, %v1802_v0  ;;  %v1599_v27 = vpop.f32.mrf.mxu0  ;;  %v1712_v20 = vpop.f32.mrf.mxu1 }
 0x28a   :  { %v1739_v11 = vmax.f32 %v4561_v44, %v1705_v55  ;;  %3259 = vpow2.f32 %v1835_v60  ;;  %v1837_v32 = vmul.f32 1.442695, %v1826_v13  ;;  %v1740_v31 = vmax.f32 %v1732_v63, %v1711_v15 }
 0x28b   :  { %v4129_v6 = vpop.eup %3237  ;;  %v1733_v8 = vmax.f32 %v4107_v9, %v4109_v43  ;;  %v1734_v57 = vmax.f32 %v4115_v19, %v4119_v61  ;;  %3261 = vpow2.f32 %v1765_v38  ;;  %v1713_v30 = vadd.f32 %v1712_v20, %v1599_v27  ;;  %v1603_v39 = vpop.f32.mrf.mxu0 }
 0x28c   :  { %v1747_v17 = vmax.f32 %v1739_v11, %v1707_v24  ;;  %v1716_v21 = vpop.f32.mrf.mxu1  ;;  %v4135_v26 = vpop.eup %3239  ;;  %3263 = vpow2.f32 %v1789_v40 }
 0x28d   :  { %v4139_v59 = vpop.eup %3241  ;;  %3265 = vpow2.f32 %v1813_v14  ;;  %v1748_v47 = vmax.f32 %v1740_v31, %v1713_v30  ;;  %v1717_v58 = vadd.f32 %v1716_v21, %v1603_v39  ;;  %v1605_v37 = vpop.f32.mrf.mxu0  ;;  %v1847_v39 = vadd.f32 %v4135_v26, %v4129_v6 }
 0x28e   :  { %v1755_v4 = vsub.f32 %v4097_v2, %v1747_v17  ;;  %v1779_v5 = vsub.f32 %v4091_v33, %v1747_v17  ;;  %v1803_v63 = vsub.f32 %v1705_v55, %v1747_v17  ;;  %v1827_v18 = vsub.f32 %v1707_v24, %v1747_v17  ;;  %v1718_v52 = vpop.f32.mrf.mxu1  ;;  %v4141_v1 = vpop.eup %3243 }
 0x28f   :  { %3267 = vpow2.f32 %v1837_v32  ;;  %v1756_v2 = vsub.f32 %v4103_v49, %v1748_v47  ;;  %v1780_v33 = vsub.f32 %v4099_v48, %v1748_v47  ;;  %v1804_v55 = vsub.f32 %v1711_v15, %v1748_v47  ;;  %v1609_v41 = vpop.f32.mrf.mxu0 }
 0x290   :  { %v1767_v60 = vmul.f32 1.442695, %v1755_v4  ;;  %v1791_v51 = vmul.f32 1.442695, %v1779_v5  ;;  %v1815_v53 = vmul.f32 1.442695, %v1803_v63  ;;  %v1722_v34 = vpop.f32.mrf.mxu1  ;;  %v4145_v13 = vpop.eup %3245  ;;  %v1828_v24 = vsub.f32 %v1713_v30, %v1748_v47 }
 0x291   :  { %v1839_v0 = vmul.f32 1.442695, %v1827_v18  ;;  %v1741_v44 = vmax.f32 %v1733_v8, %v1717_v58  ;;  %v1719_v11 = vadd.f32 %v1718_v52, %v1605_v37  ;;  %v4147_v38 = vpop.eup %3247  ;;  %v1769_v40 = vmul.f32 1.442695, %v1756_v2  ;;  %v1611_v20 = vpop.f32.mrf.mxu0 }
 0x292   :  { %3269 = vpow2.f32 %v1767_v60  ;;  %v1793_v14 = vmul.f32 1.442695, %v1780_v33  ;;  %v1817_v27 = vmul.f32 1.442695, %v1804_v55  ;;  %v1724_v32 = vpop.f32.mrf.mxu1  ;;  %v4149_v49 = vpop.eup %3249  ;;  %v1848_v48 = vadd.f32 %v4147_v38, %v4145_v13 }
 0x293   :  { %3271 = vpow2.f32 %v1791_v51  ;;  %v1841_v15 = vmul.f32 1.442695, %v1828_v24  ;;  %v1749_v17 = vmax.f32 %v1741_v44, %v1719_v11  ;;  %v4153_v31 = vpop.eup %3251  ;;  %v1723_v8 = vadd.f32 %v1722_v34, %v1609_v41 }
 0x294   :  { %3273 = vpow2.f32 %v1815_v53  ;;  %v1725_v30 = vadd.f32 %v1724_v32, %v1611_v20  ;;  %v4157_v21 = vpop.eup %3253  ;;  %v1856_v4 = vadd.f32 %v4149_v49, %v1848_v48  ;;  %v1855_v55 = vadd.f32 %v4139_v59, %v1847_v39 }
 0x295   :  { %3275 = vpow2.f32 %v1839_v0  ;;  %v1757_v5 = vsub.f32 %v4107_v9, %v1749_v17  ;;  %v1781_v63 = vsub.f32 %v4109_v43, %v1749_v17  ;;  %v4162_v18 = vpop.eup %3255  ;;  %v1805_v47 = vsub.f32 %v1717_v58, %v1749_v17 }
 0x296   :  { %3277 = vpow2.f32 %v1769_v40  ;;  %v1742_v37 = vmax.f32 %v1734_v57, %v1723_v8  ;;  %v4164_v52 = vpop.eup %3257  ;;  %v1864_v60 = vadd.f32 %v4153_v31, %v1856_v4  ;;  %v1829_v2 = vsub.f32 %v1719_v11, %v1749_v17 }
 0x297   :  { %3279 = vpow2.f32 %v1793_v14  ;;  %v1771_v51 = vmul.f32 1.442695, %v1757_v5  ;;  %v1795_v53 = vmul.f32 1.442695, %v1781_v63  ;;  %v4167_v0 = vpop.eup %3259  ;;  %v1819_v43 = vmul.f32 1.442695, %v1805_v47 }
 0x298   :  { %3281 = vpow2.f32 %v1817_v27  ;;  %v1750_v33 = vmax.f32 %v1742_v37, %v1725_v30  ;;  %v4169_v9 = vpop.eup %3261  ;;  %v1843_v11 = vmul.f32 1.442695, %v1829_v2  ;;  %v1863_v48 = vadd.f32 %v4141_v1, %v1855_v55 }
 0x299   :  { %3283 = vpow2.f32 %v1841_v15  ;;  %v4172_v58 = vpop.eup %3263  ;;  %v1903_v37 = vmul.f32 %v4129_v6, %v3916_v10  ;;  %v1912_v10 = vmul.f32 %v4147_v38, %v3928_v35  ;;  %v1927_v38 = vmul.f32 %v4139_v59, %v3918_v12 }
 0x29a   :  { %3285 = vrcp.f32 %v1864_v60  ;;  %v1758_v57 = vsub.f32 %v4115_v19, %v1750_v33  ;;  %v1782_v41 = vsub.f32 %v4119_v61, %v1750_v33  ;;  %v1806_v34 = vsub.f32 %v1723_v8, %v1750_v33  ;;  %v4176_v24 = vpop.eup %3265 }
 0x29b   :  { %3287 = vpow2.f32 %v1771_v51  ;;  %v1830_v27 = vsub.f32 %v1725_v30, %v1750_v33  ;;  %v1849_v61 = vadd.f32 %v4162_v18, %v4157_v21  ;;  %v1850_v63 = vadd.f32 %v4172_v58, %v4169_v9 }
 0x29c   :  { %3289 = vpow2.f32 %v1795_v53  ;;  %v4178_v44 = vpop.eup %3267  ;;  %v1773_v40 = vmul.f32 1.442695, %v1758_v57  ;;  %v1797_v14 = vmul.f32 1.442695, %v1782_v41  ;;  %v1821_v20 = vmul.f32 1.442695, %v1806_v34 }
 0x29d   :  { %3291 = vpow2.f32 %v1819_v43  ;;  %v1845_v17 = vmul.f32 1.442695, %v1830_v27  ;;  %v1857_v30 = vadd.f32 %v4164_v52, %v1849_v61  ;;  %v1911_v51 = vmul.f32 %v4135_v26, %v3920_v22 }
 0x29e   :  { %3293 = vpow2.f32 %v1773_v40  ;;  %v1858_v2 = vadd.f32 %v4176_v24, %v1850_v63  ;;  %v1904_v57 = vmul.f32 %v4145_v13, %v3924_v28  ;;  %v1905_v34 = vmul.f32 %v4157_v21, %v3932_v45 }
 0x29f   :  { %v4180_v32 = vpop.eup %3269  ;;  %3295 = vpow2.f32 %v1797_v14  ;;  %v4197_v5 = vadd.f32 %v4167_v0, %v1857_v30  ;;  %v1919_v41 = vadd.f32 %v1911_v51, %v1903_v37  ;;  %v1913_v28 = vmul.f32 %v4162_v18, %v3936_v16 }
 0x2a0   :  { %v4183_v19 = vpop.eup %3271  ;;  %3297 = vpow2.f32 %v1843_v11  ;;  %v4220_v22 = vadd.f32 %v4178_v44, %v1858_v2  ;;  %v1920_v21 = vadd.f32 %v1912_v10, %v1904_v57  ;;  %v1943_v27 = vmul.f32 %v4141_v1, %v3922_v23 }
 0x2a1   :  { %v4187_v15 = vpop.eup %3273  ;;  %3299 = vpow2.f32 %v1821_v20  ;;  %v1851_v33 = vadd.f32 %v4183_v19, %v4180_v32  ;;  %v1928_v61 = vmul.f32 %v4149_v49, %v3926_v56  ;;  %v1906_v37 = vmul.f32 %v4169_v9, %v3940_v50 }
 0x2a2   :  { %v4189_v8 = vpop.eup %3275  ;;  %3301 = vrcp.f32 %v1863_v48  ;;  %v1914_v23 = vmul.f32 %v4172_v58, %v3944_v46  ;;  %v1944_v56 = vmul.f32 %v4153_v31, %v3930_v36  ;;  %v1929_v50 = vmul.f32 %v4164_v52, %v3934_v29 }
 0x2a3   :  { %v4192_v39 = vpop.eup %3277  ;;  %3303 = vpow2.f32 %v1845_v17  ;;  %v1859_v6 = vadd.f32 %v4187_v15, %v1851_v33  ;;  %v1921_v17 = vadd.f32 %v1913_v28, %v1905_v34  ;;  %v1936_v2 = vadd.f32 %v1928_v61, %v1920_v21 }
 0x2a4   :  { %v4194_v4 = vpop.eup %3279  ;;  %3305 = vrcp.f32 %v4197_v5  ;;  %v1907_v10 = vmul.f32 %v4180_v32, %v3948_v7  ;;  %v1930_v7 = vmul.f32 %v4176_v24, %v3942_v25 }
 0x2a5   :  { %v4201_v47 = vpop.eup %3281  ;;  %v1852_v11 = vadd.f32 %v4194_v4, %v4192_v39  ;;  %3307 = vrcp.f32 %v4220_v22  ;;  %v4233_v35 = vadd.f32 %v4189_v8, %v1859_v6  ;;  %v1915_v6 = vmul.f32 %v4183_v19, %v3952_v54 }
 0x2a6   :  { %v4207_v53 = vpop.eup %3283  ;;  %v1952_v29 = vadd.f32 %v1944_v56, %v1936_v2  ;;  %v1908_v54 = vmul.f32 %v4192_v39, %v3956_v3  ;;  %v1916_v19 = vmul.f32 %v4194_v4, %v3960_v62  ;;  %v4564_v39 = vld [vmem:[#allocation26_spill] sm:$0xff] }
 0x2a7   :  { %v3286_v43 = vpop.eup %3285  ;;  %v1860_v14 = vadd.f32 %v4201_v47, %v1852_v11  ;;  %3309 = vrcp.f32 %v4233_v35  ;;  %v1923_v28 = vadd.f32 %v1915_v6, %v1907_v10  ;;  %v4572_v6 = vld [vmem:[#allocation25_spill] sm:$0xff] }
 0x2a8   :  { %v4213_v55 = vpop.eup %3287  ;;  %v1880_v40 = vmul.f32 %v3286_v43, %v1864_v60  ;;  %v1935_v60 = vadd.f32 %v1927_v38, %v1919_v41  ;;  %v1922_v41 = vadd.f32 %v1914_v23, %v1906_v37  ;;  %v4566_v37 = vld [vmem:[#allocation21_spill] sm:$0xff]  ;;  %v4567_v23 = vld [vmem:[#allocation22_spill] sm:$0xff] }
 0x2a9   :  { %v4223_v26 = vpop.eup %3289  ;;  %v4250_v20 = vadd.f32 %v4207_v53, %v1860_v14 }
 0x2aa   :  { %v4235_v13 = vpop.eup %3291  ;;  %v1853_v16 = vadd.f32 %v4223_v26, %v4213_v55  ;;  %v1888_v59 = vsub.f32 2.0, %v1880_v40  ;;  %v1951_v57 = vadd.f32 %v1943_v27, %v1935_v60  ;;  %v1938_v21 = vadd.f32 %v1930_v7, %v1922_v41  ;;  %v4565_v60 = vld [vmem:[#allocation19_spill] sm:$0xff] }
 0x2ab   :  { %v4240_v45 = vpop.eup %3293  ;;  %3311 = vrcp.f32 %v4250_v20  ;;  %v1917_v62 = vmul.f32 %v4223_v26, %v4564_v39  ;;  %v1946_v27 = vmul.f32 %v4178_v44, %v4565_v60  ;;  %v4570_v44 = vld [vmem:[#allocation32_spill] sm:$0xff]  ;;  %v4574_v41 = vld [vmem:[#allocation23_spill] sm:$0xff] }
 0x2ac   :  { %v4245_v18 = vpop.eup %3295  ;;  %v1861_v30 = vadd.f32 %v4235_v13, %v1853_v16  ;;  %v1896_v58 = vmul.f32 %v3286_v43, %v1888_v59  ;;  %v1945_v43 = vmul.f32 %v4167_v0, %v3938_v42  ;;  %v4562_v42 = vld [vmem:[#allocation20_spill] sm:$0xff]  ;;  %v1924_v59 = vadd.f32 %v1916_v19, %v1908_v54 }
 0x2ad   :  { %v4252_v12 = vpop.eup %3297  ;;  %v1854_v1 = vadd.f32 %v4245_v18, %v4240_v45  ;;  %v1931_v0 = vmul.f32 %v4187_v15, %v4562_v42  ;;  %v4563_v16 = vld [vmem:[#allocation24_spill] sm:$0xff] }
 0x2ae   :  { %v4257_v63 = vpop.eup %3299  ;;  %v4269_v49 = vadd.f32 %v4252_v12, %v1861_v30  ;;  %v1960_v11 = vmul.f32 %v1952_v29, %v1896_v58  ;;  %v1909_v3 = vmul.f32 %v4213_v55, %v4563_v16  ;;  %v1932_v55 = vmul.f32 %v4201_v47, %v4567_v23  ;;  %v4583_v60 = vld [vmem:[#allocation40_spill] sm:$0xff]  ;;  %v3349_v23 = vld [vmem:[#allocation2] sm:$0xff] }
 0x2af   :  { %v3302_v51 = vpop.eup %3301  ;;  %v1862_v46 = vadd.f32 %v4257_v63, %v1854_v1  ;;  %v1939_v30 = vadd.f32 %v1931_v0, %v1923_v28  ;;  %v4568_v1 = vld [vmem:[#allocation28_spill] sm:$0xff]  ;;  %v1948_v29 = vmul.f32 %v4207_v53, %v4574_v41  ;;  %v4577_v28 = vld [vmem:[#allocation27_spill] sm:$0xff]  ;;  %v3356_v41 = vld [vmem:[#allocation2 + $0x38] sm:$0xff] }
 0x2b0   :  { %v1879_v33 = vmul.f32 %v3302_v51, %v1863_v48  ;;  %v4274_v9 = vpop.eup %3303  ;;  %3313 = vrcp.f32 %v4269_v49  ;;  %v1937_v48 = vadd.f32 %v1929_v50, %v1921_v17  ;;  %v1910_v26 = vmul.f32 %v4240_v45, %v4568_v1  ;;  %v3350_v1 = vld [vmem:[#allocation2 + $0x8] sm:$0xff] }
 0x2b1   :  { %v3306_v36 = vpop.eup %3305  ;;  %v4282_v34 = vadd.f32 %v4274_v9, %v1862_v46  ;;  %v1925_v50 = vadd.f32 %v1917_v62, %v1909_v3  ;;  %v4571_v46 = vld [vmem:[#allocation33_spill] sm:$0xff]  ;;  %v1940_v58 = vadd.f32 %v1932_v55, %v1924_v59  ;;  %v4581_v62 = vld [vmem:[#allocation38_spill] sm:$0xff]  ;;  %v4586_v59 = vld [vmem:[#allocation43_spill] sm:$0xff] }
 0x2b2   :  { %v1887_v31 = vsub.f32 2.0, %v1879_v33  ;;  %v1881_v52 = vmul.f32 %v3306_v36, %v4197_v5  ;;  %v3308_v38 = vpop.eup %3307  ;;  %v1953_v14 = vadd.f32 %v1945_v43, %v1937_v48 }
 0x2b3   :  { %3315 = vrcp.f32 %v4282_v34  ;;  %v1882_v24 = vmul.f32 %v3308_v38, %v4220_v22  ;;  %v1947_v22 = vmul.f32 %v4189_v8, %v4566_v37  ;;  %v1956_v19 = vadd.f32 %v1948_v29, %v1940_v58  ;;  %v3353_v58 = vld [vmem:[#allocation2 + $0x20] sm:$0xff] }
 0x2b4   :  { %v1895_v32 = vmul.f32 %v3302_v51, %v1887_v31  ;;  %v1889_v40 = vsub.f32 2.0, %v1881_v52  ;;  %v3310_v4 = vpop.eup %3309  ;;  %v4569_v51 = vld [vmem:[#allocation30_spill] sm:$0xff] }
 0x2b5   :  { %v1890_v17 = vsub.f32 2.0, %v1882_v24  ;;  %v1883_v15 = vmul.f32 %v3310_v4, %v4233_v35  ;;  %v1918_v2 = vmul.f32 %v4245_v18, %v4569_v51  ;;  %v1955_v10 = vadd.f32 %v1947_v22, %v1939_v30  ;;  %v4580_v24 = vld [vmem:[#allocation31_spill] sm:$0xff] }
 0x2b6   :  { %v1959_v5 = vmul.f32 %v1951_v57, %v1895_v32  ;;  %v1897_v25 = vmul.f32 %v3306_v36, %v1889_v40  ;;  %v1954_v57 = vadd.f32 %v1946_v27, %v1938_v21  ;;  %v1933_v18 = vmul.f32 %v4235_v13, %v4572_v6  ;;  %v4573_v36 = vld [vmem:[#allocation34_spill] sm:$0xff]  ;;  %v4575_v32 = vld [vmem:[#allocation35_spill] sm:$0xff]  ;;  %v4576_v13 = vld [vmem:[#allocation29_spill] sm:$0xff] }
 0x2b7   :  { %v1898_v33 = vmul.f32 %v3308_v38, %v1890_v17  ;;  %v1891_v35 = vsub.f32 2.0, %v1883_v15  ;;  %v1926_v52 = vadd.f32 %v1918_v2, %v1910_v26  ;;  %v1949_v38 = vmul.f32 %v4252_v12, %v4577_v28  ;;  %v4585_v27 = vld [vmem:[#allocation42_spill] sm:$0xff]  ;;  %v4350_v17 = vld [vmem:[#allocation10 + $0x10] sm:$0xff]  ;;  %v4355_v15 = vld [vmem:[#allocation10 + $0x8] sm:$0xff] }
 0x2b8   :  { %2991 = vmatprep.mubr.f32.mxu0 %v1959_v5  ;;  %v1961_v61 = vmul.f32 %v1953_v14, %v1897_v25  ;;  %v3312_v56 = vpop.eup %3311  ;;  %v1941_v7 = vadd.f32 %v1933_v18, %v1925_v50  ;;  %v4578_v5 = vld [vmem:[#allocation36_spill] sm:$0xff]  ;;  %v4579_v25 = vld [vmem:[#allocation37_spill] sm:$0xff]  ;;  %v1950_v16 = vmul.f32 %v4274_v9, %v4580_v24  ;;  %3029 = vmatprep.subr.mxu1 %v4350_v17  ;;  %v4357_v30 = vld [vmem:[#allocation10] sm:$0xff] }
 0x2b9   :  { %2992 = vmatmul.mubr.f32.vlgmr.msra.gmra.mxu0 %v1960_v11  ;;  %v1884_v8 = vmul.f32 %v3312_v56, %v4250_v20  ;;  %v1962_v47 = vmul.f32 %v1954_v57, %v1898_v33  ;;  %v1899_v45 = vmul.f32 %v3310_v4, %v1891_v35  ;;  %v1934_v11 = vmul.f32 %v4257_v63, %v4576_v13  ;;  %v4582_v4 = vld [vmem:[#allocation39_spill] sm:$0xff]  ;;  %v4584_v9 = vld [vmem:[#allocation41_spill] sm:$0xff]  ;;  %v3352_v57 = vld [vmem:[#allocation2 + $0x18] sm:$0xff] }
 0x2ba   :  { %3048 = vmatpush3.msra.mxu0 %v4570_v44  ;;  %2994 = vmatprep.mubr.f32.mxu0 %v1961_v61  ;;  %v1957_v0 = vadd.f32 %v1949_v38, %v1941_v7  ;;  %v4587_v61 = vld [vmem:[#allocation44_spill] sm:$0xff] }
 0x2bb   :  { %3049 = vmatprep.subr.mxu0 %v4571_v46  ;;  %v1892_v48 = vsub.f32 2.0, %v1884_v8  ;;  %v1963_v20 = vmul.f32 %v1955_v10, %v1899_v45  ;;  %v1942_v21 = vadd.f32 %v1934_v11, %v1926_v52  ;;  %3030 = vmatpush3.msra.mxu1 %v4350_v17  ;;  %v3354_v45 = vld [vmem:[#allocation2 + $0x28] sm:$0xff]  ;;  %v2398_v52 = vld [vmem:[#allocation11 + $0x78] sm:$0xff] }
 0x2bc   :  { %3050 = vmatpush3.msra.mxu0 %v4571_v46  ;;  %3031 = vmatprep.subr.mxu1 %v4355_v15 }
 0x2bd   :  { %3051 = vmatprep.subr.mxu0 %v4573_v36  ;;  %v3314_v31 = vpop.eup %3313  ;;  %2995 = vmatmul.mubr.f32.gmra.mxu0 %v1962_v47  ;;  %v1900_v54 = vmul.f32 %v3312_v56, %v1892_v48  ;;  %v1958_v39 = vadd.f32 %v1950_v16, %v1942_v21  ;;  %v3351_v56 = vld [vmem:[#allocation2 + $0x10] sm:$0xff] }
 0x2be   :  { %3052 = vmatpush3.msra.mxu0 %v4573_v36  ;;  %v1885_v43 = vmul.f32 %v3314_v31, %v4269_v49  ;;  %2997 = vmatprep.mubr.f32.mxu0 %v1963_v20  ;;  %v2397_v20 = vld [vmem:[#allocation11 + $0x70] sm:$0xff] }
 0x2bf   :  { %3053 = vmatprep.subr.mxu0 %v4575_v32  ;;  %v1964_v14 = vmul.f32 %v1956_v19, %v1900_v54  ;;  %3032 = vmatpush3.msra.mxu1 %v4355_v15 }
 0x2c0   :  { %3054 = vmatpush3.msra.mxu0 %v4575_v32  ;;  %v3316_v40 = vpop.eup %3315  ;;  %v1893_v53 = vsub.f32 2.0, %v1885_v43  ;;  %3033 = vmatprep.subr.mxu1 %v4357_v30  ;;  %v2396_v43 = vld [vmem:[#allocation11 + $0x68] sm:$0xff] }
 0x2c1   :  { %3055 = vmatprep.subr.mxu0 %v4578_v5  ;;  %v1886_v49 = vmul.f32 %v3316_v40, %v4282_v34  ;;  %2998 = vmatmul.mubr.f32.gmra.mxu0 %v1964_v14 }
 0x2c2   :  { %3056 = vmatpush3.msra.mxu0 %v4578_v5  ;;  %v1901_v42 = vmul.f32 %v3314_v31, %v1893_v53  ;;  %3034 = vmatpush3.msra.mxu1 %v4357_v30  ;;  %v3355_v31 = vld [vmem:[#allocation2 + $0x30] sm:$0xff] }
 0x2c3   :  { %3057 = vmatprep.subr.mxu0 %v4579_v25  ;;  %v1894_v63 = vsub.f32 2.0, %v1886_v49  ;;  %3091 = vmatprep.subr.mxu1 %v2398_v52 }
 0x2c4   :  { %v1965_v3 = vmul.f32 %v1957_v0, %v1901_v42  ;;  %3058 = vmatpush3.msra.mxu0 %v4579_v25 }
 0x2c5   :  { %v1902_v12 = vmul.f32 %v3316_v40, %v1894_v63  ;;  %3059 = vmatprep.subr.mxu0 %v4581_v62 }
 0x2c6   :  { %3000 = vmatprep.mubr.f32.mxu0 %v1965_v3  ;;  %3060 = vmatpush3.msra.mxu0 %v4581_v62 }
 0x2c7   :  { %v1966_v34 = vmul.f32 %v1958_v39, %v1902_v12  ;;  %3061 = vmatprep.subr.mxu0 %v4582_v4  ;;  %v2394_v39 = vld [vmem:[#allocation11 + $0x58] sm:$0xff] }
 0x2c8   :  { %3062 = vmatpush3.msra.mxu0 %v4582_v4 }
 0x2c9   :  { %3001 = vmatmul.mubr.f32.gmra.mxu0 %v1966_v34  ;;  %3063 = vmatprep.subr.mxu0 %v4583_v60  ;;  %v2392_v34 = vld [vmem:[#allocation11 + $0x48] sm:$0xff] }
 0x2ca   :  { %3064 = vmatpush3.msra.mxu0 %v4583_v60 }
 0x2cb   :  { %3065 = vmatprep.subr.mxu0 %v4584_v9 }
 0x2cc   :  { %3066 = vmatpush3.msra.mxu0 %v4584_v9 }
 0x2cd   :  { %3067 = vmatprep.subr.mxu0 %v4585_v27 }
 0x2ce   :  { %3068 = vmatpush3.msra.mxu0 %v4585_v27 }
 0x2cf   :  { %3069 = vmatprep.subr.mxu0 %v4586_v59 }
 0x2d0   :  { %3070 = vmatpush3.msra.mxu0 %v4586_v59 }
 0x2d1   :  { %3071 = vmatprep.subr.mxu0 %v4587_v61 }
 0x2d2   :  { %3072 = vmatpush3.msra.mxu0 %v4587_v61 }
 0x2d3   :  { %3073 = vmatprep.subr.mxu0 %v4350_v17 }
 0x2d4   :  { %3074 = vmatpush3.msra.mxu0 %v4350_v17 }
 0x2d5   :  { %3075 = vmatprep.subr.mxu0 %v4355_v15 }
 0x2d6   :  { %3076 = vmatpush3.msra.mxu0 %v4355_v15 }
 0x2d7   :  { %3077 = vmatprep.subr.mxu0 %v4357_v30 }
 0x2d8   :  { %3078 = vmatpush3.msra.mxu0 %v4357_v30 }
 0x2d9   :  { %3135 = vmatprep.subr.mxu0 %v4570_v44 }
 0x379   :  { %v2993_v37 = vpop.f32.mrf.mxu0 }
 0x37a   :  { %v2110_v26 = vadd.f32 %v3350_v1, %v2993_v37  ;;  %v2385_v37 = vld [vmem:[#allocation11 + $0x10] sm:$0xff] }
 0x37b   :  { %v2049_v22 = vpop.f32.mrf.mxu0 }
 0x37c   :  { %v2109_v55 = vadd.f32 %v3349_v23, %v2049_v22  ;;  %v2384_v22 = vld [vmem:[#allocation11 + $0x8] sm:$0xff]  ;;  %v2383_v23 = vld [vmem:[#allocation11] sm:$0xff] }
 0x37d   :  { %v2996_v51 = vpop.f32.mrf.mxu0 }
 0x37e   :  { %3035 = vmatprep.mubr.f32.mxu1 %v2109_v55  ;;  %v2112_v35 = vadd.f32 %v3352_v57, %v2996_v51 }
 0x37f   :  { %3036 = vmatmul.mubr.f32.vlgmr.msra.gmra.mxu1 %v2110_v26  ;;  %v2059_v2 = vpop.f32.mrf.mxu0 }
 0x380   :  { %v2111_v33 = vadd.f32 %v3351_v56, %v2059_v2  ;;  %3092 = vmatpush3.msra.mxu1 %v2398_v52 }
 0x381   :  { %v2999_v50 = vpop.f32.mrf.mxu0  ;;  %3093 = vmatprep.subr.mxu1 %v2397_v20 }
 0x382   :  { %3038 = vmatprep.mubr.f32.mxu1 %v2111_v33  ;;  %v2114_v10 = vadd.f32 %v3354_v45, %v2999_v50  ;;  %3094 = vmatpush3.msra.mxu1 %v2397_v20 }
 0x383   :  { %3039 = vmatmul.mubr.f32.gmra.mxu1 %v2112_v35  ;;  %v2069_v8 = vpop.f32.mrf.mxu0  ;;  %3095 = vmatprep.subr.mxu1 %v2396_v43 }
 0x384   :  { %v2113_v47 = vadd.f32 %v3353_v58, %v2069_v8  ;;  %3096 = vmatpush3.msra.mxu1 %v2396_v43  ;;  %v2811_v43 = vld [vmem:[%s4507_s6 + $0x1] ss:$0 sm:$0xff] }
 0x386   :  { %3041 = vmatprep.mubr.f32.mxu1 %v2113_v47 }
 0x387   :  { %3042 = vmatmul.mubr.f32.gmra.mxu1 %v2114_v10 }
 0x389   :  { %v3002_v6 = vpop.f32.mrf.mxu0 }
 0x38a   :  { %v2116_v29 = vadd.f32 %v3356_v41, %v3002_v6 }
 0x38b   :  { %v2079_v18 = vpop.f32.mrf.mxu0 }
 0x38c   :  { %v2115_v48 = vadd.f32 %v3355_v31, %v2079_v18  ;;  %v2810_v18 = vld [vmem:[%s4507_s6] ss:$0 sm:$0xff] }
 0x38e   :  { %3044 = vmatprep.mubr.f32.mxu1 %v2115_v48 }
 0x38f   :  { %3045 = vmatmul.mubr.f32.gmra.mxu1 %v2116_v29 }
 0x43f   :  { %v3037_v7 = vpop.f32.mrf.mxu1 }
 0x440   :  { %v4369_v54 = vsub.f32 %v2110_v26, %v3037_v7 }
 0x441   :  { %v2183_v19 = vpop.f32.mrf.mxu1 }
 0x442   :  { %v4371_v13 = vsub.f32 %v2109_v55, %v2183_v19  ;;  %v2231_v40 = vmul.f32 %v4369_v54, %v4369_v54  ;;  %v3357_v55 = vld [vmem:[#allocation10 + $0x78] sm:$0xff] }
 0x443   :  { %v3040_v53 = vpop.f32.mrf.mxu1 }
 0x444   :  { %v2230_v11 = vmul.f32 %v4371_v13, %v4371_v13  ;;  %v4377_v28 = vsub.f32 %v2112_v35, %v3040_v53 }
 0x445   :  { %v2193_v38 = vpop.f32.mrf.mxu1 }
 0x446   :  { %3079 = vmatprep.mubr.f32.mxu0 %v2230_v11  ;;  %v4379_v14 = vsub.f32 %v2111_v33, %v2193_v38  ;;  %v2233_v42 = vmul.f32 %v4377_v28, %v4377_v28 }
 0x447   :  { %3080 = vmatmul.mubr.f32.vlgmr.msra.gmra.mxu0 %v2231_v40  ;;  %v3043_v21 = vpop.f32.mrf.mxu1 }
 0x448   :  { %3136 = vmatpush3.msra.mxu0 %v4570_v44  ;;  %v2232_v49 = vmul.f32 %v4379_v14, %v4379_v14  ;;  %v4389_v0 = vsub.f32 %v2114_v10, %v3043_v21 }
 0x449   :  { %3137 = vmatprep.subr.mxu0 %v4571_v46  ;;  %v2203_v63 = vpop.f32.mrf.mxu1 }
 0x44a   :  { %3138 = vmatpush3.msra.mxu0 %v4571_v46  ;;  %3082 = vmatprep.mubr.f32.mxu0 %v2232_v49  ;;  %v4392_v44 = vsub.f32 %v2113_v47, %v2203_v63  ;;  %v2235_v24 = vmul.f32 %v4389_v0, %v4389_v0  ;;  %v3358_v63 = vld [vmem:[#allocation10 + $0x70] sm:$0xff] }
 0x44b   :  { %3139 = vmatprep.subr.mxu0 %v4573_v36  ;;  %3083 = vmatmul.mubr.f32.gmra.mxu0 %v2233_v42 }
 0x44c   :  { %3140 = vmatpush3.msra.mxu0 %v4573_v36  ;;  %v2234_v46 = vmul.f32 %v4392_v44, %v4392_v44 }
 0x44d   :  { %3141 = vmatprep.subr.mxu0 %v4575_v32 }
 0x44e   :  { %3142 = vmatpush3.msra.mxu0 %v4575_v32  ;;  %3085 = vmatprep.mubr.f32.mxu0 %v2234_v46 }
 0x44f   :  { %3143 = vmatprep.subr.mxu0 %v4578_v5  ;;  %v3046_v16 = vpop.f32.mrf.mxu1  ;;  %3086 = vmatmul.mubr.f32.gmra.mxu0 %v2235_v24 }
 0x450   :  { %3144 = vmatpush3.msra.mxu0 %v4578_v5  ;;  %v4403_v36 = vsub.f32 %v2116_v29, %v3046_v16 }
 0x451   :  { %3145 = vmatprep.subr.mxu0 %v4579_v25  ;;  %v2213_v3 = vpop.f32.mrf.mxu1 }
 0x452   :  { %v4405_v12 = vsub.f32 %v2115_v48, %v2213_v3  ;;  %3146 = vmatpush3.msra.mxu0 %v4579_v25  ;;  %v2237_v5 = vmul.f32 %v4403_v36, %v4403_v36  ;;  %v2395_v25 = vld [vmem:[#allocation11 + $0x60] sm:$0xff]  ;;  %v3359_v3 = vld [vmem:[#allocation10 + $0x68] sm:$0xff] }
 0x453   :  { %3147 = vmatprep.subr.mxu0 %v4581_v62  ;;  %3097 = vmatprep.subr.mxu1 %v2395_v25 }
 0x454   :  { %v2236_v32 = vmul.f32 %v4405_v12, %v4405_v12  ;;  %3148 = vmatpush3.msra.mxu0 %v4581_v62  ;;  %3098 = vmatpush3.msra.mxu1 %v2395_v25  ;;  %v2393_v62 = vld [vmem:[#allocation11 + $0x50] sm:$0xff] }
 0x455   :  { %3149 = vmatprep.subr.mxu0 %v4582_v4  ;;  %3099 = vmatprep.subr.mxu1 %v2394_v39 }
 0x456   :  { %3088 = vmatprep.mubr.f32.mxu0 %v2236_v32  ;;  %3150 = vmatpush3.msra.mxu0 %v4582_v4  ;;  %v2391_v4 = vld [vmem:[#allocation11 + $0x40] sm:$0xff] }
 0x457   :  { %3089 = vmatmul.mubr.f32.gmra.mxu0 %v2237_v5  ;;  %3151 = vmatprep.subr.mxu0 %v4583_v60 }
 0x458   :  { %3152 = vmatpush3.msra.mxu0 %v4583_v60  ;;  %3100 = vmatpush3.msra.mxu1 %v2394_v39  ;;  %v2390_v60 = vld [vmem:[#allocation11 + $0x38] sm:$0xff] }
 0x459   :  { %3153 = vmatprep.subr.mxu0 %v4584_v9  ;;  %3101 = vmatprep.subr.mxu1 %v2393_v62 }
 0x45a   :  { %3154 = vmatpush3.msra.mxu0 %v4584_v9  ;;  %3102 = vmatpush3.msra.mxu1 %v2393_v62  ;;  %v2389_v9 = vld [vmem:[#allocation11 + $0x30] sm:$0xff]  ;;  %v3361_v62 = vld [vmem:[#allocation10 + $0x58] sm:$0xff] }
 0x45b   :  { %3155 = vmatprep.subr.mxu0 %v4585_v27  ;;  %3103 = vmatprep.subr.mxu1 %v2392_v34 }
 0x45c   :  { %3156 = vmatpush3.msra.mxu0 %v4585_v27  ;;  %3104 = vmatpush3.msra.mxu1 %v2392_v34  ;;  %v2388_v27 = vld [vmem:[#allocation11 + $0x28] sm:$0xff] }
 0x45d   :  { %3157 = vmatprep.subr.mxu0 %v4586_v59  ;;  %3105 = vmatprep.subr.mxu1 %v2391_v4 }
 0x45e   :  { %3158 = vmatpush3.msra.mxu0 %v4586_v59  ;;  %3106 = vmatpush3.msra.mxu1 %v2391_v4  ;;  %v2387_v59 = vld [vmem:[#allocation11 + $0x20] sm:$0xff] }
 0x45f   :  { %3159 = vmatprep.subr.mxu0 %v4587_v61  ;;  %3107 = vmatprep.subr.mxu1 %v2390_v60 }
 0x460   :  { %3160 = vmatpush3.msra.mxu0 %v4587_v61  ;;  %3108 = vmatpush3.msra.mxu1 %v2390_v60  ;;  %v2386_v61 = vld [vmem:[#allocation11 + $0x18] sm:$0xff]  ;;  %v3362_v60 = vld [vmem:[#allocation10 + $0x50] sm:$0xff] }
 0x461   :  { %3161 = vmatprep.subr.mxu0 %v4350_v17  ;;  %3109 = vmatprep.subr.mxu1 %v2389_v9 }
 0x462   :  { %3162 = vmatpush3.msra.mxu0 %v4350_v17  ;;  %3110 = vmatpush3.msra.mxu1 %v2389_v9 }
 0x463   :  { %3163 = vmatprep.subr.mxu0 %v4355_v15  ;;  %3111 = vmatprep.subr.mxu1 %v2388_v27 }
 0x464   :  { %3164 = vmatpush3.msra.mxu0 %v4355_v15  ;;  %3112 = vmatpush3.msra.mxu1 %v2388_v27 }
 0x465   :  { %3165 = vmatprep.subr.mxu0 %v4357_v30  ;;  %3113 = vmatprep.subr.mxu1 %v2387_v59 }
 0x466   :  { %3166 = vmatpush3.msra.mxu0 %v4357_v30  ;;  %3114 = vmatpush3.msra.mxu1 %v2387_v59  ;;  %v3363_v59 = vld [vmem:[#allocation10 + $0x48] sm:$0xff] }
 0x467   :  { %3115 = vmatprep.subr.mxu1 %v2386_v61 }
 0x468   :  { %3116 = vmatpush3.msra.mxu1 %v2386_v61 }
 0x469   :  { %3117 = vmatprep.subr.mxu1 %v2385_v37 }
 0x46a   :  { %3118 = vmatpush3.msra.mxu1 %v2385_v37  ;;  %v3364_v37 = vld [vmem:[#allocation10 + $0x40] sm:$0xff] }
 0x46b   :  { %3119 = vmatprep.subr.mxu1 %v2384_v22 }
 0x46c   :  { %3120 = vmatpush3.msra.mxu1 %v2384_v22  ;;  %v3365_v22 = vld [vmem:[#allocation10 + $0x38] sm:$0xff] }
 0x46d   :  { %3121 = vmatprep.subr.mxu1 %v2383_v23 }
 0x46e   :  { %3122 = vmatpush3.msra.mxu1 %v2383_v23  ;;  %v3367_v23 = vld [vmem:[#allocation10 + $0x28] sm:$0xff] }
 0x46f   :  { %3179 = vmatprep.subr.mxu1 %v3357_v55 }
 0x507   :  { %v3081_v1 = vpop.f32.mrf.mxu0 }
 0x508   :  { %v2310_v26 = vadd.f32 1e-05, %v3081_v1  ;;  %v3369_v1 = vld [vmem:[#allocation10 + $0x18] sm:$0xff] }
 0x509   :  { %v2304_v51 = vpop.f32.mrf.mxu0 }
 0x50a   :  { %3317 = vrsqrt.f32 %v2310_v26  ;;  %v2305_v2 = vadd.f32 1e-05, %v2304_v51  ;;  %v2812_v26 = vld [vmem:[%s4507_s6 + $0x4] ss:$0 sm:$0xff] }
 0x50b   :  { %v3084_v56 = vpop.f32.mrf.mxu0 }
 0x50c   :  { %3319 = vrsqrt.f32 %v2305_v2  ;;  %v2320_v33 = vadd.f32 1e-05, %v3084_v56 }
 0x50d   :  { %v2314_v57 = vpop.f32.mrf.mxu0 }
 0x50e   :  { %3321 = vrsqrt.f32 %v2320_v33  ;;  %v2315_v35 = vadd.f32 1e-05, %v2314_v57 }
 0x50f   :  { %v3087_v50 = vpop.f32.mrf.mxu0 }
 0x510   :  { %3323 = vrsqrt.f32 %v2315_v35  ;;  %v2330_v8 = vadd.f32 1e-05, %v3087_v50 }
 0x511   :  { %v2324_v58 = vpop.f32.mrf.mxu0 }
 0x512   :  { %3325 = vrsqrt.f32 %v2330_v8  ;;  %v2325_v47 = vadd.f32 1e-05, %v2324_v58 }
 0x514   :  { %3327 = vrsqrt.f32 %v2325_v47 }
 0x517   :  { %v3318_v45 = vpop.eup %3317  ;;  %v3090_v6 = vpop.f32.mrf.mxu0 }
 0x518   :  { %v2352_v10 = vmul.f32 %v3318_v45, %v4369_v54  ;;  %v2340_v48 = vadd.f32 1e-05, %v3090_v6 }
 0x519   :  { %v3320_v31 = vpop.eup %3319  ;;  %v2334_v29 = vpop.f32.mrf.mxu0 }
 0x51a   :  { %v2351_v41 = vmul.f32 %v3320_v31, %v4371_v13  ;;  %3329 = vrsqrt.f32 %v2340_v48  ;;  %v2335_v52 = vadd.f32 1e-05, %v2334_v29  ;;  %v2364_v20 = vmul.f32 %v2810_v18, %v2352_v10 }
 0x51b   :  { %v3322_v19 = vpop.eup %3321 }
 0x51c   :  { %v2363_v7 = vmul.f32 %v2810_v18, %v2351_v41  ;;  %3331 = vrsqrt.f32 %v2335_v52  ;;  %v2354_v11 = vmul.f32 %v3322_v19, %v4377_v28  ;;  %v4443_v53 = vadd.f32 %v2811_v43, %v2364_v20 }
 0x51d   :  { %v3324_v40 = vpop.eup %3323 }
 0x51e   :  { %v4440_v54 = vadd.f32 %v2811_v43, %v2363_v7  ;;  %v2353_v13 = vmul.f32 %v3324_v40, %v4379_v14  ;;  %v2366_v38 = vmul.f32 %v2810_v18, %v2354_v11 }
 0x51f   :  { %v3326_v49 = vpop.eup %3325 }
 0x520   :  { %3123 = vmatprep.mubr.f32.mxu1 %v4440_v54  ;;  %v2365_v21 = vmul.f32 %v2810_v18, %v2353_v13  ;;  %v2356_v42 = vmul.f32 %v3326_v49, %v4389_v0  ;;  %v4451_v28 = vadd.f32 %v2811_v43, %v2366_v38  ;;  %v3360_v0 = vld [vmem:[#allocation10 + $0x60] sm:$0xff] }
 0x521   :  { %3124 = vmatmul.mubr.f32.vlgmr.msra.gmra.mxu1 %v4443_v53  ;;  %v3328_v46 = vpop.eup %3327 }
 0x522   :  { %3180 = vmatpush3.msra.mxu1 %v3357_v55  ;;  %v4449_v24 = vadd.f32 %v2811_v43, %v2365_v21  ;;  %v2355_v16 = vmul.f32 %v3328_v46, %v4392_v44  ;;  %v2368_v14 = vmul.f32 %v2810_v18, %v2356_v42  ;;  %v3368_v55 = vld [vmem:[#allocation10 + $0x20] sm:$0xff] }
 0x523   :  { %3181 = vmatprep.subr.mxu1 %v3358_v63 }
 0x524   :  { %3182 = vmatpush3.msra.mxu1 %v3358_v63  ;;  %3126 = vmatprep.mubr.f32.mxu1 %v4449_v24  ;;  %v2367_v32 = vmul.f32 %v2810_v18, %v2355_v16  ;;  %v4459_v34 = vadd.f32 %v2811_v43, %v2368_v14 }
 0x525   :  { %3183 = vmatprep.subr.mxu1 %v3359_v3  ;;  %3127 = vmatmul.mubr.f32.gmra.mxu1 %v4451_v28 }
 0x526   :  { %3184 = vmatpush3.msra.mxu1 %v3359_v3  ;;  %v4456_v25 = vadd.f32 %v2811_v43, %v2367_v32 }
 0x527   :  { %3185 = vmatprep.subr.mxu1 %v3360_v0  ;;  %v3330_v5 = vpop.eup %3329 }
 0x528   :  { %3186 = vmatpush3.msra.mxu1 %v3360_v0  ;;  %v2358_v39 = vmul.f32 %v3330_v5, %v4403_v36  ;;  %3129 = vmatprep.mubr.f32.mxu1 %v4456_v25 }
 0x529   :  { %3187 = vmatprep.subr.mxu1 %v3361_v62  ;;  %v3332_v44 = vpop.eup %3331  ;;  %3130 = vmatmul.mubr.f32.gmra.mxu1 %v4459_v34 }
 0x52a   :  { %3188 = vmatpush3.msra.mxu1 %v3361_v62  ;;  %v2357_v4 = vmul.f32 %v3332_v44, %v4405_v12  ;;  %v2370_v9 = vmul.f32 %v2810_v18, %v2358_v39  ;;  %v3366_v12 = vld [vmem:[#allocation10 + $0x30] sm:$0xff] }
 0x52b   :  { %3189 = vmatprep.subr.mxu1 %v3362_v60 }
 0x52c   :  { %v2369_v27 = vmul.f32 %v2810_v18, %v2357_v4  ;;  %3190 = vmatpush3.msra.mxu1 %v3362_v60  ;;  %v2382_v61 = vadd.f32 %v2811_v43, %v2370_v9 }
 0x52d   :  { %3191 = vmatprep.subr.mxu1 %v3363_v59 }
 0x52e   :  { %v2381_v36 = vadd.f32 %v2811_v43, %v2369_v27  ;;  %3192 = vmatpush3.msra.mxu1 %v3363_v59 }
 0x52f   :  { %3193 = vmatprep.subr.mxu1 %v3364_v37 }
 0x530   :  { %3132 = vmatprep.mubr.f32.mxu1 %v2381_v36  ;;  %3194 = vmatpush3.msra.mxu1 %v3364_v37 }
 0x531   :  { %3133 = vmatmul.mubr.f32.gmra.mxu1 %v2382_v61  ;;  %3195 = vmatprep.subr.mxu1 %v3365_v22 }
 0x532   :  { %3196 = vmatpush3.msra.mxu1 %v3365_v22 }
 0x533   :  { %3197 = vmatprep.subr.mxu1 %v3366_v12 }
 0x534   :  { %3198 = vmatpush3.msra.mxu1 %v3366_v12 }
 0x535   :  { %3199 = vmatprep.subr.mxu1 %v3367_v23 }
 0x536   :  { %3200 = vmatpush3.msra.mxu1 %v3367_v23 }
 0x537   :  { %3201 = vmatprep.subr.mxu1 %v3368_v55 }
 0x538   :  { %3202 = vmatpush3.msra.mxu1 %v3368_v55  ;;  %v2813_v55 = vld [vmem:[%s4507_s6 + $0x2] ss:$0 sm:$0xff] }
 0x539   :  { %3203 = vmatprep.subr.mxu1 %v3369_v1 }
 0x53a   :  { %3204 = vmatpush3.msra.mxu1 %v3369_v1 }
 0x53b   :  { %3205 = vmatprep.subr.mxu1 %v4350_v17 }
 0x53c   :  { %3206 = vmatpush3.msra.mxu1 %v4350_v17 }
 0x53d   :  { %3207 = vmatprep.subr.mxu1 %v4355_v15 }
 0x53e   :  { %3208 = vmatpush3.msra.mxu1 %v4355_v15 }
 0x53f   :  { %3209 = vmatprep.subr.mxu1 %v4357_v30 }
 0x540   :  { %3210 = vmatpush3.msra.mxu1 %v4357_v30 }
 0x5e1   :  { %v3125_v51 = vpop.f32.mrf.mxu1 }
 0x5e2   :  { %v2475_v2 = vadd.f32 %v3125_v51, %v2812_v26 }
 0x5e3   :  { %v2469_v56 = vpop.f32.mrf.mxu1 }
 0x5e4   :  { %v2470_v33 = vadd.f32 %v2812_v26, %v2469_v56  ;;  %v2509_v17 = vadd.f32 %v2475_v2, %v4443_v53  ;;  %v2814_v2 = vld [vmem:[%s4507_s6 + $0x3] ss:$0 sm:$0xff]  ;;  %s3533_s6 = smov [#allocation13]  }
 0x5e5   :  { %v3128_v35 = vpop.f32.mrf.mxu1  ;;  %s2795_s19 = sshll.u32 %s3533_s6, 4  ;;  %s2796_s19 = int_to_ptr.vmem [resolvable:$true] %s2795_s19 }
 0x5e6   :  { %v2508_v57 = vadd.f32 %v2470_v33, %v4440_v54  ;;  %v2485_v50 = vadd.f32 %v3128_v35, %v2812_v26  ;;  %s3490_s20 = scalar_lea.vmem %s2796_s19, 1024  ;;  %p3495_p3 = scmp.lt.s32.totalorder %s2796_s19, %s2796_s19 }
 0x5e7   :  { %v2479_v15 = vpop.f32.mrf.mxu1  ;;  %p3491_p2 = scmp.ne.s32.totalorder %s2796_s19, %s3490_s20  ;;  %p3496_p4 = scmp.lt.s32.totalorder %s3490_s20, %s3490_s20 }
 0x5e8   :  { %3167 = vmatprep.mubr.f32.mxu0 %v2508_v57  ;;  %v2480_v8 = vadd.f32 %v2812_v26, %v2479_v15  ;;  %v2511_v47 = vadd.f32 %v2485_v50, %v4451_v28 }
 0x5e9   :  { %3168 = vmatmul.mubr.f32.vlgmr.msra.gmra.mxu0 %v2509_v17  ;;  %v3131_v58 = vpop.f32.mrf.mxu1  ;;  %p3497_p5 = por %p3496_p4, %p3495_p3 }
 0x5ea   :  { %v2510_v30 = vadd.f32 %v2480_v8, %v4449_v24  ;;  %v2495_v45 = vadd.f32 %v3131_v58, %v2812_v26 }
 0x5eb   :  { %v2489_v10 = vpop.f32.mrf.mxu1  ;;  %p3498_p6 = pnand %p3497_p5, %p3491_p2 }
 0x5ec   :  { %3170 = vmatprep.mubr.f32.mxu0 %v2510_v30  ;;  %v2490_v6 = vadd.f32 %v2812_v26, %v2489_v10  ;;  %v2513_v31 = vadd.f32 %v2495_v45, %v4459_v34 }
 0x5ed   :  { %3171 = vmatmul.mubr.f32.gmra.mxu0 %v2511_v47 }
 0x5ee   :  { %v2512_v18 = vadd.f32 %v2490_v6, %v4456_v25 }
 0x5f0   :  { %3173 = vmatprep.mubr.f32.mxu0 %v2512_v18 }
 0x5f1   :  { %v3134_v48 = vpop.f32.mrf.mxu1  ;;  %3174 = vmatmul.mubr.f32.gmra.mxu0 %v2513_v31 }
 0x5f2   :  { %v2505_v41 = vadd.f32 %v3134_v48, %v2812_v26 }
 0x5f3   :  { %v2499_v29 = vpop.f32.mrf.mxu1 }
 0x5f4   :  { %v2500_v52 = vadd.f32 %v2812_v26, %v2499_v29  ;;  %v2515_v43 = vadd.f32 %v2505_v41, %v2382_v61 }
 0x5f6   :  { %v2514_v20 = vadd.f32 %v2500_v52, %v2381_v36 }
 0x5f8   :  { %3176 = vmatprep.mubr.f32.mxu0 %v2514_v20 }
 0x5f9   :  { %3177 = vmatmul.mubr.f32.gmra.mxu0 %v2515_v43 }
 0x6a9   :  { %v3169_v7 = vpop.f32.mrf.mxu0 }
 0x6aa   :  { %v2622_v19 = vsub.f32 %v2509_v17, %v3169_v7 }
 0x6ab   :  { %v2582_v54 = vpop.f32.mrf.mxu0 }
 0x6ac   :  { %v2621_v11 = vsub.f32 %v2508_v57, %v2582_v54  ;;  %v2630_v53 = vmul.f32 %v2622_v19, %v2622_v19 }
 0x6ad   :  { %v3172_v13 = vpop.f32.mrf.mxu0 }
 0x6ae   :  { %v2629_v40 = vmul.f32 %v2621_v11, %v2621_v11  ;;  %v2624_v38 = vsub.f32 %v2511_v47, %v3172_v13 }
 0x6af   :  { %v2592_v49 = vpop.f32.mrf.mxu0 }
 0x6b0   :  { %3211 = vmatprep.mubr.f32.mxu1 %v2629_v40  ;;  %v2623_v21 = vsub.f32 %v2510_v30, %v2592_v49  ;;  %v2632_v46 = vmul.f32 %v2624_v38, %v2624_v38 }
 0x6b1   :  { %3212 = vmatmul.mubr.f32.vlgmr.msra.gmra.mxu1 %v2630_v53  ;;  %v3175_v63 = vpop.f32.mrf.mxu0 }
 0x6b2   :  { %v2631_v42 = vmul.f32 %v2623_v21, %v2623_v21  ;;  %v2626_v24 = vsub.f32 %v2513_v31, %v3175_v63 }
 0x6b3   :  { %v2602_v28 = vpop.f32.mrf.mxu0 }
 0x6b4   :  { %3214 = vmatprep.mubr.f32.mxu1 %v2631_v42  ;;  %v2625_v16 = vsub.f32 %v2512_v18, %v2602_v28  ;;  %v2634_v14 = vmul.f32 %v2626_v24, %v2626_v24 }
 0x6b5   :  { %3215 = vmatmul.mubr.f32.gmra.mxu1 %v2632_v46 }
 0x6b6   :  { %v2633_v3 = vmul.f32 %v2625_v16, %v2625_v16 }
 0x6b8   :  { %3217 = vmatprep.mubr.f32.mxu1 %v2633_v3 }
 0x6b9   :  { %v3178_v32 = vpop.f32.mrf.mxu0  ;;  %3218 = vmatmul.mubr.f32.gmra.mxu1 %v2634_v14 }
 0x6ba   :  { %v4479_v0 = vsub.f32 %v2515_v43, %v3178_v32 }
 0x6bb   :  { %v2612_v5 = vpop.f32.mrf.mxu0 }
 0x6bc   :  { %v4481_v25 = vsub.f32 %v2514_v20, %v2612_v5  ;;  %v2636_v62 = vmul.f32 %v4479_v0, %v4479_v0 }
 0x6be   :  { %v2635_v39 = vmul.f32 %v4481_v25, %v4481_v25 }
 0x6c0   :  { %3220 = vmatprep.mubr.f32.mxu1 %v2635_v39 }
 0x6c1   :  { %3221 = vmatmul.mubr.f32.gmra.mxu1 %v2636_v62 }
 0x771   :  { %v3213_v44 = vpop.f32.mrf.mxu1 }
 0x772   :  { %v2709_v34 = vadd.f32 1e-05, %v3213_v44 }
 0x773   :  { %v2703_v4 = vpop.f32.mrf.mxu1 }
 0x774   :  { %3333 = vrsqrt.f32 %v2709_v34  ;;  %v2704_v60 = vadd.f32 1e-05, %v2703_v4 }
 0x775   :  { %v3216_v9 = vpop.f32.mrf.mxu1 }
 0x776   :  { %3335 = vrsqrt.f32 %v2704_v60  ;;  %v2719_v27 = vadd.f32 1e-05, %v3216_v9 }
 0x777   :  { %v2713_v59 = vpop.f32.mrf.mxu1 }
 0x778   :  { %3337 = vrsqrt.f32 %v2719_v27  ;;  %v2714_v36 = vadd.f32 1e-05, %v2713_v59 }
 0x779   :  { %v3219_v61 = vpop.f32.mrf.mxu1 }
 0x77a   :  { %3339 = vrsqrt.f32 %v2714_v36  ;;  %v2729_v37 = vadd.f32 1e-05, %v3219_v61 }
 0x77b   :  { %v2723_v22 = vpop.f32.mrf.mxu1 }
 0x77c   :  { %3341 = vrsqrt.f32 %v2729_v37  ;;  %v2724_v12 = vadd.f32 1e-05, %v2723_v22 }
 0x77e   :  { %3343 = vrsqrt.f32 %v2724_v12 }
 0x781   :  { %v3334_v23 = vpop.eup %3333  ;;  %v3222_v26 = vpop.f32.mrf.mxu1 }
 0x782   :  { %v2751_v1 = vmul.f32 %v3334_v23, %v2622_v19  ;;  %v2739_v56 = vadd.f32 1e-05, %v3222_v26 }
 0x783   :  { %v3336_v51 = vpop.eup %3335  ;;  %v2733_v17 = vpop.f32.mrf.mxu1 }
 0x784   :  { %v2763_v33 = vmul.f32 %v2813_v55, %v2751_v1  ;;  %v2750_v57 = vmul.f32 %v3336_v51, %v2621_v11  ;;  %3345 = vrsqrt.f32 %v2739_v56  ;;  %v2734_v35 = vadd.f32 1e-05, %v2733_v17 }
 0x785   :  { %v3338_v8 = vpop.eup %3337 }
 0x786   :  { %v2775_v50 = vadd.f32 %v2814_v2, %v2763_v33  ;;  %v2762_v15 = vmul.f32 %v2813_v55, %v2750_v57  ;;  %3347 = vrsqrt.f32 %v2734_v35  ;;  %v2753_v58 = vmul.f32 %v3338_v8, %v2624_v38 }
 0x787   :  { %v3340_v47 = vpop.eup %3339 }
 0x788   :  { %2783 = vst [vmem:[#allocation13 + $0x8] sm:$0xff] %v2775_v50  ;;  %v2774_v30 = vadd.f32 %v2814_v2, %v2762_v15  ;;  %v2765_v45 = vmul.f32 %v2813_v55, %v2753_v58  ;;  %v2752_v10 = vmul.f32 %v3340_v47, %v2623_v21 }
 0x789   :  { %v3342_v6 = vpop.eup %3341 }
 0x78a   :  { %2782 = vst [vmem:[#allocation13] sm:$0xff] %v2774_v30  ;;  %v2777_v18 = vadd.f32 %v2814_v2, %v2765_v45  ;;  %v2764_v31 = vmul.f32 %v2813_v55, %v2752_v10  ;;  %v2755_v48 = vmul.f32 %v3342_v6, %v2626_v24 }
 0x78b   :  { %v3344_v41 = vpop.eup %3343 }
 0x78c   :  { %2785 = vst [vmem:[#allocation13 + $0x18] sm:$0xff] %v2777_v18  ;;  %v2776_v29 = vadd.f32 %v2814_v2, %v2764_v31  ;;  %v2767_v52 = vmul.f32 %v2813_v55, %v2755_v48  ;;  %v2754_v20 = vmul.f32 %v3344_v41, %v2625_v16 }
 0x78e   :  { %2784 = vst [vmem:[#allocation13 + $0x10] sm:$0xff] %v2776_v29  ;;  %v2779_v43 = vadd.f32 %v2814_v2, %v2767_v52  ;;  %v2766_v7 = vmul.f32 %v2813_v55, %v2754_v20 }
 0x790   :  { %2787 = vst [vmem:[#allocation13 + $0x28] sm:$0xff] %v2779_v43  ;;  %v2778_v54 = vadd.f32 %v2814_v2, %v2766_v7 }
 0x791   :  { %v3346_v19 = vpop.eup %3345 }
 0x792   :  { %v2757_v11 = vmul.f32 %v3346_v19, %v4479_v0  ;;  %2786 = vst [vmem:[#allocation13 + $0x20] sm:$0xff] %v2778_v54 }
 0x793   :  { %v3348_v40 = vpop.eup %3347 }
 0x794   :  { %v2769_v53 = vmul.f32 %v2813_v55, %v2757_v11  ;;  %v2756_v13 = vmul.f32 %v3348_v40, %v4481_v25 }
 0x796   :  { %v2781_v38 = vadd.f32 %v2814_v2, %v2769_v53  ;;  %v2768_v49 = vmul.f32 %v2813_v55, %v2756_v13 }
 0x798   :  { %2789 = vst [vmem:[#allocation13 + $0x38] sm:$0xff] %v2781_v38  ;;  %v2780_v21 = vadd.f32 %v2814_v2, %v2768_v49 }
 0x79a   :  { %2788 = vst [vmem:[#allocation13 + $0x30] sm:$0xff] %v2780_v21 }
 0x79b   :  { %3501 = shalt.err (!%p3498_p6)
}
 0x79c   :  { %2801 = dma.vmem_to_hbm [thread:$0]  %s2796_s19, 1024, %s4508_s7, [#allocation4], %s3525_s13, %s3525_s13, %s3526_s14  }
 0x79d   :  { %3518 = dma.done.wait [#allocation4], 1024  }
 0x79e   :  { %3519 = vsyncadd [#allocation4], 4294966272 }
 0x79f   :  { %2805 = vsyncpa [#allocation3], 1 }
 0x7a0   :  { %2806 = vsyncpa [#allocation6], 1 }
 0x7a1   :  { %2807 = vsyncpa [#allocation9], 1 }
 0x7a2   :  { %2808 = vsyncpa [#allocation12], 1 }
 0x7a3   :  { %2809 = vsyncpa [#allocation4], 1 }

</bundles_post_ra>
